<compile_context>
chip_gen: v7x
topology: tpu7x:2x2x1
jax: 0.10.0
libtpu: 0.0.40
codegen_flags: <defaults>
</compile_context>

<pallas_src>
import functools
import math

import jax
import jax.numpy as jnp
from jax.experimental import pallas as pl
from jax.experimental.pallas import tpu as pltpu


def _encoder_layer_kernel(
    x_ref, mask_ref,
    wqkv_ref, bqkv_ref,
    wo_ref, bo_ref,
    g1_ref, be1_ref,
    w1_ref, b1_ref, w2_ref, b2_ref,
    g2_ref, be2_ref,
    o_ref,
    ctx_ref,
    *, n_head: int, n_batch: int, seq_len: int,
):
    f32 = jnp.float32
    bf16 = jnp.bfloat16

    x = x_ref[...]                                   # (nb*S, E) f32
    E = x.shape[-1]
    S = seq_len
    d_head = E // n_head

    # --- fused QKV projection (bf16 operands, f32 MXU accumulation).
    #     1/sqrt(d_head) is already folded into the q columns of wqkv/bqkv. ---
    qkv = jnp.dot(x.astype(bf16), wqkv_ref[...],
                  preferred_element_type=f32) + bqkv_ref[...]   # (nb*S, 3E) f32
    qkv_bf = qkv.astype(bf16)                                    # matmul operands

    # --- per-sequence, per-head attention; each head's output is written into
    #     a bf16 context scratch at its column offset so the output projection
    #     becomes a single K=E matmul. ---
    for b in range(n_batch):
        r0 = b * S
        bias = jnp.broadcast_to(mask_ref[b], (S, S))     # hoisted out of head loop
        for h in range(n_head):
            c0 = h * d_head
            qh = qkv_bf[r0:r0 + S, c0:c0 + d_head]
            kh = qkv_bf[r0:r0 + S, E + c0:E + c0 + d_head]
            vh = qkv_bf[r0:r0 + S, 2 * E + c0:2 * E + c0 + d_head]

            s = jax.lax.dot_general(qh, kh, (((1,), (1,)), ((), ())),
                                    preferred_element_type=f32)   # (S, S)
            s = s + bias                                           # key-padding bias
            s = s - jnp.max(s, axis=-1, keepdims=True)
            p = jnp.exp(s)
            p = p * pl.reciprocal(jnp.sum(p, axis=-1, keepdims=True), approx=True)

            oh = jnp.dot(p.astype(bf16), vh,
                         preferred_element_type=f32)               # (S, Dh)
            ctx_ref[r0:r0 + S, c0:c0 + d_head] = oh.astype(bf16)

    # --- single output projection over all rows/heads ---
    attn_out = jnp.dot(ctx_ref[...], wo_ref[...],
                       preferred_element_type=f32) + bo_ref[...]   # (nb*S, E)

    # --- residual + LayerNorm1 ---
    h1 = x + attn_out
    mu1 = jnp.mean(h1, axis=-1, keepdims=True)
    var1 = jnp.mean((h1 - mu1) ** 2, axis=-1, keepdims=True)
    ln1 = (h1 - mu1) * jax.lax.rsqrt(var1 + 1e-5) * g1_ref[...] + be1_ref[...]

    # --- positionwise FFN (bf16 matmuls) + residual + LayerNorm2 ---
    hidden = jnp.maximum(
        jnp.dot(ln1.astype(bf16), w1_ref[...], preferred_element_type=f32)
        + b1_ref[...], 0.0)
    ffn = jnp.dot(hidden.astype(bf16), w2_ref[...],
                  preferred_element_type=f32) + b2_ref[...]

    h2 = ln1 + ffn
    mu2 = jnp.mean(h2, axis=-1, keepdims=True)
    var2 = jnp.mean((h2 - mu2) ** 2, axis=-1, keepdims=True)
    o_ref[...] = ((h2 - mu2) * jax.lax.rsqrt(var2 + 1e-5) * g2_ref[...]
                  + be2_ref[...]).astype(o_ref.dtype)


def _vmem_limit_bytes() -> int:
    """Generation-aware VMEM limit: ~3/4 of physical, capped at 100 MiB."""
    try:
        cap = pltpu.get_tpu_info().vmem_capacity_bytes
    except Exception:
        cap = 128 * 1024 * 1024
    return int(min(cap * 3 // 4, 100 * 1024 * 1024))


def _pick_batch_block(n_batch: int, seq_len: int, max_rows: int) -> int:
    """Largest nb dividing n_batch s.t. the (nb*S, E) block is legal, fits the
    row budget, and (when possible) leaves >=2 grid steps for megacore /
    pipeline overlap."""
    best, best_key = n_batch, None
    for c in range(1, n_batch + 1):
        if n_batch % c:
            continue
        rows = c * seq_len
        if rows % 8 != 0 and c != n_batch:
            continue  # (8,128) sublane constraint on the (rows, E) block
        key = (rows <= max_rows, n_batch // c >= 2, c)
        if best_key is None or key > best_key:
            best, best_key = c, key
    return best


def prepare_encoder_params(params, n_head):
    """One-time weight prep: fuse QKV, cast matmul weights to bf16, fold
    1/sqrt(d_head) into the q columns.  Do this at model init, not per call."""
    E = params["wq"].shape[0]
    d_head = E // n_head
    scale = 1.0 / math.sqrt(d_head)
    bf16 = jnp.bfloat16
    wqkv = jnp.concatenate(
        [params["wq"] * scale, params["wk"], params["wv"]], axis=1).astype(bf16)
    bqkv = jnp.concatenate(
        [params["bq"] * scale, params["bk"], params["bv"]], axis=1).astype(jnp.float32)
    return {
        "wqkv": wqkv, "bqkv": bqkv,
        "wo": params["wo"].astype(bf16), "bo": params["bo"],
        "gamma1": params["gamma1"], "beta1": params["beta1"],
        "w1": params["w1"].astype(bf16), "b1": params["b1"],
        "w2": params["w2"].astype(bf16), "b2": params["b2"],
        "gamma2": params["gamma2"], "beta2": params["beta2"],
    }


def encoder_layer_pallas(src_snE, key_padding_mask, prep, n_head):
    """src_snE: (S, N, E) float32 (PyTorch seq-first); mask: (N, S) bool.
    `prep` is the output of prepare_encoder_params."""
    S, N, E = src_snE.shape
    assert E % n_head == 0, "d_model must be divisible by n_head"
    d_ff = prep["w1"].shape[1]

    vmem_limit = _vmem_limit_bytes()
    max_rows = 256 if vmem_limit <= 48 * 1024 * 1024 else 512
    nb = _pick_batch_block(N, S, max_rows)
    grid = (N // nb,)

    # Batch-first flatten (kept: seq-first puts batch on the sublane axis and
    # breaks (8,128) tiling when nb < N; lane-dense slabs matter more here).
    x2d = jnp.transpose(src_snE, (1, 0, 2)).reshape(N * S, E)
    # Additive key-padding bias: 0.0 keep, -1e9 masked.  Shape (N, 1, S).
    mask_bias = jnp.where(key_padding_mask, -1e9, 0.0).astype(jnp.float32)[:, None, :]

    def run(weight_buffering: bool):
        def const_spec(shape):
            idx = lambda b: (0,) * len(shape)
            if weight_buffering:
                return pl.BlockSpec(shape, idx, pipeline_mode=pl.Buffered(1))
            return pl.BlockSpec(shape, idx)

        in_specs = [
            pl.BlockSpec((nb * S, E), lambda b: (b, 0)),    # x  (nb sequences)
            pl.BlockSpec((nb, 1, S), lambda b: (b, 0, 0)),  # mask bias
            const_spec((E, 3 * E)), const_spec((1, 3 * E)),  # wqkv, bqkv
            const_spec((E, E)), const_spec((1, E)),          # wo, bo
            const_spec((1, E)), const_spec((1, E)),          # gamma1, beta1
            const_spec((E, d_ff)), const_spec((1, d_ff)),    # w1, b1
            const_spec((d_ff, E)), const_spec((1, E)),       # w2, b2
            const_spec((1, E)), const_spec((1, E)),          # gamma2, beta2
        ]

        return pl.pallas_call(
            functools.partial(_encoder_layer_kernel,
                              n_head=n_head, n_batch=nb, seq_len=S),
            out_shape=jax.ShapeDtypeStruct((N * S, E), jnp.float32),
            grid_spec=pltpu.PrefetchScalarGridSpec(
                num_scalar_prefetch=0,
                grid=grid,
                in_specs=in_specs,
                out_specs=pl.BlockSpec((nb * S, E), lambda b: (b, 0)),
                scratch_shapes=[pltpu.VMEM((nb * S, E), jnp.bfloat16)],  # attn ctx
            ),
            compiler_params=pltpu.CompilerParams(
                dimension_semantics=("parallel",),          # batch axis independent
                vmem_limit_bytes=vmem_limit,
            ),
        )(
            x2d, mask_bias,
            prep["wqkv"], prep["bqkv"], prep["wo"], prep["bo"],
            prep["gamma1"], prep["beta1"],
            prep["w1"], prep["b1"], prep["w2"], prep["b2"],
            prep["gamma2"], prep["beta2"],
        )

    try:
        out = run(True)
    except Exception:
        # pipeline_mode=pl.Buffered(1) unsupported on this jax version: retry
        # with the default (double-buffered) weight specs.
        out = run(False)

    return jnp.transpose(out.reshape(N, S, E), (1, 0, 2))        # back to (S, N, E)


def encoder_layer_ref(src_snE, key_padding_mask, params, n_head):
    """Pure-JAX f32 reference mirroring PyTorch EncoderLayer (eval mode)."""
    S, N, E = src_snE.shape
    d_head = E // n_head
    x = jnp.transpose(src_snE, (1, 0, 2))                       # (N, S, E)

    q = x @ params["wq"] + params["bq"]
    k = x @ params["wk"] + params["bk"]
    v = x @ params["wv"] + params["bv"]

    def split_heads(t):  # (N, S, E) -> (N, H, S, Dh)
        return t.reshape(N, S, n_head, d_head).transpose(0, 2, 1, 3)

    qh, kh, vh = split_heads(q), split_heads(k), split_heads(v)
    scores = jnp.einsum("nhqd,nhkd->nhqk", qh, kh) / math.sqrt(d_head)
    mask = key_padding_mask[:, None, None, :]
    scores = jnp.where(mask, -1e30, scores)
    p = jax.nn.softmax(scores, axis=-1)
    attn = jnp.einsum("nhqk,nhkd->nhqd", p, vh).transpose(0, 2, 1, 3).reshape(N, S, E)
    attn_out = attn @ params["wo"] + params["bo"]

    def ln(t, g, b):
        mu = jnp.mean(t, axis=-1, keepdims=True)
        var = jnp.mean((t - mu) ** 2, axis=-1, keepdims=True)
        return (t - mu) * jax.lax.rsqrt(var + 1e-5) * g + b

    h1 = ln(x + attn_out, params["gamma1"], params["beta1"])
    ffn = jnp.maximum(h1 @ params["w1"] + params["b1"], 0.0) @ params["w2"] + params["b2"]
    h2 = ln(h1 + ffn, params["gamma2"], params["beta2"])
    return jnp.transpose(h2, (1, 0, 2))


def make_params(key, d_model, d_ff):
    ks = jax.random.split(key, 12)
    s = 0.1
    return {
        "wq": s * jax.random.normal(ks[0], (d_model, d_model), jnp.float32),
        "wk": s * jax.random.normal(ks[1], (d_model, d_model), jnp.float32),
        "wv": s * jax.random.normal(ks[2], (d_model, d_model), jnp.float32),
        "wo": s * jax.random.normal(ks[3], (d_model, d_model), jnp.float32),
        "bq": s * jax.random.normal(ks[4], (1, d_model), jnp.float32),
        "bk": s * jax.random.normal(ks[5], (1, d_model), jnp.float32),
        "bv": s * jax.random.normal(ks[6], (1, d_model), jnp.float32),
        "bo": s * jax.random.normal(ks[7], (1, d_model), jnp.float32),
        "w1": s * jax.random.normal(ks[8], (d_model, d_ff), jnp.float32),
        "b1": s * jax.random.normal(ks[9], (1, d_ff), jnp.float32),
        "w2": s * jax.random.normal(ks[10], (d_ff, d_model), jnp.float32),
        "b2": s * jax.random.normal(ks[11], (1, d_model), jnp.float32),
        "gamma1": jnp.ones((1, d_model), jnp.float32),
        "beta1": jnp.zeros((1, d_model), jnp.float32),
        "gamma2": jnp.ones((1, d_model), jnp.float32),
        "beta2": jnp.zeros((1, d_model), jnp.float32),
    }


if __name__ == "__main__":
    S, N, E, H, D_FF = 8, 2, 32, 4, 64

    key = jax.random.PRNGKey(0)
    k_src, k_par = jax.random.split(key)
    src = jax.random.normal(k_src, (S, N, E), jnp.float32)      # (seq, batch, d_model)
    # key_padding_mask: True = ignore this key. Mask last 2 keys of batch 1.
    kpm = jnp.zeros((N, S), dtype=bool).at[1, -2:].set(True)

    params = make_params(k_par, E, D_FF)
    prep = prepare_encoder_params(params, H)                    # one-time weight prep

    out = encoder_layer_pallas(src, kpm, prep, H)
    out = jax.block_until_ready(out)

    ref = encoder_layer_ref(src, kpm, params, H)
    assert out.shape == (S, N, E)
    # bf16 matmul operands (f32 accumulation) -> looser tolerance vs f32 reference.
    assert jnp.allclose(out, ref, atol=6e-2, rtol=6e-2), "mismatch vs reference"

    print("KERNEL_OK")
</pallas_src>

<mosaic_0001>
module attributes {stable_mosaic.version = 11 : i64} {
  func.func @_encoder_layer_kernel(%arg0: i32, %arg1: memref<8x32xf32, #tpu.memory_space<vmem>>, %arg2: memref<1x1x8xf32, #tpu.memory_space<vmem>>, %arg3: memref<32x96xbf16, #tpu.memory_space<vmem>>, %arg4: memref<1x96xf32, #tpu.memory_space<vmem>>, %arg5: memref<32x32xbf16, #tpu.memory_space<vmem>>, %arg6: memref<1x32xf32, #tpu.memory_space<vmem>>, %arg7: memref<1x32xf32, #tpu.memory_space<vmem>>, %arg8: memref<1x32xf32, #tpu.memory_space<vmem>>, %arg9: memref<32x64xbf16, #tpu.memory_space<vmem>>, %arg10: memref<1x64xf32, #tpu.memory_space<vmem>>, %arg11: memref<64x32xbf16, #tpu.memory_space<vmem>>, %arg12: memref<1x32xf32, #tpu.memory_space<vmem>>, %arg13: memref<1x32xf32, #tpu.memory_space<vmem>>, %arg14: memref<1x32xf32, #tpu.memory_space<vmem>>, %arg15: memref<8x32xf32, #tpu.memory_space<vmem>>, %arg16: memref<8x32xbf16, #tpu.memory_space<vmem>>) attributes {dimension_semantics = [#tpu.dimension_semantics<parallel>], iteration_bounds = array<i64: 2>, scalar_prefetch = 0 : i64, scratch_operands = 1 : i64, tpu.core_type = #tpu.core_type<tc>, window_params = [{transform_indices = @transform_0, window_bounds = array<i64: 8, 32>}, {transform_indices = @transform_1, window_bounds = array<i64: 1, 1, 8>}, {pipeline_mode = #tpu.pipeline_mode<synchronous>, transform_indices = @transform_2, window_bounds = array<i64: 32, 96>}, {pipeline_mode = #tpu.pipeline_mode<synchronous>, transform_indices = @transform_3, window_bounds = array<i64: 1, 96>}, {pipeline_mode = #tpu.pipeline_mode<synchronous>, transform_indices = @transform_4, window_bounds = array<i64: 32, 32>}, {pipeline_mode = #tpu.pipeline_mode<synchronous>, transform_indices = @transform_5, window_bounds = array<i64: 1, 32>}, {pipeline_mode = #tpu.pipeline_mode<synchronous>, transform_indices = @transform_6, window_bounds = array<i64: 1, 32>}, {pipeline_mode = #tpu.pipeline_mode<synchronous>, transform_indices = @transform_7, window_bounds = array<i64: 1, 32>}, {pipeline_mode = #tpu.pipeline_mode<synchronous>, transform_indices = @transform_8, window_bounds = array<i64: 32, 64>}, {pipeline_mode = #tpu.pipeline_mode<synchronous>, transform_indices = @transform_9, window_bounds = array<i64: 1, 64>}, {pipeline_mode = #tpu.pipeline_mode<synchronous>, transform_indices = @transform_10, window_bounds = array<i64: 64, 32>}, {pipeline_mode = #tpu.pipeline_mode<synchronous>, transform_indices = @transform_11, window_bounds = array<i64: 1, 32>}, {pipeline_mode = #tpu.pipeline_mode<synchronous>, transform_indices = @transform_12, window_bounds = array<i64: 1, 32>}, {pipeline_mode = #tpu.pipeline_mode<synchronous>, transform_indices = @transform_13, window_bounds = array<i64: 1, 32>}, {transform_indices = @transform_14, window_bounds = array<i64: 8, 32>}]} {
    %c0 = arith.constant 0 : index
    %c0_0 = arith.constant 0 : index
    %0 = vector.load %arg1[%c0, %c0_0] : memref<8x32xf32, #tpu.memory_space<vmem>>, vector<8x32xf32>
    %1 = arith.truncf %0 : vector<8x32xf32> to vector<8x32xbf16>
    %c0_1 = arith.constant 0 : index
    %c0_2 = arith.constant 0 : index
    %2 = vector.load %arg3[%c0_1, %c0_2] : memref<32x96xbf16, #tpu.memory_space<vmem>>, vector<32x96xbf16>
    %cst = arith.constant dense<0.000000e+00> : vector<8x96xf32>
    %3 = tpu.matmul %1, %2, %cst {dimension_numbers = #tpu.dot_dimension_numbers<[1], [0], [0], [1], [0, 0, 1, 1], [], []>} : vector<8x32xbf16>, vector<32x96xbf16>, vector<8x96xf32> -> vector<8x96xf32>
    %c0_3 = arith.constant 0 : index
    %c0_4 = arith.constant 0 : index
    %4 = vector.load %arg4[%c0_3, %c0_4] : memref<1x96xf32, #tpu.memory_space<vmem>>, vector<1x96xf32>
    %5 = vector.broadcast %4 : vector<1x96xf32> to vector<8x96xf32>
    %6 = arith.addf %3, %5 : vector<8x96xf32>
    %7 = arith.truncf %6 : vector<8x96xf32> to vector<8x96xbf16>
    %c0_5 = arith.constant 0 : index
    %c0_6 = arith.constant 0 : index
    %c0_7 = arith.constant 0 : index
    %8 = vector.load %arg2[%c0_5, %c0_6, %c0_7] : memref<1x1x8xf32, #tpu.memory_space<vmem>>, vector<1x1x8xf32>
    %9 = vector.shape_cast %8 : vector<1x1x8xf32> to vector<1x8xf32>
    %10 = vector.shape_cast %9 : vector<1x8xf32> to vector<1x8xf32>
    %11 = vector.broadcast %10 : vector<1x8xf32> to vector<8x8xf32>
    %12 = vector.extract_strided_slice %7 {offsets = [0, 0], sizes = [8, 8], strides = [1, 1]} : vector<8x96xbf16> to vector<8x8xbf16>
    %13 = vector.extract_strided_slice %7 {offsets = [0, 32], sizes = [8, 8], strides = [1, 1]} : vector<8x96xbf16> to vector<8x8xbf16>
    %14 = vector.extract_strided_slice %7 {offsets = [0, 64], sizes = [8, 8], strides = [1, 1]} : vector<8x96xbf16> to vector<8x8xbf16>
    %cst_8 = arith.constant dense<0.000000e+00> : vector<8x8xf32>
    %15 = tpu.matmul %12, %13, %cst_8 {dimension_numbers = #tpu.dot_dimension_numbers<[1], [1], [0], [0], [0, 0, 1, 0], [], []>} : vector<8x8xbf16>, vector<8x8xbf16>, vector<8x8xf32> -> vector<8x8xf32>
    %16 = arith.addf %15, %11 : vector<8x8xf32>
    %cst_9 = arith.constant dense<0xFF800000> : vector<8xf32>
    %17 = vector.multi_reduction <maximumf>, %16, %cst_9 [1] : vector<8x8xf32> to vector<8xf32>
    %18 = vector.shape_cast %17 : vector<8xf32> to vector<8x1xf32>
    %19 = vector.broadcast %18 : vector<8x1xf32> to vector<8x8xf32>
    %20 = arith.subf %16, %19 : vector<8x8xf32>
    %21 = math.exp %20 : vector<8x8xf32>
    %cst_10 = arith.constant dense<0.000000e+00> : vector<8xf32>
    %22 = vector.multi_reduction <add>, %21, %cst_10 [1] : vector<8x8xf32> to vector<8xf32>
    %23 = vector.shape_cast %22 : vector<8xf32> to vector<8x1xf32>
    %24 = tpu.reciprocal %23 {approx = true} : vector<8x1xf32> -> vector<8x1xf32>
    %25 = vector.broadcast %24 : vector<8x1xf32> to vector<8x8xf32>
    %26 = arith.mulf %21, %25 : vector<8x8xf32>
    %27 = arith.truncf %26 : vector<8x8xf32> to vector<8x8xbf16>
    %cst_11 = arith.constant dense<0.000000e+00> : vector<8x8xf32>
    %28 = tpu.matmul %27, %14, %cst_11 {dimension_numbers = #tpu.dot_dimension_numbers<[1], [0], [0], [1], [0, 0, 1, 1], [], []>} : vector<8x8xbf16>, vector<8x8xbf16>, vector<8x8xf32> -> vector<8x8xf32>
    %29 = arith.truncf %28 : vector<8x8xf32> to vector<8x8xbf16>
    %c0_12 = arith.constant 0 : index
    %c0_13 = arith.constant 0 : index
    %30 = vector.load %arg16[%c0_12, %c0_13] : memref<8x32xbf16, #tpu.memory_space<vmem>>, vector<8x8xbf16>
    tpu.vector_store %arg16[%c0_12, %c0_13], %29 {strides = array<i32>} : memref<8x32xbf16, #tpu.memory_space<vmem>>, vector<8x8xbf16>,
    %31 = vector.extract_strided_slice %7 {offsets = [0, 8], sizes = [8, 8], strides = [1, 1]} : vector<8x96xbf16> to vector<8x8xbf16>
    %32 = vector.extract_strided_slice %7 {offsets = [0, 40], sizes = [8, 8], strides = [1, 1]} : vector<8x96xbf16> to vector<8x8xbf16>
    %33 = vector.extract_strided_slice %7 {offsets = [0, 72], sizes = [8, 8], strides = [1, 1]} : vector<8x96xbf16> to vector<8x8xbf16>
    %cst_14 = arith.constant dense<0.000000e+00> : vector<8x8xf32>
    %34 = tpu.matmul %31, %32, %cst_14 {dimension_numbers = #tpu.dot_dimension_numbers<[1], [1], [0], [0], [0, 0, 1, 0], [], []>} : vector<8x8xbf16>, vector<8x8xbf16>, vector<8x8xf32> -> vector<8x8xf32>
    %35 = arith.addf %34, %11 : vector<8x8xf32>
    %cst_15 = arith.constant dense<0xFF800000> : vector<8xf32>
    %36 = vector.multi_reduction <maximumf>, %35, %cst_15 [1] : vector<8x8xf32> to vector<8xf32>
    %37 = vector.shape_cast %36 : vector<8xf32> to vector<8x1xf32>
    %38 = vector.broadcast %37 : vector<8x1xf32> to vector<8x8xf32>
    %39 = arith.subf %35, %38 : vector<8x8xf32>
    %40 = math.exp %39 : vector<8x8xf32>
    %cst_16 = arith.constant dense<0.000000e+00> : vector<8xf32>
    %41 = vector.multi_reduction <add>, %40, %cst_16 [1] : vector<8x8xf32> to vector<8xf32>
    %42 = vector.shape_cast %41 : vector<8xf32> to vector<8x1xf32>
    %43 = tpu.reciprocal %42 {approx = true} : vector<8x1xf32> -> vector<8x1xf32>
    %44 = vector.broadcast %43 : vector<8x1xf32> to vector<8x8xf32>
    %45 = arith.mulf %40, %44 : vector<8x8xf32>
    %46 = arith.truncf %45 : vector<8x8xf32> to vector<8x8xbf16>
    %cst_17 = arith.constant dense<0.000000e+00> : vector<8x8xf32>
    %47 = tpu.matmul %46, %33, %cst_17 {dimension_numbers = #tpu.dot_dimension_numbers<[1], [0], [0], [1], [0, 0, 1, 1], [], []>} : vector<8x8xbf16>, vector<8x8xbf16>, vector<8x8xf32> -> vector<8x8xf32>
    %48 = arith.truncf %47 : vector<8x8xf32> to vector<8x8xbf16>
    %c0_18 = arith.constant 0 : index
    %c8 = arith.constant 8 : index
    %49 = vector.load %arg16[%c0_18, %c8] : memref<8x32xbf16, #tpu.memory_space<vmem>>, vector<8x8xbf16>
    tpu.vector_store %arg16[%c0_18, %c8], %48 {strides = array<i32>} : memref<8x32xbf16, #tpu.memory_space<vmem>>, vector<8x8xbf16>,
    %50 = vector.extract_strided_slice %7 {offsets = [0, 16], sizes = [8, 8], strides = [1, 1]} : vector<8x96xbf16> to vector<8x8xbf16>
    %51 = vector.extract_strided_slice %7 {offsets = [0, 48], sizes = [8, 8], strides = [1, 1]} : vector<8x96xbf16> to vector<8x8xbf16>
    %52 = vector.extract_strided_slice %7 {offsets = [0, 80], sizes = [8, 8], strides = [1, 1]} : vector<8x96xbf16> to vector<8x8xbf16>
    %cst_19 = arith.constant dense<0.000000e+00> : vector<8x8xf32>
    %53 = tpu.matmul %50, %51, %cst_19 {dimension_numbers = #tpu.dot_dimension_numbers<[1], [1], [0], [0], [0, 0, 1, 0], [], []>} : vector<8x8xbf16>, vector<8x8xbf16>, vector<8x8xf32> -> vector<8x8xf32>
    %54 = arith.addf %53, %11 : vector<8x8xf32>
    %cst_20 = arith.constant dense<0xFF800000> : vector<8xf32>
    %55 = vector.multi_reduction <maximumf>, %54, %cst_20 [1] : vector<8x8xf32> to vector<8xf32>
    %56 = vector.shape_cast %55 : vector<8xf32> to vector<8x1xf32>
    %57 = vector.broadcast %56 : vector<8x1xf32> to vector<8x8xf32>
    %58 = arith.subf %54, %57 : vector<8x8xf32>
    %59 = math.exp %58 : vector<8x8xf32>
    %cst_21 = arith.constant dense<0.000000e+00> : vector<8xf32>
    %60 = vector.multi_reduction <add>, %59, %cst_21 [1] : vector<8x8xf32> to vector<8xf32>
    %61 = vector.shape_cast %60 : vector<8xf32> to vector<8x1xf32>
    %62 = tpu.reciprocal %61 {approx = true} : vector<8x1xf32> -> vector<8x1xf32>
    %63 = vector.broadcast %62 : vector<8x1xf32> to vector<8x8xf32>
    %64 = arith.mulf %59, %63 : vector<8x8xf32>
    %65 = arith.truncf %64 : vector<8x8xf32> to vector<8x8xbf16>
    %cst_22 = arith.constant dense<0.000000e+00> : vector<8x8xf32>
    %66 = tpu.matmul %65, %52, %cst_22 {dimension_numbers = #tpu.dot_dimension_numbers<[1], [0], [0], [1], [0, 0, 1, 1], [], []>} : vector<8x8xbf16>, vector<8x8xbf16>, vector<8x8xf32> -> vector<8x8xf32>
    %67 = arith.truncf %66 : vector<8x8xf32> to vector<8x8xbf16>
    %c0_23 = arith.constant 0 : index
    %c16 = arith.constant 16 : index
    %68 = vector.load %arg16[%c0_23, %c16] : memref<8x32xbf16, #tpu.memory_space<vmem>>, vector<8x8xbf16>
    tpu.vector_store %arg16[%c0_23, %c16], %67 {strides = array<i32>} : memref<8x32xbf16, #tpu.memory_space<vmem>>, vector<8x8xbf16>,
    %69 = vector.extract_strided_slice %7 {offsets = [0, 24], sizes = [8, 8], strides = [1, 1]} : vector<8x96xbf16> to vector<8x8xbf16>
    %70 = vector.extract_strided_slice %7 {offsets = [0, 56], sizes = [8, 8], strides = [1, 1]} : vector<8x96xbf16> to vector<8x8xbf16>
    %71 = vector.extract_strided_slice %7 {offsets = [0, 88], sizes = [8, 8], strides = [1, 1]} : vector<8x96xbf16> to vector<8x8xbf16>
    %cst_24 = arith.constant dense<0.000000e+00> : vector<8x8xf32>
    %72 = tpu.matmul %69, %70, %cst_24 {dimension_numbers = #tpu.dot_dimension_numbers<[1], [1], [0], [0], [0, 0, 1, 0], [], []>} : vector<8x8xbf16>, vector<8x8xbf16>, vector<8x8xf32> -> vector<8x8xf32>
    %73 = arith.addf %72, %11 : vector<8x8xf32>
    %cst_25 = arith.constant dense<0xFF800000> : vector<8xf32>
    %74 = vector.multi_reduction <maximumf>, %73, %cst_25 [1] : vector<8x8xf32> to vector<8xf32>
    %75 = vector.shape_cast %74 : vector<8xf32> to vector<8x1xf32>
    %76 = vector.broadcast %75 : vector<8x1xf32> to vector<8x8xf32>
    %77 = arith.subf %73, %76 : vector<8x8xf32>
    %78 = math.exp %77 : vector<8x8xf32>
    %cst_26 = arith.constant dense<0.000000e+00> : vector<8xf32>
    %79 = vector.multi_reduction <add>, %78, %cst_26 [1] : vector<8x8xf32> to vector<8xf32>
    %80 = vector.shape_cast %79 : vector<8xf32> to vector<8x1xf32>
    %81 = tpu.reciprocal %80 {approx = true} : vector<8x1xf32> -> vector<8x1xf32>
    %82 = vector.broadcast %81 : vector<8x1xf32> to vector<8x8xf32>
    %83 = arith.mulf %78, %82 : vector<8x8xf32>
    %84 = arith.truncf %83 : vector<8x8xf32> to vector<8x8xbf16>
    %cst_27 = arith.constant dense<0.000000e+00> : vector<8x8xf32>
    %85 = tpu.matmul %84, %71, %cst_27 {dimension_numbers = #tpu.dot_dimension_numbers<[1], [0], [0], [1], [0, 0, 1, 1], [], []>} : vector<8x8xbf16>, vector<8x8xbf16>, vector<8x8xf32> -> vector<8x8xf32>
    %86 = arith.truncf %85 : vector<8x8xf32> to vector<8x8xbf16>
    %c0_28 = arith.constant 0 : index
    %c24 = arith.constant 24 : index
    %87 = vector.load %arg16[%c0_28, %c24] : memref<8x32xbf16, #tpu.memory_space<vmem>>, vector<8x8xbf16>
    tpu.vector_store %arg16[%c0_28, %c24], %86 {strides = array<i32>} : memref<8x32xbf16, #tpu.memory_space<vmem>>, vector<8x8xbf16>,
    %c0_29 = arith.constant 0 : index
    %c0_30 = arith.constant 0 : index
    %88 = vector.load %arg16[%c0_29, %c0_30] : memref<8x32xbf16, #tpu.memory_space<vmem>>, vector<8x32xbf16>
    %c0_31 = arith.constant 0 : index
    %c0_32 = arith.constant 0 : index
    %89 = vector.load %arg5[%c0_31, %c0_32] : memref<32x32xbf16, #tpu.memory_space<vmem>>, vector<32x32xbf16>
    %cst_33 = arith.constant dense<0.000000e+00> : vector<8x32xf32>
    %90 = tpu.matmul %88, %89, %cst_33 {dimension_numbers = #tpu.dot_dimension_numbers<[1], [0], [0], [1], [0, 0, 1, 1], [], []>} : vector<8x32xbf16>, vector<32x32xbf16>, vector<8x32xf32> -> vector<8x32xf32>
    %c0_34 = arith.constant 0 : index
    %c0_35 = arith.constant 0 : index
    %91 = vector.load %arg6[%c0_34, %c0_35] : memref<1x32xf32, #tpu.memory_space<vmem>>, vector<1x32xf32>
    %92 = vector.broadcast %91 : vector<1x32xf32> to vector<8x32xf32>
    %93 = arith.addf %90, %92 : vector<8x32xf32>
    %94 = arith.addf %0, %93 : vector<8x32xf32>
    %cst_36 = arith.constant dense<0.000000e+00> : vector<8xf32>
    %95 = vector.multi_reduction <add>, %94, %cst_36 [1] : vector<8x32xf32> to vector<8xf32>
    %96 = vector.shape_cast %95 : vector<8xf32> to vector<8x1xf32>
    %cst_37 = arith.constant 3.200000e+01 : f32
    %97 = vector.broadcast %cst_37 : f32 to vector<8x1xf32>
    %98 = arith.divf %96, %97 : vector<8x1xf32>
    %99 = vector.broadcast %98 : vector<8x1xf32> to vector<8x32xf32>
    %100 = arith.subf %94, %99 : vector<8x32xf32>
    %101 = arith.mulf %100, %100 : vector<8x32xf32>
    %cst_38 = arith.constant dense<0.000000e+00> : vector<8xf32>
    %102 = vector.multi_reduction <add>, %101, %cst_38 [1] : vector<8x32xf32> to vector<8xf32>
    %103 = vector.shape_cast %102 : vector<8xf32> to vector<8x1xf32>
    %cst_39 = arith.constant 3.200000e+01 : f32
    %104 = vector.broadcast %cst_39 : f32 to vector<8x1xf32>
    %105 = arith.divf %103, %104 : vector<8x1xf32>
    %106 = vector.broadcast %98 : vector<8x1xf32> to vector<8x32xf32>
    %107 = arith.subf %94, %106 : vector<8x32xf32>
    %cst_40 = arith.constant 9.99999974E-6 : f32
    %108 = vector.broadcast %cst_40 : f32 to vector<8x1xf32>
    %109 = arith.addf %105, %108 : vector<8x1xf32>
    %110 = math.rsqrt %109 : vector<8x1xf32>
    %111 = vector.broadcast %110 : vector<8x1xf32> to vector<8x32xf32>
    %112 = arith.mulf %107, %111 : vector<8x32xf32>
    %c0_41 = arith.constant 0 : index
    %c0_42 = arith.constant 0 : index
    %113 = vector.load %arg7[%c0_41, %c0_42] : memref<1x32xf32, #tpu.memory_space<vmem>>, vector<1x32xf32>
    %114 = vector.broadcast %113 : vector<1x32xf32> to vector<8x32xf32>
    %115 = arith.mulf %112, %114 : vector<8x32xf32>
    %c0_43 = arith.constant 0 : index
    %c0_44 = arith.constant 0 : index
    %116 = vector.load %arg8[%c0_43, %c0_44] : memref<1x32xf32, #tpu.memory_space<vmem>>, vector<1x32xf32>
    %117 = vector.broadcast %116 : vector<1x32xf32> to vector<8x32xf32>
    %118 = arith.addf %115, %117 : vector<8x32xf32>
    %119 = arith.truncf %118 : vector<8x32xf32> to vector<8x32xbf16>
    %c0_45 = arith.constant 0 : index
    %c0_46 = arith.constant 0 : index
    %120 = vector.load %arg9[%c0_45, %c0_46] : memref<32x64xbf16, #tpu.memory_space<vmem>>, vector<32x64xbf16>
    %cst_47 = arith.constant dense<0.000000e+00> : vector<8x64xf32>
    %121 = tpu.matmul %119, %120, %cst_47 {dimension_numbers = #tpu.dot_dimension_numbers<[1], [0], [0], [1], [0, 0, 1, 1], [], []>} : vector<8x32xbf16>, vector<32x64xbf16>, vector<8x64xf32> -> vector<8x64xf32>
    %c0_48 = arith.constant 0 : index
    %c0_49 = arith.constant 0 : index
    %122 = vector.load %arg10[%c0_48, %c0_49] : memref<1x64xf32, #tpu.memory_space<vmem>>, vector<1x64xf32>
    %123 = vector.broadcast %122 : vector<1x64xf32> to vector<8x64xf32>
    %124 = arith.addf %121, %123 : vector<8x64xf32>
    %cst_50 = arith.constant 0.000000e+00 : f32
    %125 = vector.broadcast %cst_50 : f32 to vector<8x64xf32>
    %126 = arith.maximumf %124, %125 : vector<8x64xf32>
    %127 = arith.truncf %126 : vector<8x64xf32> to vector<8x64xbf16>
    %c0_51 = arith.constant 0 : index
    %c0_52 = arith.constant 0 : index
    %128 = vector.load %arg11[%c0_51, %c0_52] : memref<64x32xbf16, #tpu.memory_space<vmem>>, vector<64x32xbf16>
    %cst_53 = arith.constant dense<0.000000e+00> : vector<8x32xf32>
    %129 = tpu.matmul %127, %128, %cst_53 {dimension_numbers = #tpu.dot_dimension_numbers<[1], [0], [0], [1], [0, 0, 1, 1], [], []>} : vector<8x64xbf16>, vector<64x32xbf16>, vector<8x32xf32> -> vector<8x32xf32>
    %c0_54 = arith.constant 0 : index
    %c0_55 = arith.constant 0 : index
    %130 = vector.load %arg12[%c0_54, %c0_55] : memref<1x32xf32, #tpu.memory_space<vmem>>, vector<1x32xf32>
    %131 = vector.broadcast %130 : vector<1x32xf32> to vector<8x32xf32>
    %132 = arith.addf %129, %131 : vector<8x32xf32>
    %133 = arith.addf %118, %132 : vector<8x32xf32>
    %cst_56 = arith.constant dense<0.000000e+00> : vector<8xf32>
    %134 = vector.multi_reduction <add>, %133, %cst_56 [1] : vector<8x32xf32> to vector<8xf32>
    %135 = vector.shape_cast %134 : vector<8xf32> to vector<8x1xf32>
    %cst_57 = arith.constant 3.200000e+01 : f32
    %136 = vector.broadcast %cst_57 : f32 to vector<8x1xf32>
    %137 = arith.divf %135, %136 : vector<8x1xf32>
    %138 = vector.broadcast %137 : vector<8x1xf32> to vector<8x32xf32>
    %139 = arith.subf %133, %138 : vector<8x32xf32>
    %140 = arith.mulf %139, %139 : vector<8x32xf32>
    %cst_58 = arith.constant dense<0.000000e+00> : vector<8xf32>
    %141 = vector.multi_reduction <add>, %140, %cst_58 [1] : vector<8x32xf32> to vector<8xf32>
    %142 = vector.shape_cast %141 : vector<8xf32> to vector<8x1xf32>
    %cst_59 = arith.constant 3.200000e+01 : f32
    %143 = vector.broadcast %cst_59 : f32 to vector<8x1xf32>
    %144 = arith.divf %142, %143 : vector<8x1xf32>
    %145 = vector.broadcast %137 : vector<8x1xf32> to vector<8x32xf32>
    %146 = arith.subf %133, %145 : vector<8x32xf32>
    %cst_60 = arith.constant 9.99999974E-6 : f32
    %147 = vector.broadcast %cst_60 : f32 to vector<8x1xf32>
    %148 = arith.addf %144, %147 : vector<8x1xf32>
    %149 = math.rsqrt %148 : vector<8x1xf32>
    %150 = vector.broadcast %149 : vector<8x1xf32> to vector<8x32xf32>
    %151 = arith.mulf %146, %150 : vector<8x32xf32>
    %c0_61 = arith.constant 0 : index
    %c0_62 = arith.constant 0 : index
    %152 = vector.load %arg13[%c0_61, %c0_62] : memref<1x32xf32, #tpu.memory_space<vmem>>, vector<1x32xf32>
    %153 = vector.broadcast %152 : vector<1x32xf32> to vector<8x32xf32>
    %154 = arith.mulf %151, %153 : vector<8x32xf32>
    %c0_63 = arith.constant 0 : index
    %c0_64 = arith.constant 0 : index
    %155 = vector.load %arg14[%c0_63, %c0_64] : memref<1x32xf32, #tpu.memory_space<vmem>>, vector<1x32xf32>
    %156 = vector.broadcast %155 : vector<1x32xf32> to vector<8x32xf32>
    %157 = arith.addf %154, %156 : vector<8x32xf32>
    %c0_65 = arith.constant 0 : index
    %c0_66 = arith.constant 0 : index
    %158 = vector.load %arg15[%c0_65, %c0_66] : memref<8x32xf32, #tpu.memory_space<vmem>>, vector<8x32xf32>
    tpu.vector_store %arg15[%c0_65, %c0_66], %157 {strides = array<i32>} : memref<8x32xf32, #tpu.memory_space<vmem>>, vector<8x32xf32>,
    return
  }
  func.func @transform_0(%arg0: i32) -> (i32, i32) {
    %c0_i32 = arith.constant 0 : i32
    %c0_i32_0 = arith.constant 0 : i32
    return %arg0, %c0_i32 : i32, i32
  }
  func.func @transform_1(%arg0: i32) -> (i32, i32, i32) {
    %c0_i32 = arith.constant 0 : i32
    %c0_i32_0 = arith.constant 0 : i32
    %c0_i32_1 = arith.constant 0 : i32
    return %arg0, %c0_i32, %c0_i32_0 : i32, i32, i32
  }
  func.func @transform_2(%arg0: i32) -> (i32, i32) {
    %c0_i32 = arith.constant 0 : i32
    %c0_i32_0 = arith.constant 0 : i32
    %c0_i32_1 = arith.constant 0 : i32
    return %c0_i32, %c0_i32_0 : i32, i32
  }
  func.func @transform_3(%arg0: i32) -> (i32, i32) {
    %c0_i32 = arith.constant 0 : i32
    %c0_i32_0 = arith.constant 0 : i32
    %c0_i32_1 = arith.constant 0 : i32
    return %c0_i32, %c0_i32_0 : i32, i32
  }
  func.func @transform_4(%arg0: i32) -> (i32, i32) {
    %c0_i32 = arith.constant 0 : i32
    %c0_i32_0 = arith.constant 0 : i32
    %c0_i32_1 = arith.constant 0 : i32
    return %c0_i32, %c0_i32_0 : i32, i32
  }
  func.func @transform_5(%arg0: i32) -> (i32, i32) {
    %c0_i32 = arith.constant 0 : i32
    %c0_i32_0 = arith.constant 0 : i32
    %c0_i32_1 = arith.constant 0 : i32
    return %c0_i32, %c0_i32_0 : i32, i32
  }
  func.func @transform_6(%arg0: i32) -> (i32, i32) {
    %c0_i32 = arith.constant 0 : i32
    %c0_i32_0 = arith.constant 0 : i32
    %c0_i32_1 = arith.constant 0 : i32
    return %c0_i32, %c0_i32_0 : i32, i32
  }
  func.func @transform_7(%arg0: i32) -> (i32, i32) {
    %c0_i32 = arith.constant 0 : i32
    %c0_i32_0 = arith.constant 0 : i32
    %c0_i32_1 = arith.constant 0 : i32
    return %c0_i32, %c0_i32_0 : i32, i32
  }
  func.func @transform_8(%arg0: i32) -> (i32, i32) {
    %c0_i32 = arith.constant 0 : i32
    %c0_i32_0 = arith.constant 0 : i32
    %c0_i32_1 = arith.constant 0 : i32
    return %c0_i32, %c0_i32_0 : i32, i32
  }
  func.func @transform_9(%arg0: i32) -> (i32, i32) {
    %c0_i32 = arith.constant 0 : i32
    %c0_i32_0 = arith.constant 0 : i32
    %c0_i32_1 = arith.constant 0 : i32
    return %c0_i32, %c0_i32_0 : i32, i32
  }
  func.func @transform_10(%arg0: i32) -> (i32, i32) {
    %c0_i32 = arith.constant 0 : i32
    %c0_i32_0 = arith.constant 0 : i32
    %c0_i32_1 = arith.constant 0 : i32
    return %c0_i32, %c0_i32_0 : i32, i32
  }
  func.func @transform_11(%arg0: i32) -> (i32, i32) {
    %c0_i32 = arith.constant 0 : i32
    %c0_i32_0 = arith.constant 0 : i32
    %c0_i32_1 = arith.constant 0 : i32
    return %c0_i32, %c0_i32_0 : i32, i32
  }
  func.func @transform_12(%arg0: i32) -> (i32, i32) {
    %c0_i32 = arith.constant 0 : i32
    %c0_i32_0 = arith.constant 0 : i32
    %c0_i32_1 = arith.constant 0 : i32
    return %c0_i32, %c0_i32_0 : i32, i32
  }
  func.func @transform_13(%arg0: i32) -> (i32, i32) {
    %c0_i32 = arith.constant 0 : i32
    %c0_i32_0 = arith.constant 0 : i32
    %c0_i32_1 = arith.constant 0 : i32
    return %c0_i32, %c0_i32_0 : i32, i32
  }
  func.func @transform_14(%arg0: i32) -> (i32, i32) {
    %c0_i32 = arith.constant 0 : i32
    %c0_i32_0 = arith.constant 0 : i32
    return %arg0, %c0_i32 : i32, i32
  }
}

module attributes {stable_mosaic.version = 11 : i64} {
  func.func @_encoder_layer_kernel(%arg0: i32, %arg1: memref<8x32xf32, #tpu.memory_space<vmem>>, %arg2: memref<1x1x8xf32, #tpu.memory_space<vmem>>, %arg3: memref<32x96xbf16, #tpu.memory_space<vmem>>, %arg4: memref<1x96xf32, #tpu.memory_space<vmem>>, %arg5: memref<32x32xbf16, #tpu.memory_space<vmem>>, %arg6: memref<1x32xf32, #tpu.memory_space<vmem>>, %arg7: memref<1x32xf32, #tpu.memory_space<vmem>>, %arg8: memref<1x32xf32, #tpu.memory_space<vmem>>, %arg9: memref<32x64xbf16, #tpu.memory_space<vmem>>, %arg10: memref<1x64xf32, #tpu.memory_space<vmem>>, %arg11: memref<64x32xbf16, #tpu.memory_space<vmem>>, %arg12: memref<1x32xf32, #tpu.memory_space<vmem>>, %arg13: memref<1x32xf32, #tpu.memory_space<vmem>>, %arg14: memref<1x32xf32, #tpu.memory_space<vmem>>, %arg15: memref<8x32xf32, #tpu.memory_space<vmem>>, %arg16: memref<8x32xbf16, #tpu.memory_space<vmem>>) attributes {dimension_semantics = [#tpu.dimension_semantics<parallel>], iteration_bounds = array<i64: 2>, scalar_prefetch = 0 : i64, scratch_operands = 1 : i64, tpu.core_type = #tpu.core_type<tc>, window_params = [{transform_indices = @transform_0, window_bounds = array<i64: 8, 32>}, {transform_indices = @transform_1, window_bounds = array<i64: 1, 1, 8>}, {pipeline_mode = #tpu.pipeline_mode<synchronous>, transform_indices = @transform_2, window_bounds = array<i64: 32, 96>}, {pipeline_mode = #tpu.pipeline_mode<synchronous>, transform_indices = @transform_3, window_bounds = array<i64: 1, 96>}, {pipeline_mode = #tpu.pipeline_mode<synchronous>, transform_indices = @transform_4, window_bounds = array<i64: 32, 32>}, {pipeline_mode = #tpu.pipeline_mode<synchronous>, transform_indices = @transform_5, window_bounds = array<i64: 1, 32>}, {pipeline_mode = #tpu.pipeline_mode<synchronous>, transform_indices = @transform_6, window_bounds = array<i64: 1, 32>}, {pipeline_mode = #tpu.pipeline_mode<synchronous>, transform_indices = @transform_7, window_bounds = array<i64: 1, 32>}, {pipeline_mode = #tpu.pipeline_mode<synchronous>, transform_indices = @transform_8, window_bounds = array<i64: 32, 64>}, {pipeline_mode = #tpu.pipeline_mode<synchronous>, transform_indices = @transform_9, window_bounds = array<i64: 1, 64>}, {pipeline_mode = #tpu.pipeline_mode<synchronous>, transform_indices = @transform_10, window_bounds = array<i64: 64, 32>}, {pipeline_mode = #tpu.pipeline_mode<synchronous>, transform_indices = @transform_11, window_bounds = array<i64: 1, 32>}, {pipeline_mode = #tpu.pipeline_mode<synchronous>, transform_indices = @transform_12, window_bounds = array<i64: 1, 32>}, {pipeline_mode = #tpu.pipeline_mode<synchronous>, transform_indices = @transform_13, window_bounds = array<i64: 1, 32>}, {transform_indices = @transform_14, window_bounds = array<i64: 8, 32>}]} {
    %c0 = arith.constant 0 : index
    %c0_0 = arith.constant 0 : index
    %0 = vector.load %arg1[%c0, %c0_0] : memref<8x32xf32, #tpu.memory_space<vmem>>, vector<8x32xf32>
    %1 = arith.truncf %0 : vector<8x32xf32> to vector<8x32xbf16>
    %c0_1 = arith.constant 0 : index
    %c0_2 = arith.constant 0 : index
    %2 = vector.load %arg3[%c0_1, %c0_2] : memref<32x96xbf16, #tpu.memory_space<vmem>>, vector<32x96xbf16>
    %cst = arith.constant dense<0.000000e+00> : vector<8x96xf32>
    %3 = tpu.matmul %1, %2, %cst {dimension_numbers = #tpu.dot_dimension_numbers<[1], [0], [0], [1], [0, 0, 1, 1], [], []>} : vector<8x32xbf16>, vector<32x96xbf16>, vector<8x96xf32> -> vector<8x96xf32>
    %c0_3 = arith.constant 0 : index
    %c0_4 = arith.constant 0 : index
    %4 = vector.load %arg4[%c0_3, %c0_4] : memref<1x96xf32, #tpu.memory_space<vmem>>, vector<1x96xf32>
    %5 = vector.broadcast %4 : vector<1x96xf32> to vector<8x96xf32>
    %6 = arith.addf %3, %5 : vector<8x96xf32>
    %7 = arith.truncf %6 : vector<8x96xf32> to vector<8x96xbf16>
    %c0_5 = arith.constant 0 : index
    %c0_6 = arith.constant 0 : index
    %c0_7 = arith.constant 0 : index
    %8 = vector.load %arg2[%c0_5, %c0_6, %c0_7] : memref<1x1x8xf32, #tpu.memory_space<vmem>>, vector<1x1x8xf32>
    %9 = vector.shape_cast %8 : vector<1x1x8xf32> to vector<1x8xf32>
    %10 = vector.shape_cast %9 : vector<1x8xf32> to vector<1x8xf32>
    %11 = vector.broadcast %10 : vector<1x8xf32> to vector<8x8xf32>
    %12 = vector.extract_strided_slice %7 {offsets = [0, 0], sizes = [8, 8], strides = [1, 1]} : vector<8x96xbf16> to vector<8x8xbf16>
    %13 = vector.extract_strided_slice %7 {offsets = [0, 32], sizes = [8, 8], strides = [1, 1]} : vector<8x96xbf16> to vector<8x8xbf16>
    %14 = vector.extract_strided_slice %7 {offsets = [0, 64], sizes = [8, 8], strides = [1, 1]} : vector<8x96xbf16> to vector<8x8xbf16>
    %cst_8 = arith.constant dense<0.000000e+00> : vector<8x8xf32>
    %15 = tpu.matmul %12, %13, %cst_8 {dimension_numbers = #tpu.dot_dimension_numbers<[1], [1], [0], [0], [0, 0, 1, 0], [], []>} : vector<8x8xbf16>, vector<8x8xbf16>, vector<8x8xf32> -> vector<8x8xf32>
    %16 = arith.addf %15, %11 : vector<8x8xf32>
    %cst_9 = arith.constant dense<0xFF800000> : vector<8xf32>
    %17 = vector.multi_reduction <maximumf>, %16, %cst_9 [1] : vector<8x8xf32> to vector<8xf32>
    %18 = vector.shape_cast %17 : vector<8xf32> to vector<8x1xf32>
    %19 = vector.broadcast %18 : vector<8x1xf32> to vector<8x8xf32>
    %20 = arith.subf %16, %19 : vector<8x8xf32>
    %21 = math.exp %20 : vector<8x8xf32>
    %cst_10 = arith.constant dense<0.000000e+00> : vector<8xf32>
    %22 = vector.multi_reduction <add>, %21, %cst_10 [1] : vector<8x8xf32> to vector<8xf32>
    %23 = vector.shape_cast %22 : vector<8xf32> to vector<8x1xf32>
    %24 = tpu.reciprocal %23 {approx = true} : vector<8x1xf32> -> vector<8x1xf32>
    %25 = vector.broadcast %24 : vector<8x1xf32> to vector<8x8xf32>
    %26 = arith.mulf %21, %25 : vector<8x8xf32>
    %27 = arith.truncf %26 : vector<8x8xf32> to vector<8x8xbf16>
    %cst_11 = arith.constant dense<0.000000e+00> : vector<8x8xf32>
    %28 = tpu.matmul %27, %14, %cst_11 {dimension_numbers = #tpu.dot_dimension_numbers<[1], [0], [0], [1], [0, 0, 1, 1], [], []>} : vector<8x8xbf16>, vector<8x8xbf16>, vector<8x8xf32> -> vector<8x8xf32>
    %29 = arith.truncf %28 : vector<8x8xf32> to vector<8x8xbf16>
    %c0_12 = arith.constant 0 : index
    %c0_13 = arith.constant 0 : index
    %30 = vector.load %arg16[%c0_12, %c0_13] : memref<8x32xbf16, #tpu.memory_space<vmem>>, vector<8x8xbf16>
    tpu.vector_store %arg16[%c0_12, %c0_13], %29 {strides = array<i32>} : memref<8x32xbf16, #tpu.memory_space<vmem>>, vector<8x8xbf16>,
    %31 = vector.extract_strided_slice %7 {offsets = [0, 8], sizes = [8, 8], strides = [1, 1]} : vector<8x96xbf16> to vector<8x8xbf16>
    %32 = vector.extract_strided_slice %7 {offsets = [0, 40], sizes = [8, 8], strides = [1, 1]} : vector<8x96xbf16> to vector<8x8xbf16>
    %33 = vector.extract_strided_slice %7 {offsets = [0, 72], sizes = [8, 8], strides = [1, 1]} : vector<8x96xbf16> to vector<8x8xbf16>
    %cst_14 = arith.constant dense<0.000000e+00> : vector<8x8xf32>
    %34 = tpu.matmul %31, %32, %cst_14 {dimension_numbers = #tpu.dot_dimension_numbers<[1], [1], [0], [0], [0, 0, 1, 0], [], []>} : vector<8x8xbf16>, vector<8x8xbf16>, vector<8x8xf32> -> vector<8x8xf32>
    %35 = arith.addf %34, %11 : vector<8x8xf32>
    %cst_15 = arith.constant dense<0xFF800000> : vector<8xf32>
    %36 = vector.multi_reduction <maximumf>, %35, %cst_15 [1] : vector<8x8xf32> to vector<8xf32>
    %37 = vector.shape_cast %36 : vector<8xf32> to vector<8x1xf32>
    %38 = vector.broadcast %37 : vector<8x1xf32> to vector<8x8xf32>
    %39 = arith.subf %35, %38 : vector<8x8xf32>
    %40 = math.exp %39 : vector<8x8xf32>
    %cst_16 = arith.constant dense<0.000000e+00> : vector<8xf32>
    %41 = vector.multi_reduction <add>, %40, %cst_16 [1] : vector<8x8xf32> to vector<8xf32>
    %42 = vector.shape_cast %41 : vector<8xf32> to vector<8x1xf32>
    %43 = tpu.reciprocal %42 {approx = true} : vector<8x1xf32> -> vector<8x1xf32>
    %44 = vector.broadcast %43 : vector<8x1xf32> to vector<8x8xf32>
    %45 = arith.mulf %40, %44 : vector<8x8xf32>
    %46 = arith.truncf %45 : vector<8x8xf32> to vector<8x8xbf16>
    %cst_17 = arith.constant dense<0.000000e+00> : vector<8x8xf32>
    %47 = tpu.matmul %46, %33, %cst_17 {dimension_numbers = #tpu.dot_dimension_numbers<[1], [0], [0], [1], [0, 0, 1, 1], [], []>} : vector<8x8xbf16>, vector<8x8xbf16>, vector<8x8xf32> -> vector<8x8xf32>
    %48 = arith.truncf %47 : vector<8x8xf32> to vector<8x8xbf16>
    %c0_18 = arith.constant 0 : index
    %c8 = arith.constant 8 : index
    %49 = vector.load %arg16[%c0_18, %c8] : memref<8x32xbf16, #tpu.memory_space<vmem>>, vector<8x8xbf16>
    tpu.vector_store %arg16[%c0_18, %c8], %48 {strides = array<i32>} : memref<8x32xbf16, #tpu.memory_space<vmem>>, vector<8x8xbf16>,
    %50 = vector.extract_strided_slice %7 {offsets = [0, 16], sizes = [8, 8], strides = [1, 1]} : vector<8x96xbf16> to vector<8x8xbf16>
    %51 = vector.extract_strided_slice %7 {offsets = [0, 48], sizes = [8, 8], strides = [1, 1]} : vector<8x96xbf16> to vector<8x8xbf16>
    %52 = vector.extract_strided_slice %7 {offsets = [0, 80], sizes = [8, 8], strides = [1, 1]} : vector<8x96xbf16> to vector<8x8xbf16>
    %cst_19 = arith.constant dense<0.000000e+00> : vector<8x8xf32>
    %53 = tpu.matmul %50, %51, %cst_19 {dimension_numbers = #tpu.dot_dimension_numbers<[1], [1], [0], [0], [0, 0, 1, 0], [], []>} : vector<8x8xbf16>, vector<8x8xbf16>, vector<8x8xf32> -> vector<8x8xf32>
    %54 = arith.addf %53, %11 : vector<8x8xf32>
    %cst_20 = arith.constant dense<0xFF800000> : vector<8xf32>
    %55 = vector.multi_reduction <maximumf>, %54, %cst_20 [1] : vector<8x8xf32> to vector<8xf32>
    %56 = vector.shape_cast %55 : vector<8xf32> to vector<8x1xf32>
    %57 = vector.broadcast %56 : vector<8x1xf32> to vector<8x8xf32>
    %58 = arith.subf %54, %57 : vector<8x8xf32>
    %59 = math.exp %58 : vector<8x8xf32>
    %cst_21 = arith.constant dense<0.000000e+00> : vector<8xf32>
    %60 = vector.multi_reduction <add>, %59, %cst_21 [1] : vector<8x8xf32> to vector<8xf32>
    %61 = vector.shape_cast %60 : vector<8xf32> to vector<8x1xf32>
    %62 = tpu.reciprocal %61 {approx = true} : vector<8x1xf32> -> vector<8x1xf32>
    %63 = vector.broadcast %62 : vector<8x1xf32> to vector<8x8xf32>
    %64 = arith.mulf %59, %63 : vector<8x8xf32>
    %65 = arith.truncf %64 : vector<8x8xf32> to vector<8x8xbf16>
    %cst_22 = arith.constant dense<0.000000e+00> : vector<8x8xf32>
    %66 = tpu.matmul %65, %52, %cst_22 {dimension_numbers = #tpu.dot_dimension_numbers<[1], [0], [0], [1], [0, 0, 1, 1], [], []>} : vector<8x8xbf16>, vector<8x8xbf16>, vector<8x8xf32> -> vector<8x8xf32>
    %67 = arith.truncf %66 : vector<8x8xf32> to vector<8x8xbf16>
    %c0_23 = arith.constant 0 : index
    %c16 = arith.constant 16 : index
    %68 = vector.load %arg16[%c0_23, %c16] : memref<8x32xbf16, #tpu.memory_space<vmem>>, vector<8x8xbf16>
    tpu.vector_store %arg16[%c0_23, %c16], %67 {strides = array<i32>} : memref<8x32xbf16, #tpu.memory_space<vmem>>, vector<8x8xbf16>,
    %69 = vector.extract_strided_slice %7 {offsets = [0, 24], sizes = [8, 8], strides = [1, 1]} : vector<8x96xbf16> to vector<8x8xbf16>
    %70 = vector.extract_strided_slice %7 {offsets = [0, 56], sizes = [8, 8], strides = [1, 1]} : vector<8x96xbf16> to vector<8x8xbf16>
    %71 = vector.extract_strided_slice %7 {offsets = [0, 88], sizes = [8, 8], strides = [1, 1]} : vector<8x96xbf16> to vector<8x8xbf16>
    %cst_24 = arith.constant dense<0.000000e+00> : vector<8x8xf32>
    %72 = tpu.matmul %69, %70, %cst_24 {dimension_numbers = #tpu.dot_dimension_numbers<[1], [1], [0], [0], [0, 0, 1, 0], [], []>} : vector<8x8xbf16>, vector<8x8xbf16>, vector<8x8xf32> -> vector<8x8xf32>
    %73 = arith.addf %72, %11 : vector<8x8xf32>
    %cst_25 = arith.constant dense<0xFF800000> : vector<8xf32>
    %74 = vector.multi_reduction <maximumf>, %73, %cst_25 [1] : vector<8x8xf32> to vector<8xf32>
    %75 = vector.shape_cast %74 : vector<8xf32> to vector<8x1xf32>
    %76 = vector.broadcast %75 : vector<8x1xf32> to vector<8x8xf32>
    %77 = arith.subf %73, %76 : vector<8x8xf32>
    %78 = math.exp %77 : vector<8x8xf32>
    %cst_26 = arith.constant dense<0.000000e+00> : vector<8xf32>
    %79 = vector.multi_reduction <add>, %78, %cst_26 [1] : vector<8x8xf32> to vector<8xf32>
    %80 = vector.shape_cast %79 : vector<8xf32> to vector<8x1xf32>
    %81 = tpu.reciprocal %80 {approx = true} : vector<8x1xf32> -> vector<8x1xf32>
    %82 = vector.broadcast %81 : vector<8x1xf32> to vector<8x8xf32>
    %83 = arith.mulf %78, %82 : vector<8x8xf32>
    %84 = arith.truncf %83 : vector<8x8xf32> to vector<8x8xbf16>
    %cst_27 = arith.constant dense<0.000000e+00> : vector<8x8xf32>
    %85 = tpu.matmul %84, %71, %cst_27 {dimension_numbers = #tpu.dot_dimension_numbers<[1], [0], [0], [1], [0, 0, 1, 1], [], []>} : vector<8x8xbf16>, vector<8x8xbf16>, vector<8x8xf32> -> vector<8x8xf32>
    %86 = arith.truncf %85 : vector<8x8xf32> to vector<8x8xbf16>
    %c0_28 = arith.constant 0 : index
    %c24 = arith.constant 24 : index
    %87 = vector.load %arg16[%c0_28, %c24] : memref<8x32xbf16, #tpu.memory_space<vmem>>, vector<8x8xbf16>
    tpu.vector_store %arg16[%c0_28, %c24], %86 {strides = array<i32>} : memref<8x32xbf16, #tpu.memory_space<vmem>>, vector<8x8xbf16>,
    %c0_29 = arith.constant 0 : index
    %c0_30 = arith.constant 0 : index
    %88 = vector.load %arg16[%c0_29, %c0_30] : memref<8x32xbf16, #tpu.memory_space<vmem>>, vector<8x32xbf16>
    %c0_31 = arith.constant 0 : index
    %c0_32 = arith.constant 0 : index
    %89 = vector.load %arg5[%c0_31, %c0_32] : memref<32x32xbf16, #tpu.memory_space<vmem>>, vector<32x32xbf16>
    %cst_33 = arith.constant dense<0.000000e+00> : vector<8x32xf32>
    %90 = tpu.matmul %88, %89, %cst_33 {dimension_numbers = #tpu.dot_dimension_numbers<[1], [0], [0], [1], [0, 0, 1, 1], [], []>} : vector<8x32xbf16>, vector<32x32xbf16>, vector<8x32xf32> -> vector<8x32xf32>
    %c0_34 = arith.constant 0 : index
    %c0_35 = arith.constant 0 : index
    %91 = vector.load %arg6[%c0_34, %c0_35] : memref<1x32xf32, #tpu.memory_space<vmem>>, vector<1x32xf32>
    %92 = vector.broadcast %91 : vector<1x32xf32> to vector<8x32xf32>
    %93 = arith.addf %90, %92 : vector<8x32xf32>
    %94 = arith.addf %0, %93 : vector<8x32xf32>
    %cst_36 = arith.constant dense<0.000000e+00> : vector<8xf32>
    %95 = vector.multi_reduction <add>, %94, %cst_36 [1] : vector<8x32xf32> to vector<8xf32>
    %96 = vector.shape_cast %95 : vector<8xf32> to vector<8x1xf32>
    %cst_37 = arith.constant 3.200000e+01 : f32
    %97 = vector.broadcast %cst_37 : f32 to vector<8x1xf32>
    %98 = arith.divf %96, %97 : vector<8x1xf32>
    %99 = vector.broadcast %98 : vector<8x1xf32> to vector<8x32xf32>
    %100 = arith.subf %94, %99 : vector<8x32xf32>
    %101 = arith.mulf %100, %100 : vector<8x32xf32>
    %cst_38 = arith.constant dense<0.000000e+00> : vector<8xf32>
    %102 = vector.multi_reduction <add>, %101, %cst_38 [1] : vector<8x32xf32> to vector<8xf32>
    %103 = vector.shape_cast %102 : vector<8xf32> to vector<8x1xf32>
    %cst_39 = arith.constant 3.200000e+01 : f32
    %104 = vector.broadcast %cst_39 : f32 to vector<8x1xf32>
    %105 = arith.divf %103, %104 : vector<8x1xf32>
    %106 = vector.broadcast %98 : vector<8x1xf32> to vector<8x32xf32>
    %107 = arith.subf %94, %106 : vector<8x32xf32>
    %cst_40 = arith.constant 9.99999974E-6 : f32
    %108 = vector.broadcast %cst_40 : f32 to vector<8x1xf32>
    %109 = arith.addf %105, %108 : vector<8x1xf32>
    %110 = math.rsqrt %109 : vector<8x1xf32>
    %111 = vector.broadcast %110 : vector<8x1xf32> to vector<8x32xf32>
    %112 = arith.mulf %107, %111 : vector<8x32xf32>
    %c0_41 = arith.constant 0 : index
    %c0_42 = arith.constant 0 : index
    %113 = vector.load %arg7[%c0_41, %c0_42] : memref<1x32xf32, #tpu.memory_space<vmem>>, vector<1x32xf32>
    %114 = vector.broadcast %113 : vector<1x32xf32> to vector<8x32xf32>
    %115 = arith.mulf %112, %114 : vector<8x32xf32>
    %c0_43 = arith.constant 0 : index
    %c0_44 = arith.constant 0 : index
    %116 = vector.load %arg8[%c0_43, %c0_44] : memref<1x32xf32, #tpu.memory_space<vmem>>, vector<1x32xf32>
    %117 = vector.broadcast %116 : vector<1x32xf32> to vector<8x32xf32>
    %118 = arith.addf %115, %117 : vector<8x32xf32>
    %119 = arith.truncf %118 : vector<8x32xf32> to vector<8x32xbf16>
    %c0_45 = arith.constant 0 : index
    %c0_46 = arith.constant 0 : index
    %120 = vector.load %arg9[%c0_45, %c0_46] : memref<32x64xbf16, #tpu.memory_space<vmem>>, vector<32x64xbf16>
    %cst_47 = arith.constant dense<0.000000e+00> : vector<8x64xf32>
    %121 = tpu.matmul %119, %120, %cst_47 {dimension_numbers = #tpu.dot_dimension_numbers<[1], [0], [0], [1], [0, 0, 1, 1], [], []>} : vector<8x32xbf16>, vector<32x64xbf16>, vector<8x64xf32> -> vector<8x64xf32>
    %c0_48 = arith.constant 0 : index
    %c0_49 = arith.constant 0 : index
    %122 = vector.load %arg10[%c0_48, %c0_49] : memref<1x64xf32, #tpu.memory_space<vmem>>, vector<1x64xf32>
    %123 = vector.broadcast %122 : vector<1x64xf32> to vector<8x64xf32>
    %124 = arith.addf %121, %123 : vector<8x64xf32>
    %cst_50 = arith.constant 0.000000e+00 : f32
    %125 = vector.broadcast %cst_50 : f32 to vector<8x64xf32>
    %126 = arith.maximumf %124, %125 : vector<8x64xf32>
    %127 = arith.truncf %126 : vector<8x64xf32> to vector<8x64xbf16>
    %c0_51 = arith.constant 0 : index
    %c0_52 = arith.constant 0 : index
    %128 = vector.load %arg11[%c0_51, %c0_52] : memref<64x32xbf16, #tpu.memory_space<vmem>>, vector<64x32xbf16>
    %cst_53 = arith.constant dense<0.000000e+00> : vector<8x32xf32>
    %129 = tpu.matmul %127, %128, %cst_53 {dimension_numbers = #tpu.dot_dimension_numbers<[1], [0], [0], [1], [0, 0, 1, 1], [], []>} : vector<8x64xbf16>, vector<64x32xbf16>, vector<8x32xf32> -> vector<8x32xf32>
    %c0_54 = arith.constant 0 : index
    %c0_55 = arith.constant 0 : index
    %130 = vector.load %arg12[%c0_54, %c0_55] : memref<1x32xf32, #tpu.memory_space<vmem>>, vector<1x32xf32>
    %131 = vector.broadcast %130 : vector<1x32xf32> to vector<8x32xf32>
    %132 = arith.addf %129, %131 : vector<8x32xf32>
    %133 = arith.addf %118, %132 : vector<8x32xf32>
    %cst_56 = arith.constant dense<0.000000e+00> : vector<8xf32>
    %134 = vector.multi_reduction <add>, %133, %cst_56 [1] : vector<8x32xf32> to vector<8xf32>
    %135 = vector.shape_cast %134 : vector<8xf32> to vector<8x1xf32>
    %cst_57 = arith.constant 3.200000e+01 : f32
    %136 = vector.broadcast %cst_57 : f32 to vector<8x1xf32>
    %137 = arith.divf %135, %136 : vector<8x1xf32>
    %138 = vector.broadcast %137 : vector<8x1xf32> to vector<8x32xf32>
    %139 = arith.subf %133, %138 : vector<8x32xf32>
    %140 = arith.mulf %139, %139 : vector<8x32xf32>
    %cst_58 = arith.constant dense<0.000000e+00> : vector<8xf32>
    %141 = vector.multi_reduction <add>, %140, %cst_58 [1] : vector<8x32xf32> to vector<8xf32>
    %142 = vector.shape_cast %141 : vector<8xf32> to vector<8x1xf32>
    %cst_59 = arith.constant 3.200000e+01 : f32
    %143 = vector.broadcast %cst_59 : f32 to vector<8x1xf32>
    %144 = arith.divf %142, %143 : vector<8x1xf32>
    %145 = vector.broadcast %137 : vector<8x1xf32> to vector<8x32xf32>
    %146 = arith.subf %133, %145 : vector<8x32xf32>
    %cst_60 = arith.constant 9.99999974E-6 : f32
    %147 = vector.broadcast %cst_60 : f32 to vector<8x1xf32>
    %148 = arith.addf %144, %147 : vector<8x1xf32>
    %149 = math.rsqrt %148 : vector<8x1xf32>
    %150 = vector.broadcast %149 : vector<8x1xf32> to vector<8x32xf32>
    %151 = arith.mulf %146, %150 : vector<8x32xf32>
    %c0_61 = arith.constant 0 : index
    %c0_62 = arith.constant 0 : index
    %152 = vector.load %arg13[%c0_61, %c0_62] : memref<1x32xf32, #tpu.memory_space<vmem>>, vector<1x32xf32>
    %153 = vector.broadcast %152 : vector<1x32xf32> to vector<8x32xf32>
    %154 = arith.mulf %151, %153 : vector<8x32xf32>
    %c0_63 = arith.constant 0 : index
    %c0_64 = arith.constant 0 : index
    %155 = vector.load %arg14[%c0_63, %c0_64] : memref<1x32xf32, #tpu.memory_space<vmem>>, vector<1x32xf32>
    %156 = vector.broadcast %155 : vector<1x32xf32> to vector<8x32xf32>
    %157 = arith.addf %154, %156 : vector<8x32xf32>
    %c0_65 = arith.constant 0 : index
    %c0_66 = arith.constant 0 : index
    %158 = vector.load %arg15[%c0_65, %c0_66] : memref<8x32xf32, #tpu.memory_space<vmem>>, vector<8x32xf32>
    tpu.vector_store %arg15[%c0_65, %c0_66], %157 {strides = array<i32>} : memref<8x32xf32, #tpu.memory_space<vmem>>, vector<8x32xf32>,
    return
  }
  func.func @transform_0(%arg0: i32) -> (i32, i32) {
    %c0_i32 = arith.constant 0 : i32
    %c0_i32_0 = arith.constant 0 : i32
    return %arg0, %c0_i32 : i32, i32
  }
  func.func @transform_1(%arg0: i32) -> (i32, i32, i32) {
    %c0_i32 = arith.constant 0 : i32
    %c0_i32_0 = arith.constant 0 : i32
    %c0_i32_1 = arith.constant 0 : i32
    return %arg0, %c0_i32, %c0_i32_0 : i32, i32, i32
  }
  func.func @transform_2(%arg0: i32) -> (i32, i32) {
    %c0_i32 = arith.constant 0 : i32
    %c0_i32_0 = arith.constant 0 : i32
    %c0_i32_1 = arith.constant 0 : i32
    return %c0_i32, %c0_i32_0 : i32, i32
  }
  func.func @transform_3(%arg0: i32) -> (i32, i32) {
    %c0_i32 = arith.constant 0 : i32
    %c0_i32_0 = arith.constant 0 : i32
    %c0_i32_1 = arith.constant 0 : i32
    return %c0_i32, %c0_i32_0 : i32, i32
  }
  func.func @transform_4(%arg0: i32) -> (i32, i32) {
    %c0_i32 = arith.constant 0 : i32
    %c0_i32_0 = arith.constant 0 : i32
    %c0_i32_1 = arith.constant 0 : i32
    return %c0_i32, %c0_i32_0 : i32, i32
  }
  func.func @transform_5(%arg0: i32) -> (i32, i32) {
    %c0_i32 = arith.constant 0 : i32
    %c0_i32_0 = arith.constant 0 : i32
    %c0_i32_1 = arith.constant 0 : i32
    return %c0_i32, %c0_i32_0 : i32, i32
  }
  func.func @transform_6(%arg0: i32) -> (i32, i32) {
    %c0_i32 = arith.constant 0 : i32
    %c0_i32_0 = arith.constant 0 : i32
    %c0_i32_1 = arith.constant 0 : i32
    return %c0_i32, %c0_i32_0 : i32, i32
  }
  func.func @transform_7(%arg0: i32) -> (i32, i32) {
    %c0_i32 = arith.constant 0 : i32
    %c0_i32_0 = arith.constant 0 : i32
    %c0_i32_1 = arith.constant 0 : i32
    return %c0_i32, %c0_i32_0 : i32, i32
  }
  func.func @transform_8(%arg0: i32) -> (i32, i32) {
    %c0_i32 = arith.constant 0 : i32
    %c0_i32_0 = arith.constant 0 : i32
    %c0_i32_1 = arith.constant 0 : i32
    return %c0_i32, %c0_i32_0 : i32, i32
  }
  func.func @transform_9(%arg0: i32) -> (i32, i32) {
    %c0_i32 = arith.constant 0 : i32
    %c0_i32_0 = arith.constant 0 : i32
    %c0_i32_1 = arith.constant 0 : i32
    return %c0_i32, %c0_i32_0 : i32, i32
  }
  func.func @transform_10(%arg0: i32) -> (i32, i32) {
    %c0_i32 = arith.constant 0 : i32
    %c0_i32_0 = arith.constant 0 : i32
    %c0_i32_1 = arith.constant 0 : i32
    return %c0_i32, %c0_i32_0 : i32, i32
  }
  func.func @transform_11(%arg0: i32) -> (i32, i32) {
    %c0_i32 = arith.constant 0 : i32
    %c0_i32_0 = arith.constant 0 : i32
    %c0_i32_1 = arith.constant 0 : i32
    return %c0_i32, %c0_i32_0 : i32, i32
  }
  func.func @transform_12(%arg0: i32) -> (i32, i32) {
    %c0_i32 = arith.constant 0 : i32
    %c0_i32_0 = arith.constant 0 : i32
    %c0_i32_1 = arith.constant 0 : i32
    return %c0_i32, %c0_i32_0 : i32, i32
  }
  func.func @transform_13(%arg0: i32) -> (i32, i32) {
    %c0_i32 = arith.constant 0 : i32
    %c0_i32_0 = arith.constant 0 : i32
    %c0_i32_1 = arith.constant 0 : i32
    return %c0_i32, %c0_i32_0 : i32, i32
  }
  func.func @transform_14(%arg0: i32) -> (i32, i32) {
    %c0_i32 = arith.constant 0 : i32
    %c0_i32_0 = arith.constant 0 : i32
    return %arg0, %c0_i32 : i32, i32
  }
}

</mosaic_0001>

<bundles_post_ra>
// kernel: tpu_custom_call.1
= control target key start
LH: loop header
LB: loop body
LE: loop exit
PB: predicated region body
PF: predicated region fallthrough
CT: control target
= control target key end

     0   :  { %s3334_s0 = inlined_call_operand.hbm [shape: f32[16,32], index: 0, kind: input, shape index: {}]   ;;  %s3335_s1 = inlined_call_operand.hbm [shape: f32[2,1,8], index: 1, kind: input, shape index: {}]   ;;  %s3336_s2 = inlined_call_operand.hbm [shape: bf16[32,96], index: 2, kind: input, shape index: {}]   ;;  %s3337_s3 = inlined_call_operand.hbm [shape: f32[1,96], index: 3, kind: input, shape index: {}]   ;;  %s3338_s4 = inlined_call_operand.hbm [shape: bf16[32,32], index: 4, kind: input, shape index: {}]   ;;  %s3339_s5 = inlined_call_operand.hbm [shape: f32[1,32], index: 5, kind: input, shape index: {}]   ;;  %s3340_s6 = inlined_call_operand.hbm [shape: f32[1,32], index: 6, kind: input, shape index: {}]   ;;  %s3341_s7 = inlined_call_operand.hbm [shape: f32[1,32], index: 7, kind: input, shape index: {}]   ;;  %s3342_s8 = inlined_call_operand.hbm [shape: bf16[32,64], index: 8, kind: input, shape index: {}]   ;;  %s3343_s9 = inlined_call_operand.hbm [shape: f32[1,64], index: 9, kind: input, shape index: {}]   ;;  %s3344_s10 = inlined_call_operand.hbm [shape: bf16[64,32], index: 10, kind: input, shape index: {}]   ;;  %s3345_s11 = inlined_call_operand.hbm [shape: f32[1,32], index: 11, kind: input, shape index: {}]   ;;  %s3346_s12 = inlined_call_operand.hbm [shape: f32[1,32], index: 12, kind: input, shape index: {}]   ;;  %s3347_s13 = inlined_call_operand.hbm [shape: f32[1,32], index: 13, kind: input, shape index: {}]   ;;  %s3348_s14 = inlined_call_operand.hbm [shape: f32[16,32], index: 14, kind: output, shape index: {}]  }
   0x1   :  { %3362 = sst [smem:[#allocation40_spill]] %s3334_s0 }
   0x2   :  { %3363 = sst [smem:[#allocation41_spill]] %s3335_s1 }
   0x3   :  { %3364 = sst [smem:[#allocation42_spill]] %s3336_s2 }
   0x4   :  { %3365 = sst [smem:[#allocation43_spill]] %s3337_s3 }
   0x5   :  { %3366 = sst [smem:[#allocation44_spill]] %s3338_s4 }
   0x6   :  { %3367 = sst [smem:[#allocation45_spill]] %s3339_s5 }
   0x7   :  { %3368 = sst [smem:[#allocation46_spill]] %s3340_s6 }
   0x8   :  { %3369 = sst [smem:[#allocation47_spill]] %s3348_s14 }
   0x9   :  { %19 = vsyncpa [#allocation4], 0 }
   0xa   :  { %21 = vsyncpa [#allocation4 + $0x1], 0 }
   0xb   :  { %22 = vsyncpa [#allocation7], 0 }
   0xc   :  { %24 = vsyncpa [#allocation7 + $0x1], 0 }
   0xd   :  { %25 = vsyncpa [#allocation10], 0 }
   0xe   :  { %26 = vsyncpa [#allocation13], 0 }
   0xf   :  { %27 = vsyncpa [#allocation16], 0 }
  0x10   :  { %28 = vsyncpa [#allocation19], 0 }
  0x11   :  { %29 = vsyncpa [#allocation22], 0 }
  0x12   :  { %30 = vsyncpa [#allocation25], 0 }
  0x13   :  { %31 = vsyncpa [#allocation5], 0 }
  0x14   :  { %33 = vsyncpa [#allocation5 + $0x1], 0  ;;  %s2735_s29 = smov 0   ;;  %s2737_s30 = smov 0  }
  0x15   :  { %s2739_s15 = smov 0   ;;  %s2741_s16 = smov 0  }
  0x16 LB: > { %3370 = sst [smem:[#allocation37_spill]] %s2613_s29  ;;  %s2627_s17 = smov [#allocation8]   ;;  %s2625_s16 = sphi %s2741_s16, %s3419_s16   ;;  %s2621_s15 = sphi %s2739_s15, %s3418_s15   ;;  %s2617_s30 = sphi %s2737_s30, %s3417_s30   ;;  %s2613_s29 = sphi %s2735_s29, %s3416_s29  }
  0x17   : > { %s386_s18 = sshll.u32 %s2627_s17, 4  ;;  %s2756_s19 = sadd.s32 4294967295, %s2625_s16   ;;  %s2761_s18 = int_to_ptr.vmem [resolvable:$true] %s386_s18 }
  0x18   : > { %3371 = sst [smem:[#allocation38_spill]] %s2756_s19  ;;  %p1724_p0 = scmp.ge.s32.totalorder %s2625_s16, 1 }
  0x19   : > { %p3358_p1 = scmp.eq.s32.totalorder %s2756_s19, 0  ;;  %p374_p2 = scmp.lt.s32.totalorder %s2625_s16, 3 }
  0x1a   : > { %s2628_s21 = smov [#allocation9]   ;;  %s2629_s24 = smov [#allocation12]  }
  0x1b   : > { %p2763_p3 = pnand %p1724_p0, %p374_p2  ;;  %s400_s22 = sshll.u32 %s2628_s21, 4  ;;  %s2776_s22 = int_to_ptr.vmem [resolvable:$true] %s400_s22 }
  0x1c   : > { %s424_s25 = sshll.u32 %s2629_s24, 4  ;;  %s3375_s2 = sld [smem:[#allocation42_spill]]  ;;  %s2778_s25 = int_to_ptr.vmem [resolvable:$true] %s424_s25 }
  0x1d   : > { %s3372_s20 = scalar_select %p2763_p3, 1, 0 }
  0x1e   : > { %p1965_p5 = pneg %p2763_p3 }
  0x1f   : > { %3373 = sst [smem:[#allocation39_spill]] %s3372_s20 }
  0x20   : > { %p2772_p6 = pnand %p1965_p5, %p3358_p1 }
  0x22   : > { %s2131_s28 = scalar_lea.hbm %s3375_s2, 256  ;;  %p2788_p8 = pneg %p2772_p6 }
  0x23   : > { %p2132_p7 = scmp.ne.s32.totalorder %s3375_s2, %s2131_s28  ;;  %p2138_p11 = scmp.lt.u32.totalorder %s2131_s28, %s3375_s2 }
  0x25   : > { %p2134_p9 = pnand %p2788_p8, %p2132_p7 }
  0x27   : > { %p2135_p10 = pneg %p2134_p9 }
  0x29   : > { %p2140_p12 = pnand %p2138_p11, %p2135_p10 }
  0x2b   : > { %2143 = shalt.err (!%p2140_p12)
}
  0x2c   : > { %s2144_s14 = scalar_lea.vmem %s2761_s18, 256  ;;  %p2152_p5 = scmp.lt.s32.totalorder %s2761_s18, %s2761_s18 }
  0x2d   : > { %p2145_p13 = scmp.ne.s32.totalorder %s2761_s18, %s2144_s14  ;;  %p2153_p4 = scmp.lt.s32.totalorder %s2144_s14, %s2144_s14 }
  0x2f   : > { %p2147_p0 = pnand %p2145_p13, %p2788_p8  ;;  %p2154_p7 = por %p2153_p4, %p2152_p5 }
  0x31   : > { %p2148_p2 = pneg %p2147_p0 }
  0x33   : > { %p2155_p9 = pnand %p2154_p7, %p2148_p2 }
  0x35   : > { %2158 = shalt.err (!%p2155_p9)
}
  0x36   : > { %s3356_s26 = smov 64   ;;  %s2631_s20 = smov 4  }
  0x37   : > { %1968 = dma.hbm_to_vmem [thread:$0]  (!%p2772_p6), %s3375_s2, 256, %s2761_s18, [#allocation7], %s3356_s26, %s3356_s26, %s2631_s20  }
  0x38   : > { %s3377_s3 = sld [smem:[#allocation43_spill]] }
  0x3e   : > { %s2159_s14 = scalar_lea.hbm %s3377_s3, 16 }
  0x3f   : > { %p2160_p4 = scmp.ne.s32.totalorder %s3377_s3, %s2159_s14  ;;  %p2166_p12 = scmp.lt.u32.totalorder %s2159_s14, %s3377_s3 }
  0x41   : > { %p2162_p10 = pnand %p2160_p4, %p2788_p8 }
  0x43   : > { %p2163_p11 = pneg %p2162_p10 }
  0x45   : > { %p2168_p13 = pnand %p2166_p12, %p2163_p11 }
  0x47   : > { %2171 = shalt.err (!%p2168_p13)
}
  0x48   : > { %s2172_s18 = scalar_lea.vmem %s2776_s22, 16  ;;  %s2179_s0 = scalar_lea.vmem %s2776_s22, 32 }
  0x49   : > { %p2173_p0 = scmp.ne.s32.totalorder %s2776_s22, %s2172_s18  ;;  %p2180_p7 = scmp.lt.s32.totalorder %s2776_s22, %s2776_s22 }
  0x4a   : > { %p2181_p9 = scmp.lt.s32.totalorder %s2179_s0, %s2172_s18 }
  0x4b   : > { %p2175_p2 = pnand %p2173_p0, %p2788_p8 }
  0x4c   : > { %p2182_p4 = por %p2181_p9, %p2180_p7 }
  0x4d   : > { %p2176_p5 = pneg %p2175_p2 }
  0x4f   : > { %p2183_p10 = pnand %p2182_p4, %p2176_p5 }
  0x51   : > { %2186 = shalt.err (!%p2183_p10)
}
  0x52   : > { %1971 = dma.hbm_to_vmem [thread:$0]  (!%p2772_p6), %s3377_s3, 16, %s2776_s22, [#allocation10]  }
  0x53   : > { %s3378_s5 = sld [smem:[#allocation45_spill]] }
  0x59   : > { %s2187_s28 = scalar_lea.hbm %s3378_s5, 16 }
  0x5a   : > { %p2188_p11 = scmp.ne.s32.totalorder %s3378_s5, %s2187_s28  ;;  %p2194_p0 = scmp.lt.u32.totalorder %s2187_s28, %s3378_s5 }
  0x5c   : > { %p2190_p12 = pnand %p2188_p11, %p2788_p8 }
  0x5e   : > { %p2191_p13 = pneg %p2190_p12 }
  0x60   : > { %p2196_p2 = pnand %p2194_p0, %p2191_p13 }
  0x62   : > { %2199 = shalt.err (!%p2196_p2)
}
  0x63   : > { %s2200_s22 = scalar_lea.vmem %s2778_s25, 16  ;;  %s2207_s0 = scalar_lea.vmem %s2778_s25, 32 }
  0x64   : > { %p2201_p5 = scmp.ne.s32.totalorder %s2778_s25, %s2200_s22  ;;  %p2208_p4 = scmp.lt.s32.totalorder %s2778_s25, %s2778_s25 }
  0x65   : > { %p2209_p10 = scmp.lt.s32.totalorder %s2207_s0, %s2200_s22 }
  0x66   : > { %p2203_p7 = pnand %p2201_p5, %p2788_p8 }
  0x67   : > { %p2210_p11 = por %p2209_p10, %p2208_p4 }
  0x68   : > { %p2204_p9 = pneg %p2203_p7 }
  0x6a   : > { %p2211_p12 = pnand %p2210_p11, %p2204_p9 }
  0x6c   : > { %2214 = shalt.err (!%p2211_p12)
}
  0x6d   : > { %1977 = dma.hbm_to_vmem [thread:$0]  (!%p2772_p6), %s3378_s5, 16, %s2778_s25, [#allocation13]  }
  0x6e   : > { %s2632_s19 = smov [#allocation15]   ;;  %s2633_s28 = smov [#allocation18]  }
  0x6f   : > { %s446_s27 = sshll.u32 %s2632_s19, 4  ;;  %s470_s17 = sshll.u32 %s2633_s28, 4  ;;  %s447_s27 = int_to_ptr.vmem [resolvable:$true] %s446_s27  ;;  %s471_s17 = int_to_ptr.vmem [resolvable:$true] %s470_s17 }
  0x70   : > { %s2215_s18 = scalar_lea.hbm %s3341_s7, 16 }
  0x71   : > { %p2216_p13 = scmp.ne.s32.totalorder %s3341_s7, %s2215_s18  ;;  %p2222_p5 = scmp.lt.u32.totalorder %s2215_s18, %s3341_s7 }
  0x73   : > { %p2218_p0 = pnand %p2216_p13, %p2788_p8 }
  0x75   : > { %p2219_p2 = pneg %p2218_p0 }
  0x77   : > { %p2224_p7 = pnand %p2222_p5, %p2219_p2 }
  0x79   : > { %2227 = shalt.err (!%p2224_p7)
}
  0x7a   : > { %s2228_s25 = scalar_lea.vmem %s447_s27, 16  ;;  %s2235_s29 = scalar_lea.vmem %s447_s27, 32 }
  0x7b   : > { %p2229_p9 = scmp.ne.s32.totalorder %s447_s27, %s2228_s25  ;;  %p2236_p11 = scmp.lt.s32.totalorder %s447_s27, %s447_s27 }
  0x7c   : > { %p2237_p12 = scmp.lt.s32.totalorder %s2235_s29, %s2228_s25 }
  0x7d   : > { %p2231_p4 = pnand %p2229_p9, %p2788_p8 }
  0x7e   : > { %p2238_p1 = por %p2237_p12, %p2236_p11 }
  0x7f   : > { %p2232_p10 = pneg %p2231_p4 }
  0x81   : > { %p2239_p3 = pnand %p2238_p1, %p2232_p10 }
  0x83   : > { %2242 = shalt.err (!%p2239_p3)
}
  0x84   : > { %1983 = dma.hbm_to_vmem [thread:$0]  (!%p2772_p6), %s3341_s7, 16, %s447_s27, [#allocation16]  }
  0x85   : > { %s2243_s14 = scalar_lea.hbm %s3343_s9, 16 }
  0x86   : > { %p2244_p13 = scmp.ne.s32.totalorder %s3343_s9, %s2243_s14  ;;  %p2250_p3 = scmp.lt.u32.totalorder %s2243_s14, %s3343_s9 }
  0x88   : > { %p2246_p0 = pnand %p2244_p13, %p2788_p8 }
  0x8a   : > { %p2247_p1 = pneg %p2246_p0 }
  0x8c   : > { %p2252_p2 = pnand %p2250_p3, %p2247_p1 }
  0x8e   : > { %2255 = shalt.err (!%p2252_p2)
}
  0x8f   : > { %s2256_s25 = scalar_lea.vmem %s471_s17, 16  ;;  %s2263_s27 = scalar_lea.vmem %s471_s17, 32 }
  0x90   : > { %p2257_p5 = scmp.ne.s32.totalorder %s471_s17, %s2256_s25  ;;  %p2264_p4 = scmp.lt.s32.totalorder %s471_s17, %s471_s17 }
  0x91   : > { %p2265_p10 = scmp.lt.s32.totalorder %s2263_s27, %s2256_s25 }
  0x92   : > { %p2259_p7 = pnand %p2257_p5, %p2788_p8 }
  0x93   : > { %p2266_p11 = por %p2265_p10, %p2264_p4 }
  0x94   : > { %p2260_p9 = pneg %p2259_p7 }
  0x96   : > { %p2267_p12 = pnand %p2266_p11, %p2260_p9 }
  0x98   : > { %2270 = shalt.err (!%p2267_p12)
}
  0x99   : > { %1989 = dma.hbm_to_vmem [thread:$0]  (!%p2772_p6), %s3343_s9, 16, %s471_s17, [#allocation19]  }
  0x9a   : > { %s2634_s28 = smov [#allocation21]   ;;  %s2635_s24 = smov [#allocation11]  }
  0x9b   : > { %s494_s26 = sshll.u32 %s2634_s28, 4  ;;  %s410_s14 = sshll.u32 %s2635_s24, 4  ;;  %s495_s26 = int_to_ptr.vmem [resolvable:$true] %s494_s26  ;;  %s411_s14 = int_to_ptr.vmem [resolvable:$true] %s410_s14 }
  0x9c   : > { %s2271_s0 = scalar_lea.hbm %s3345_s11, 16 }
  0x9d   : > { %p2272_p13 = scmp.ne.s32.totalorder %s3345_s11, %s2271_s0  ;;  %p2278_p3 = scmp.lt.u32.totalorder %s2271_s0, %s3345_s11 }
  0x9f   : > { %p2274_p0 = pnand %p2272_p13, %p2788_p8 }
  0xa1   : > { %p2275_p1 = pneg %p2274_p0 }
  0xa3   : > { %p2280_p2 = pnand %p2278_p3, %p2275_p1 }
  0xa5   : > { %2283 = shalt.err (!%p2280_p2)
}
  0xa6   : > { %s2284_s17 = scalar_lea.vmem %s495_s26, 16  ;;  %s2291_s19 = scalar_lea.vmem %s495_s26, 32 }
  0xa7   : > { %p2285_p5 = scmp.ne.s32.totalorder %s495_s26, %s2284_s17  ;;  %p2292_p4 = scmp.lt.s32.totalorder %s495_s26, %s495_s26 }
  0xa8   : > { %p2293_p10 = scmp.lt.s32.totalorder %s2291_s19, %s2284_s17 }
  0xa9   : > { %p2287_p7 = pnand %p2285_p5, %p2788_p8 }
  0xaa   : > { %p2294_p11 = por %p2293_p10, %p2292_p4 }
  0xab   : > { %p2288_p9 = pneg %p2287_p7 }
  0xad   : > { %p2295_p12 = pnand %p2294_p11, %p2288_p9 }
  0xaf   : > { %2298 = shalt.err (!%p2295_p12)
}
  0xb0   : > { %1995 = dma.hbm_to_vmem [thread:$0]  (!%p2772_p6), %s3345_s11, 16, %s495_s26, [#allocation22]  }
  0xb1   : > { %s3379_s4 = sld [smem:[#allocation44_spill]] }
  0xb7   : > { %s2299_s0 = scalar_lea.hbm %s3379_s4, 256 }
  0xb8   : > { %p2300_p13 = scmp.ne.s32.totalorder %s3379_s4, %s2299_s0  ;;  %p2306_p3 = scmp.lt.u32.totalorder %s2299_s0, %s3379_s4 }
  0xba   : > { %p2302_p0 = pnand %p2300_p13, %p2788_p8 }
  0xbc   : > { %p2303_p1 = pneg %p2302_p0 }
  0xbe   : > { %p2308_p2 = pnand %p2306_p3, %p2303_p1 }
  0xc0   : > { %2311 = shalt.err (!%p2308_p2)
}
  0xc1   : > { %s2312_s17 = scalar_lea.vmem %s411_s14, 256  ;;  %p2320_p4 = scmp.lt.s32.totalorder %s411_s14, %s411_s14 }
  0xc2   : > { %p2313_p5 = scmp.ne.s32.totalorder %s411_s14, %s2312_s17  ;;  %p2321_p10 = scmp.lt.s32.totalorder %s2312_s17, %s2312_s17 }
  0xc4   : > { %p2315_p7 = pnand %p2313_p5, %p2788_p8  ;;  %p2322_p11 = por %p2321_p10, %p2320_p4 }
  0xc6   : > { %p2316_p9 = pneg %p2315_p7 }
  0xc8   : > { %p2323_p12 = pnand %p2322_p11, %p2316_p9 }
  0xca   : > { %2326 = shalt.err (!%p2323_p12)
}
  0xcb   : > { %s3380_s26 = smov 64   ;;  %s2636_s24 = smov [#allocation14]  }
  0xcc   : > { %1974 = dma.hbm_to_vmem [thread:$0]  (!%p2772_p6), %s3379_s4, 256, %s411_s14, [#allocation10], %s3380_s26, %s3380_s26, %s2631_s20  }
  0xcd   : > { %s435_s18 = sshll.u32 %s2636_s24, 4  ;;  %s2637_s22 = smov [#allocation17]   ;;  %s436_s18 = int_to_ptr.vmem [resolvable:$true] %s435_s18 }
  0xce   : > { %s456_s0 = sshll.u32 %s2637_s22, 4  ;;  %s3381_s6 = sld [smem:[#allocation46_spill]]  ;;  %s457_s0 = int_to_ptr.vmem [resolvable:$true] %s456_s0 }
  0xd4   : > { %s2327_s27 = scalar_lea.hbm %s3381_s6, 16 }
  0xd5   : > { %p2328_p13 = scmp.ne.s32.totalorder %s3381_s6, %s2327_s27  ;;  %p2334_p3 = scmp.lt.u32.totalorder %s2327_s27, %s3381_s6 }
  0xd7   : > { %p2330_p0 = pnand %p2328_p13, %p2788_p8 }
  0xd9   : > { %p2331_p1 = pneg %p2330_p0 }
  0xdb   : > { %p2336_p2 = pnand %p2334_p3, %p2331_p1 }
  0xdd   : > { %2339 = shalt.err (!%p2336_p2)
}
  0xde   : > { %s2340_s14 = scalar_lea.vmem %s436_s18, 16  ;;  %s2347_s28 = scalar_lea.vmem %s436_s18, 32 }
  0xdf   : > { %p2341_p5 = scmp.ne.s32.totalorder %s436_s18, %s2340_s14  ;;  %p2348_p4 = scmp.lt.s32.totalorder %s436_s18, %s436_s18 }
  0xe0   : > { %p2349_p10 = scmp.lt.s32.totalorder %s2347_s28, %s2340_s14 }
  0xe1   : > { %p2343_p7 = pnand %p2341_p5, %p2788_p8 }
  0xe2   : > { %p2350_p11 = por %p2349_p10, %p2348_p4 }
  0xe3   : > { %p2344_p9 = pneg %p2343_p7 }
  0xe5   : > { %p2351_p12 = pnand %p2350_p11, %p2344_p9 }
  0xe7   : > { %2354 = shalt.err (!%p2351_p12)
}
  0xe8   : > { %1980 = dma.hbm_to_vmem [thread:$0]  (!%p2772_p6), %s3381_s6, 16, %s436_s18, [#allocation13]  }
  0xe9   : > { %s2355_s25 = scalar_lea.hbm %s3342_s8, 256 }
  0xea   : > { %p2356_p13 = scmp.ne.s32.totalorder %s3342_s8, %s2355_s25  ;;  %p2362_p3 = scmp.lt.u32.totalorder %s2355_s25, %s3342_s8 }
  0xec   : > { %p2358_p0 = pnand %p2356_p13, %p2788_p8 }
  0xee   : > { %p2359_p1 = pneg %p2358_p0 }
  0xf0   : > { %p2364_p2 = pnand %p2362_p3, %p2359_p1 }
  0xf2   : > { %2367 = shalt.err (!%p2364_p2)
}
  0xf3   : > { %s2368_s14 = scalar_lea.vmem %s457_s0, 256  ;;  %p2376_p4 = scmp.lt.s32.totalorder %s457_s0, %s457_s0 }
  0xf4   : > { %p2369_p5 = scmp.ne.s32.totalorder %s457_s0, %s2368_s14  ;;  %p2377_p10 = scmp.lt.s32.totalorder %s2368_s14, %s2368_s14 }
  0xf6   : > { %p2371_p7 = pnand %p2369_p5, %p2788_p8  ;;  %p2378_p11 = por %p2377_p10, %p2376_p4 }
  0xf8   : > { %p2372_p9 = pneg %p2371_p7 }
  0xfa   : > { %p2379_p12 = pnand %p2378_p11, %p2372_p9 }
  0xfc   : > { %2382 = shalt.err (!%p2379_p12)
}
  0xfd   : > { %1986 = dma.hbm_to_vmem [thread:$0]  (!%p2772_p6), %s3342_s8, 256, %s457_s0, [#allocation16], %s3380_s26, %s3380_s26, %s2631_s20  }
  0xfe   : > { %s2638_s24 = smov [#allocation20]   ;;  %s2639_s2 = smov [#allocation23]  }
  0xff   : > { %s480_s22 = sshll.u32 %s2638_s24, 4  ;;  %s505_s1 = sshll.u32 %s2639_s2, 4  ;;  %s481_s22 = int_to_ptr.vmem [resolvable:$true] %s480_s22  ;;  %s506_s1 = int_to_ptr.vmem [resolvable:$true] %s505_s1 }
 0x100   : > { %s2383_s29 = scalar_lea.hbm %s3344_s10, 512 }
 0x101   : > { %p2384_p13 = scmp.ne.s32.totalorder %s3344_s10, %s2383_s29  ;;  %p2390_p3 = scmp.lt.u32.totalorder %s2383_s29, %s3344_s10 }
 0x103   : > { %p2386_p0 = pnand %p2384_p13, %p2788_p8 }
 0x105   : > { %p2387_p1 = pneg %p2386_p0 }
 0x107   : > { %p2392_p2 = pnand %p2390_p3, %p2387_p1 }
 0x109   : > { %2395 = shalt.err (!%p2392_p2)
}
 0x10a   : > { %s2396_s0 = scalar_lea.vmem %s481_s22, 512  ;;  %p2404_p4 = scmp.lt.s32.totalorder %s481_s22, %s481_s22 }
 0x10b   : > { %p2397_p5 = scmp.ne.s32.totalorder %s481_s22, %s2396_s0  ;;  %p2405_p10 = scmp.lt.s32.totalorder %s2396_s0, %s2396_s0 }
 0x10d   : > { %p2399_p7 = pnand %p2397_p5, %p2788_p8  ;;  %p2406_p11 = por %p2405_p10, %p2404_p4 }
 0x10f   : > { %p2400_p9 = pneg %p2399_p7 }
 0x111   : > { %p2407_p12 = pnand %p2406_p11, %p2400_p9 }
 0x113   : > { %2410 = shalt.err (!%p2407_p12)
}
 0x114   : > { %1992 = dma.hbm_to_vmem [thread:$0]  (!%p2772_p6), %s3344_s10, 512, %s481_s22, [#allocation19], %s3380_s26, %s3380_s26, %s2631_s20  }
 0x115   : > { %s2411_s27 = scalar_lea.hbm %s3346_s12, 16 }
 0x116   : > { %p2412_p13 = scmp.ne.s32.totalorder %s3346_s12, %s2411_s27  ;;  %p2418_p3 = scmp.lt.u32.totalorder %s2411_s27, %s3346_s12 }
 0x118   : > { %p2414_p0 = pnand %p2412_p13, %p2788_p8 }
 0x11a   : > { %p2415_p1 = pneg %p2414_p0 }
 0x11c   : > { %p2420_p2 = pnand %p2418_p3, %p2415_p1 }
 0x11e   : > { %2423 = shalt.err (!%p2420_p2)
}
 0x11f   : > { %s2424_s18 = scalar_lea.vmem %s506_s1, 16  ;;  %s2431_s20 = scalar_lea.vmem %s506_s1, 32 }
 0x120   : > { %p2425_p5 = scmp.ne.s32.totalorder %s506_s1, %s2424_s18  ;;  %p2432_p4 = scmp.lt.s32.totalorder %s506_s1, %s506_s1 }
 0x121   : > { %p2433_p10 = scmp.lt.s32.totalorder %s2431_s20, %s2424_s18 }
 0x122   : > { %p2427_p7 = pnand %p2425_p5, %p2788_p8 }
 0x123   : > { %p2434_p11 = por %p2433_p10, %p2432_p4 }
 0x124   : > { %p2428_p9 = pneg %p2427_p7 }
 0x126   : > { %p2435_p12 = pnand %p2434_p11, %p2428_p9 }
 0x128   : > { %2438 = shalt.err (!%p2435_p12)
}
 0x129   : > { %1998 = dma.hbm_to_vmem [thread:$0]  (!%p2772_p6), %s3346_s12, 16, %s506_s1, [#allocation22]  }
 0x12a   : > { %s2640_s0 = smov [#allocation24]   ;;  %s2439_s25 = scalar_lea.hbm %s3347_s13, 16 }
 0x12b   : > { %s516_s28 = sshll.u32 %s2640_s0, 4  ;;  %p2440_p13 = scmp.ne.s32.totalorder %s3347_s13, %s2439_s25  ;;  %s517_s28 = int_to_ptr.vmem [resolvable:$true] %s516_s28 }
 0x12c   : > { %p2446_p3 = scmp.lt.u32.totalorder %s2439_s25, %s3347_s13 }
 0x12d   : > { %p2442_p0 = pnand %p2440_p13, %p2788_p8 }
 0x12f   : > { %p2443_p1 = pneg %p2442_p0 }
 0x131   : > { %p2448_p2 = pnand %p2446_p3, %p2443_p1 }
 0x133   : > { %2451 = shalt.err (!%p2448_p2)
}
 0x134   : > { %s2452_s1 = scalar_lea.vmem %s517_s28, 16  ;;  %s2459_s14 = scalar_lea.vmem %s517_s28, 32 }
 0x135   : > { %p2453_p5 = scmp.ne.s32.totalorder %s517_s28, %s2452_s1  ;;  %p2460_p4 = scmp.lt.s32.totalorder %s517_s28, %s517_s28 }
 0x136   : > { %p2461_p10 = scmp.lt.s32.totalorder %s2459_s14, %s2452_s1 }
 0x137   : > { %p2455_p7 = pnand %p2453_p5, %p2788_p8 }
 0x138   : > { %p2462_p11 = por %p2461_p10, %p2460_p4 }
 0x139   : > { %p2456_p9 = pneg %p2455_p7 }
 0x13b   : > { %p2463_p12 = pnand %p2462_p11, %p2456_p9 }
 0x13d   : > { %2466 = shalt.err (!%p2463_p12)
}
 0x13e   : > { %s3382_s21 = sld [smem:[#allocation37_spill]]  ;;  %s3383_s26 = sld [smem:[#allocation38_spill]] }
 0x13f   : > { %2001 = dma.hbm_to_vmem [thread:$0]  (!%p2772_p6), %s3347_s13, 16, %s517_s28, [#allocation25]  }
 0x140   : > { %s1723_s22 = sadd.s32 4294967294, %s2625_s16   ;;  %s3033_s23 = sadd.s32 1, %s2625_s16  }
 0x141   : > { %s43_s0 = ssub.s32 %s2625_s16, %s3033_s23  ;;  %s46_s24 = sadd.s32 1, %s2621_s15 }
 0x142   : > { %p44_p8 = scmp.eq.s32.totalorder %s43_s0, 0  ;;  %p53_p13 = scmp.ne.s32.totalorder %s2621_s15, %s2617_s30 }
 0x143   : > { %p54_p0 = scmp.eq.s32.totalorder %s2625_s16, 0  ;;  %p367_p7 = scmp.eq.s32.totalorder %s1723_s22, 1 }
 0x144   : > { %p59_p1 = scmp.ne.s32.totalorder %s2617_s30, %s3382_s21  ;;  %p3385_p2 = scmp.eq.s32.totalorder %s3383_s26, 0 }
 0x145   : > { %s3044_s2 = scalar_select %p44_p8, %s2621_s15, %s46_s24  }
 0x146   : > { %p3046_p3 = por %p54_p0, %p53_p13  ;;  %p3052_p6 = por %p3385_p2, %p59_p1 }
 0x147   : > { %p361_p5 = scmp.eq.s32.totalorder %s3383_s26, 1  ;;  %p2025_p9 = scmp.lt.s32.totalorder %s2625_s16, 2 }
 0x148   : > { %s3386_s28 = scalar_select %p3052_p6, 1, 0 }
 0x149   : > { %s3059_s27 = sand.u32 1, %s2621_s15   ;;  %p3061_p4 = por %p361_p5, %p53_p13 }
 0x14a   : > { %p3065_p10 = por %p367_p7, %p59_p1  ;;  %s1738_s19 = sshll.u32 %s3059_s27, 3 }
 0x14b   : > { %s3387_s29 = scalar_select %p3061_p4, 1, 0 }
 0x14c   : > { %s3388_s17 = scalar_select %p3065_p10, 1, 0 }
 0x14d   : > { %s1739_s1 = sshll.u32 %s2625_s16, 7  ;;  %s3389_s20 = sld [smem:[#allocation40_spill]] }
 0x14e   : > { %s531_s26 = scalar_lea.vmem [#allocation3], %s1738_s19  ;;  %p3080_p11 = pnand %p2025_p9, %p3046_p3 }
 0x14f   : > { %s538_s22 = sshll.u32 %s531_s26, 4  ;;  %s528_s3 = scalar_lea.sflag [#allocation4], %s3059_s27  ;;  %s3076_s22 = int_to_ptr.vmem [resolvable:$true] %s538_s22 }
 0x150   : > { %p2469_p8 = pneg %p3080_p11 }
 0x153   : > { %s3074_s21 = scalar_lea.hbm %s3389_s20, %s1739_s1  ;;  %s2472_s25 = scalar_lea.hbm %s3389_s20, 256 }
 0x154   : > { %s2467_s14 = scalar_lea.hbm %s3074_s21, 128  ;;  %p2473_p1 = scmp.lt.u32.totalorder %s3074_s21, %s3389_s20 }
 0x155   : > { %p2468_p12 = scmp.ne.s32.totalorder %s3074_s21, %s2467_s14  ;;  %p2474_p3 = scmp.lt.u32.totalorder %s2472_s25, %s2467_s14 }
 0x156   : > { %p2476_p5 = scmp.lt.u32.totalorder %s2467_s14, %s3074_s21 }
 0x157   : > { %p2470_p13 = pnand %p2469_p8, %p2468_p12  ;;  %p2475_p2 = por %p2474_p3, %p2473_p1 }
 0x159   : > { %p2471_p0 = pneg %p2470_p13  ;;  %p2477_p7 = por %p2476_p5, %p2475_p2 }
 0x15b   : > { %p2478_p9 = pnand %p2477_p7, %p2471_p0 }
 0x15d   : > { %2481 = shalt.err (!%p2478_p9)
}
 0x15e   : > { %s2482_s24 = scalar_lea.vmem %s3076_s22, 128  ;;  %s2641_s19 = smov [#allocation3]  }
 0x15f   : > { %p2483_p12 = scmp.ne.s32.totalorder %s3076_s22, %s2482_s24  ;;  %s2487_s1 = sshll.u32 %s2641_s19, 4  ;;  %s2488_s1 = int_to_ptr.vmem [resolvable:$false] %s2487_s1 }
 0x160   : > { %s2489_s18 = scalar_lea.vmem %s2488_s1, 256  ;;  %p2490_p4 = scmp.lt.s32.totalorder %s3076_s22, %s2488_s1 }
 0x161   : > { %p2485_p13 = pnand %p2483_p12, %p2469_p8  ;;  %p2491_p1 = scmp.lt.s32.totalorder %s2489_s18, %s2482_s24 }
 0x163   : > { %p2486_p10 = pneg %p2485_p13  ;;  %p2492_p3 = por %p2491_p1, %p2490_p4 }
 0x165   : > { %p2493_p2 = pnand %p2492_p3, %p2486_p10 }
 0x167   : > { %2496 = shalt.err (!%p2493_p2)
}
 0x168   : > { %2005 = dma.hbm_to_vmem [thread:$0]  (!%p3080_p11), %s3074_s21, 128, %s3076_s22, %s528_s3  }
 0x169   : > { %s1740_s14 = sshll.u32 %s2625_s16, 4  ;;  %s548_s25 = scalar_lea.vmem [#allocation6], %s3059_s27 }
 0x16a   : > { %s555_s26 = sshll.u32 %s548_s25, 4  ;;  %s3391_s5 = sld [smem:[#allocation41_spill]]  ;;  %s556_s26 = int_to_ptr.vmem [resolvable:$true] %s555_s26 }
 0x16b   : > { %s3392_s24 = sand.u32 1, %s2625_s16  }
 0x16c   : > { %s546_s18 = scalar_lea.sflag [#allocation7], %s3392_s24 }
 0x170   : > { %s3116_s1 = scalar_lea.hbm %s3391_s5, %s1740_s14  ;;  %s2502_s21 = scalar_lea.hbm %s3391_s5, 32 }
 0x171   : > { %s2497_s6 = scalar_lea.hbm %s3116_s1, 16  ;;  %p2503_p5 = scmp.lt.u32.totalorder %s3116_s1, %s3391_s5 }
 0x172   : > { %p2498_p4 = scmp.ne.s32.totalorder %s3116_s1, %s2497_s6  ;;  %p2504_p7 = scmp.lt.u32.totalorder %s2502_s21, %s2497_s6 }
 0x173   : > { %p2506_p12 = scmp.lt.u32.totalorder %s2497_s6, %s3116_s1 }
 0x174   : > { %p2500_p10 = pnand %p2498_p4, %p2469_p8  ;;  %p2505_p9 = por %p2504_p7, %p2503_p5 }
 0x176   : > { %p2501_p0 = pneg %p2500_p10  ;;  %p2507_p13 = por %p2506_p12, %p2505_p9 }
 0x178   : > { %p2508_p1 = pnand %p2507_p13, %p2501_p0 }
 0x17a   : > { %2511 = shalt.err (!%p2508_p1)
}
 0x17b   : > { %s2512_s14 = scalar_lea.vmem %s556_s26, 16  ;;  %s2642_s25 = smov [#allocation6]  }
 0x17c   : > { %p2513_p3 = scmp.ne.s32.totalorder %s556_s26, %s2512_s14  ;;  %s2517_s19 = sshll.u32 %s2642_s25, 4  ;;  %s2518_s19 = int_to_ptr.vmem [resolvable:$false] %s2517_s19 }
 0x17d   : > { %s2519_s24 = scalar_lea.vmem %s2518_s19, 32  ;;  %p2520_p10 = scmp.lt.s32.totalorder %s556_s26, %s2518_s19 }
 0x17e   : > { %p2515_p2 = pnand %p2513_p3, %p2469_p8  ;;  %p2521_p6 = scmp.lt.s32.totalorder %s2519_s24, %s2512_s14 }
 0x180   : > { %p2516_p4 = pneg %p2515_p2  ;;  %p2522_p5 = por %p2521_p6, %p2520_p10 }
 0x182   : > { %p2523_p7 = pnand %p2522_p5, %p2516_p4 }
 0x184   : > { %2526 = shalt.err (!%p2523_p7)
}
 0x185   : > { %2008 = dma.hbm_to_vmem [thread:$0]  (!%p3080_p11), %s3116_s1, 16, %s556_s26, %s546_s18  }
 0x186   : > { %s3393_s6 = sld [smem:[#allocation39_spill]] }
 0x18c   : > { %p3394_p0 = scmp.ne.s32.totalorder %s3393_s6, 0 }
 0x18d   : > { %s3142_s3 = sand.u32 (!%p3394_p0), 1, %s2617_s30   ;;  %p3395_p6 = scmp.ne.s32.totalorder (!%p3394_p0), %s3386_s28, 0 }
 0x18e   : > { %564 = sbr.rel (%p3394_p0) target bundleno = 3007 (0xbbf), region = 76  ;;  %s1742_s27 = sshll.u32 (!%p3394_p0), %s3142_s3, 3 }
 0x18f   : > { %s567_s21 = scalar_lea.sflag (!%p3394_p0), [#allocation4], %s3142_s3  ;;  %s3148_s4 = scalar_lea.vmem (!%p3394_p0), [#allocation3], %s1742_s27 }
 0x195   : > { %2572 = dma.done.wait (%p3395_p6), %s567_s21, 128  }
 0x196   : > { %2574 = vsyncadd (%p3395_p6), %s567_s21, 4294967168  ;;  %s3396_s0 = sld [smem:[#allocation38_spill]]  ;;  %s578_s18 = scalar_lea.vmem [#allocation6], %s3142_s3 }
 0x19c   : > { %s575_s26 = sand.u32 1, %s3396_s0  }
 0x19d   : > { %s576_s1 = scalar_lea.sflag [#allocation7], %s575_s26 }
 0x19e   : > { %2576 = dma.done.wait (%p3395_p6), %s576_s1, 16  }
 0x19f   : > { %2578 = vsyncadd (%p3395_p6), %s576_s1, 4294967280  ;;  %p3397_p11 = scmp.eq.s32.totalorder %s3396_s0, 0 }
 0x1a1   : > { %2580 = dma.done.wait (%p3397_p11), [#allocation7], 256   ;;  %p3398_p8 = pmov %p3397_p11 }
 0x1a3   : > { %2582 = vsyncadd (%p3398_p8), [#allocation7], 4294967040  ;;  %p3399_p9 = pmov %p3398_p8 }
 0x1a4   : > { %p3400_p12 = pmov %p3398_p8 }
 0x1a5   : > { %2584 = dma.done.wait (%p3399_p9), [#allocation10], 272  }
 0x1a6   : > { %2586 = vsyncadd (%p3400_p12), [#allocation10], 4294967024  ;;  %p3401_p13 = pmov %p3398_p8 }
 0x1a7   : > { %p3402_p1 = pmov %p3398_p8 }
 0x1a8   : > { %2588 = dma.done.wait (%p3401_p13), [#allocation13], 32  }
 0x1a9   : > { %2590 = vsyncadd (%p3402_p1), [#allocation13], 4294967264  ;;  %p3403_p3 = pmov %p3402_p1 }
 0x1aa   : > { %p3404_p2 = pmov %p3402_p1 }
 0x1ab   : > { %2592 = dma.done.wait (%p3403_p3), [#allocation16], 272  }
 0x1ac   : > { %2594 = vsyncadd (%p3404_p2), [#allocation16], 4294967024  ;;  %p3405_p4 = pmov %p3402_p1 }
 0x1ad   : > { %p3406_p10 = pmov %p3402_p1 }
 0x1ae   : > { %2596 = dma.done.wait (%p3405_p4), [#allocation19], 528  }
 0x1af   : > { %2598 = vsyncadd (%p3406_p10), [#allocation19], 4294966768  ;;  %p3407_p5 = pmov %p3402_p1 }
 0x1b0   : > { %p3408_p7 = pmov %p3402_p1 }
 0x1b1   : > { %2600 = dma.done.wait (%p3407_p5), [#allocation22], 32  }
 0x1b2   : > { %2602 = vsyncadd (%p3408_p7), [#allocation22], 4294967264  ;;  %p3409_p0 = pmov %p3402_p1 }
 0x1b4   : > { %2604 = dma.done.wait (%p3409_p0), [#allocation25], 16   ;;  %p3410_p6 = pmov %p3409_p0 }
 0x1b5   : > { %v2643_v0 = vmov 0.0   ;;  %vm2644_vm0 = vmmov 0   ;;  %v2101_v1 = vld [vmem:[#allocation8] sm:$0xff]   ;;  %v2102_v2 = vld [vmem:[#allocation8 + $0x8] sm:$0xff]   ;;  %vm701_vm1 = vcmask 261120   ;;  %s2645_s28 = smov 120  }
 0x1b6   : > { %2606 = vsyncadd (%p3410_p6), [#allocation25], 4294967280  ;;  %1827 = vmatprep.subr.bf16.mxu0 %v2643_v0  ;;  %1831 = vmatprep.mubr.msk.bf16.mxu0 %vm2644_vm0, %v2643_v0  ;;  %v3195_v3 = vld [vmem:[%s3148_s4] sm:$0xff]  ;;  %s2646_s22 = smov 96   ;;  %s2647_s14 = smov 80   ;;  %vm756_vm2 = vcmask 64512  }
 0x1b7   : > { %1835 = vmatprep.subr.bf16.mxu1 %v2643_v0  ;;  %1837 = vmatprep.mubr.msk.bf16.mxu1 %vm2644_vm0, %v2643_v0  ;;  %v677_v4 = vpack.c.bf16 %v3195_v3, %v3195_v3  ;;  %v1756_v5 = vld [vmem:[#allocation9] ss:$0 sm:$0xff]  ;;  %s2648_s25 = smov 88   ;;  %s2649_s19 = smov 72   ;;  %v1760_v23 = vld [vmem:[%s578_s18] ss:$0 sm:$0xff] }
 0x1b8   : > { %1828 = vmatpush3.bf16.msra.mxu0 %v2101_v1  ;;  %s2650_s24 = smov 112   ;;  %s2651_s6 = smov 104   ;;  %vm820_vm3 = vcmask 1043456   ;;  %vm865_vm4 = vcmask 60416   ;;  %vm984_vm5 = vcmask 126016   ;;  %vm1103_vm6 = vcmask 191616  }
 0x1b9   : > { %1829 = vmatprep.subr.bf16.mxu0 %v2643_v0  ;;  %s2652_s21 = smov 56   ;;  %s2653_s4 = smov 64   ;;  %vm1222_vm7 = vcmask 257216   ;;  %vm1430_vm8 = vcmask 523264  }
 0x1ba   : > { %s2654_s26 = smov 40   ;;  %s2655_s1 = smov 48  }
 0x1bb   : > { %s2656_s18 = smov 8   ;;  %p3412_p8 = scmp.ne.s32.totalorder %s3387_s29, 0 }
 0x1bc   : > { %1830 = vmatpush3.bf16.msra.mxu0 %v2102_v2 }
 0x1bd   : > { %1841 = vmatprep.subr.bf16.mxu0 %v2643_v0 }
 0x1bf   : > { %1832 = vmatmul.mubr.msk.bf16.vlgmr.msra.gmra.mrb[0].mxu0 %vm701_vm1, %v677_v4 }
 0x1c0   : > { %1843 = vmatprep.mubr.msk.bf16.mxu0 %vm2644_vm0, %v2643_v0 }
 0x292   : > { %v739_v6 = vpop.f32.mrb[0].mxu0 }
 0x293   : > { %v740_v7 = vadd.f32 %v1756_v5, %v739_v6  ;;  %v1833_v8 = vpop.f32.mrb[1].mxu0 }
 0x294   : > { %v742_v9 = vpop.f32.mrb[2].mxu0 }
 0x295   : > { %v3204_v10 = vpack.c.bf16 %v740_v7, %v740_v7  ;;  %v1834_v11 = vpop.f32.mrb[3].mxu0 }
 0x297   : > { %867 = vrot.lane.b32.xlu1 %v3204_v10, %s2645_s28  ;;  %754 = vrot.lane.b32.xlu0 %v3204_v10, %s2646_s22  ;;  %s2657_s28 = smov 16   ;;  %s2658_s22 = smov 24  }
 0x29b   : > { %988 = vrot.lane.b32.xlu1 %v3204_v10, %s2647_s14  ;;  %869 = vrot.lane.b32.xlu0 %v3204_v10, %s2648_s25  ;;  %s1791_s14 = sshll.u32 %s3396_s0, 7  ;;  %s674_s25 = scalar_lea.vmem [#allocation26], %s1742_s27 }
 0x29c   : > { %s2659_s27 = smov [#allocation26]  }
 0x29d   : > { %s2531_s0 = sshll.u32 %s2659_s27, 4  ;;  %s2532_s0 = int_to_ptr.vmem [resolvable:$false] %s2531_s0 }
 0x29f   : > { %1107 = vrot.lane.b32.xlu1 %v3204_v10, %s2649_s19  ;;  %986 = vrot.lane.b32.xlu0 %v3204_v10, %s2650_s24  ;;  %s1519_s19 = sshll.u32 %s674_s25, 4  ;;  %s3291_s19 = int_to_ptr.vmem [resolvable:$true] %s1519_s19 }
 0x2a0   : > { %p2534_p13 = scmp.lt.s32.totalorder %s3291_s19, %s2532_s0 }
 0x2a3   : > { %1105 = vrot.lane.b32.xlu0 %v3204_v10, %s2651_s6 }
 0x309   : > { %v755_v12 = vpop.permute.xlu0 %754  ;;  %v868_v15 = vpop.permute.xlu1 %867 }
 0x30a   : > { %v761_v13 = vsel %vm756_vm2, %v755_v12, 0 }
 0x30b   : > { %1836 = vmatpush3.bf16.xpose.msra.mxu1 %v761_v13 }
 0x30c   : > { %1847 = vmatprep.subr.bf16.mxu1 %v2643_v0 }
 0x30d   : > { %v870_v14 = vpop.permute.xlu0 %869  ;;  %v989_v17 = vpop.permute.xlu1 %988 }
 0x30e   : > { %v875_v16 = vsel %vm756_vm2, %v870_v14, 0  ;;  %v994_v18 = vsel %vm756_vm2, %v989_v17, 0 }
 0x311   : > { %v1108_v19 = vpop.permute.xlu1 %1107  ;;  %v987_v20 = vpop.permute.xlu0 %986 }
 0x312   : > { %1838 = vmatmul.mubr.msk.bf16.vlgmr.msra.gmra.mrb[0].mxu1 %vm756_vm2, %v3204_v10  ;;  %v1113_v21 = vsel %vm756_vm2, %v1108_v19, 0 }
 0x313   : > { %1848 = vmatpush3.bf16.xpose.msra.mxu1 %v875_v16  ;;  %1849 = vmatprep.mubr.msk.bf16.mxu1 %vm2644_vm0, %v2643_v0 }
 0x314   : > { %1859 = vmatprep.subr.bf16.mxu1 %v2643_v0 }
 0x315   : > { %v1106_v22 = vpop.permute.xlu0 %1105 }
 0x31a   : > { %1850 = vmatmul.mubr.msk.bf16.vlgmr.msra.gmra.mrb[4].mxu1 %vm756_vm2, %v868_v15 }
 0x31b   : > { %1860 = vmatpush3.bf16.xpose.msra.mxu1 %v994_v18  ;;  %1861 = vmatprep.mubr.msk.bf16.mxu1 %vm2644_vm0, %v2643_v0 }
 0x31c   : > { %1871 = vmatprep.subr.bf16.mxu1 %v2643_v0 }
 0x322   : > { %1862 = vmatmul.mubr.msk.bf16.vlgmr.msra.gmra.mrb[8].mxu1 %vm756_vm2, %v987_v20 }
 0x323   : > { %1872 = vmatpush3.bf16.xpose.msra.mxu1 %v1113_v21  ;;  %1873 = vmatprep.mubr.msk.bf16.mxu1 %vm2644_vm0, %v2643_v0 }
 0x324   : > { %1883 = vmatprep.subr.bf16.mxu1 %v2643_v0 }
 0x32a   : > { %1874 = vmatmul.mubr.msk.bf16.vlgmr.msra.gmra.mrb[12].mxu1 %vm756_vm2, %v1106_v22 }
 0x32b   : > { %1887 = vmatprep.mubr.msk.bf16.mxu1 %vm2644_vm0, %v2643_v0 }
 0x3e5   : > { %v797_v24 = vpop.f32.mrb[0].mxu1 }
 0x3e6   : > { %v798_v25 = vadd.f32 %v1760_v23, %v797_v24  ;;  %v1839_v26 = vpop.f32.mrb[1].mxu1 }
 0x3e7   : > { %v800_v27 = vpop.f32.mrb[2].mxu1 }
 0x3e8   : > { %v1840_v28 = vpop.f32.mrb[3].mxu1  ;;  %v803_v29 = vsel %vm756_vm2, %v798_v25, -inf }
 0x3e9   : > { %804 = vmax.xlane.f32.xlu1 %v803_v29 }
 0x3ed   : > { %v911_v30 = vpop.f32.mrb[4].mxu1 }
 0x3ee   : > { %v912_v31 = vadd.f32 %v1760_v23, %v911_v30  ;;  %v1851_v32 = vpop.f32.mrb[5].mxu1 }
 0x3ef   : > { %v914_v33 = vpop.f32.mrb[6].mxu1 }
 0x3f0   : > { %v1852_v34 = vpop.f32.mrb[7].mxu1  ;;  %v917_v35 = vsel %vm756_vm2, %v912_v31, -inf }
 0x3f1   : > { %918 = vmax.xlane.f32.xlu0 %v917_v35 }
 0x3f5   : > { %v1030_v36 = vpop.f32.mrb[8].mxu1 }
 0x3f6   : > { %v1031_v37 = vadd.f32 %v1760_v23, %v1030_v36  ;;  %v1863_v38 = vpop.f32.mrb[9].mxu1 }
 0x3f7   : > { %v1033_v39 = vpop.f32.mrb[10].mxu1 }
 0x3f8   : > { %v1864_v40 = vpop.f32.mrb[11].mxu1  ;;  %v1036_v41 = vsel %vm756_vm2, %v1031_v37, -inf }
 0x3f9   : > { %1037 = vmax.xlane.f32.xlu0 %v1036_v41  ;;  %v2103_v40 = vld [vmem:[#allocation11] sm:$0xff]   ;;  %v2104_v41 = vld [vmem:[#allocation11 + $0x8] sm:$0xff]  }
 0x3fa   : > { %1884 = vmatpush3.bf16.msra.mxu1 %v2103_v40 }
 0x3fb   : > { %1885 = vmatprep.subr.bf16.mxu1 %v2643_v0 }
 0x3fd   : > { %v1149_v42 = vpop.f32.mrb[12].mxu1 }
 0x3fe   : > { %v1150_v43 = vadd.f32 %v1760_v23, %v1149_v42  ;;  %v1875_v44 = vpop.f32.mrb[13].mxu1  ;;  %1886 = vmatpush3.bf16.msra.mxu1 %v2104_v41 }
 0x3ff   : > { %v1152_v45 = vpop.f32.mrb[14].mxu1  ;;  %1899 = vmatprep.subr.bf16.mxu1 %v2643_v0 }
 0x400   : > { %v1876_v46 = vpop.f32.mrb[15].mxu1  ;;  %v1155_v47 = vsel %vm756_vm2, %v1150_v43, -inf }
 0x401   : > { %1156 = vmax.xlane.f32.xlu1 %v1155_v47 }
 0x476   : > { %v805_v48 = vpop.xlane.xlu1 %804 }
 0x477   : > { %v806_v49 = vsub.f32 %v798_v25, %v805_v48 }
 0x479   : > { %v807_v50 = vmul.f32 1.442695, %v806_v49 }
 0x47b   : > { %2111 = vpow2.f32 %v807_v50 }
 0x47e   : > { %v919_v51 = vpop.xlane.xlu0 %918 }
 0x47f   : > { %v920_v52 = vsub.f32 %v912_v31, %v919_v51 }
 0x481   : > { %v921_v53 = vmul.f32 1.442695, %v920_v52 }
 0x483   : > { %2113 = vpow2.f32 %v921_v53 }
 0x485   : > { %v2112_v54 = vpop.eup %2111 }
 0x486   : > { %v1038_v55 = vpop.xlane.xlu0 %1037  ;;  %v809_v56 = vsel %vm756_vm2, %v2112_v54, 0.0 }
 0x487   : > { %v1039_v57 = vsub.f32 %v1031_v37, %v1038_v55  ;;  %810 = vadd.xlane.f32.xlu0 %v809_v56  ;;  %v1772_v56 = vld [vmem:[#allocation12] ss:$0 sm:$0xff] }
 0x489   : > { %v1040_v58 = vmul.f32 1.442695, %v1039_v57 }
 0x48b   : > { %2115 = vpow2.f32 %v1040_v58 }
 0x48d   : > { %v2114_v59 = vpop.eup %2113 }
 0x48e   : > { %v923_v60 = vsel %vm756_vm2, %v2114_v59, 0.0  ;;  %v1157_v63 = vpop.xlane.xlu1 %1156 }
 0x48f   : > { %924 = vadd.xlane.f32.xlu1 %v923_v60  ;;  %v1158_v1 = vsub.f32 %v1150_v43, %v1157_v63 }
 0x491   : > { %v1159_v2 = vmul.f32 1.442695, %v1158_v1 }
 0x493   : > { %2117 = vpow2.f32 %v1159_v2 }
 0x495   : > { %v2116_v61 = vpop.eup %2115 }
 0x496   : > { %v1042_v62 = vsel %vm756_vm2, %v2116_v61, 0.0 }
 0x497   : > { %1043 = vadd.xlane.f32.xlu0 %v1042_v62 }
 0x49d   : > { %v2118_v4 = vpop.eup %2117 }
 0x49e   : > { %v1161_v5 = vsel %vm756_vm2, %v2118_v4, 0.0 }
 0x4a0   : > { %929 = vrot.lane.b32.xlu1 %v3204_v10, %s2652_s21  ;;  %s3411_s21 = sld [smem:[#allocation47_spill]] }
 0x4ad   : > { %815 = vrot.lane.b32.xlu0 %v3204_v10, %s2653_s4  ;;  %s3289_s4 = scalar_lea.hbm %s3411_s21, %s1791_s14 }
 0x4b1   : > { %1167 = vrot.lane.b32.xlu0 %v3204_v10, %s2654_s26  ;;  %s1506_s26 = scalar_lea.sflag [#allocation5], %s3142_s3 }
 0x4c4   : > { %1162 = vadd.xlane.f32.xlu1 %v1161_v5 }
 0x4d5   : > { %1048 = vrot.lane.b32.xlu1 %v3204_v10, %s2655_s1  ;;  %s2527_s1 = scalar_lea.vmem %s3291_s19, 128 }
 0x4d6   : > { %p2528_p11 = scmp.ne.s32.totalorder %s3291_s19, %s2527_s1 }
 0x4d8   : > { %p2529_p9 = pnand %p2528_p11, %p3412_p8 }
 0x4da   : > { %p2530_p12 = pneg %p2529_p9 }
 0x514   : > { %v811_v6 = vpop.xlane.xlu0 %810 }
 0x515   : > { %2119 = vrcp.f32 %v811_v6 }
 0x51c   : > { %v925_v7 = vpop.xlane.xlu1 %924 }
 0x51d   : > { %2121 = vrcp.f32 %v925_v7  ;;  %v2105_v7 = vld [vmem:[#allocation17] sm:$0xff]  }
 0x51f   : > { %v2120_v8 = vpop.eup %2119 }
 0x520   : > { %v813_v11 = vmul.f32 %v2120_v8, %v2112_v54  ;;  %v930_v14 = vpop.permute.xlu1 %929  ;;  %v2106_v8 = vld [vmem:[#allocation17 + $0x8] sm:$0xff]  }
 0x521   : > { %v935_v17 = vsel %vm820_vm3, %v930_v14, 0 }
 0x522   : > { %v814_v15 = vpack.c.bf16 %v813_v11, %v813_v11  ;;  %v2108_v11 = vld [vmem:[#allocation20 + $0x8] sm:$0xff]  }
 0x524   : > { %v1044_v9 = vpop.xlane.xlu0 %1043 }
 0x525   : > { %2123 = vrcp.f32 %v1044_v9  ;;  %v2107_v9 = vld [vmem:[#allocation20] sm:$0xff]  }
 0x527   : > { %v2122_v16 = vpop.eup %2121 }
 0x528   : > { %v816_v12 = vpop.permute.xlu0 %815  ;;  %v927_v10 = vmul.f32 %v2122_v16, %v2114_v59 }
 0x529   : > { %v822_v13 = vsel %vm820_vm3, %v816_v12, 0 }
 0x52a   : > { %1842 = vmatpush3.bf16.msra.mxu0 %v822_v13  ;;  %v928_v18 = vpack.c.bf16 %v927_v10, %v927_v10 }
 0x52b   : > { %1853 = vmatprep.subr.bf16.mxu0 %v2643_v0 }
 0x52c   : > { %v1168_v24 = vpop.permute.xlu0 %1167 }
 0x52d   : > { %1844 = vmatmul.mubr.msk.bf16.vlgmr.msra.gmra.mrb[4].mxu0 %vm756_vm2, %v814_v15  ;;  %v1173_v26 = vsel %vm820_vm3, %v1168_v24, 0  ;;  %v1776_v15 = vld [vmem:[#allocation14] ss:$0 sm:$0xff] }
 0x52e   : > { %1854 = vmatpush3.bf16.msra.mxu0 %v935_v17  ;;  %1855 = vmatprep.mubr.msk.bf16.mxu0 %vm2644_vm0, %v2643_v0  ;;  %v1777_v17 = vld [vmem:[#allocation15] ss:$0 sm:$0xff] }
 0x52f   : > { %1865 = vmatprep.subr.bf16.mxu0 %v2643_v0  ;;  %v2124_v19 = vpop.eup %2123 }
 0x530   : > { %v1046_v21 = vmul.f32 %v2124_v19, %v2116_v61 }
 0x532   : > { %v1047_v25 = vpack.c.bf16 %v1046_v21, %v1046_v21  ;;  %v2110_v21 = vld [vmem:[#allocation20 + $0x18] sm:$0xff]  }
 0x535   : > { %1856 = vmatmul.mubr.msk.bf16.vlgmr.msra.gmra.mrb[8].mxu0 %vm756_vm2, %v928_v18 }
 0x536   : > { %1867 = vmatprep.mubr.msk.bf16.mxu0 %vm2644_vm0, %v2643_v0 }
 0x551   : > { %v1163_v20 = vpop.xlane.xlu1 %1162 }
 0x552   : > { %2125 = vrcp.f32 %v1163_v20  ;;  %v2109_v20 = vld [vmem:[#allocation20 + $0x10] sm:$0xff]  }
 0x555   : > { %v1049_v22 = vpop.permute.xlu1 %1048 }
 0x556   : > { %v1054_v23 = vsel %vm820_vm3, %v1049_v22, 0  ;;  %v1778_v22 = vld [vmem:[#allocation18] ss:$0 sm:$0xff] }
 0x557   : > { %1866 = vmatpush3.bf16.msra.mxu0 %v1054_v23 }
 0x558   : > { %1877 = vmatprep.subr.bf16.mxu0 %v2643_v0 }
 0x55a   : > { %1868 = vmatmul.mubr.msk.bf16.vlgmr.msra.gmra.mrb[12].mxu0 %vm756_vm2, %v1047_v25 }
 0x55b   : > { %1878 = vmatpush3.bf16.msra.mxu0 %v1173_v26  ;;  %1879 = vmatprep.mubr.msk.bf16.mxu0 %vm2644_vm0, %v2643_v0 }
 0x55c   : > { %v2126_v27 = vpop.eup %2125  ;;  %1891 = vmatprep.subr.bf16.mxu0 %v2643_v0 }
 0x55d   : > { %v1165_v28 = vmul.f32 %v2126_v27, %v2118_v4 }
 0x55f   : > { %v1166_v29 = vpack.c.bf16 %v1165_v28, %v1165_v28 }
 0x562   : > { %1880 = vmatmul.mubr.msk.bf16.vlgmr.msra.gmra.mrb[16].mxu0 %vm756_vm2, %v1166_v29 }
 0x563   : > { %1895 = vmatprep.mubr.msk.bf16.mxu0 %vm2644_vm0, %v2643_v0  ;;  %1892 = vmatpush3.bf16.msra.mxu0 %v2105_v7 }
 0x564   : > { %1893 = vmatprep.subr.bf16.mxu0 %v2643_v0 }
 0x567   : > { %1894 = vmatpush3.bf16.msra.mxu0 %v2106_v8 }
 0x600   : > { %v858_v30 = vpop.f32.mrb[4].mxu0 }
 0x601   : > { %v864_v31 = vpack.c.bf16 %v858_v30, %v858_v30  ;;  %v1845_v32 = vpop.f32.mrb[5].mxu0  ;;  %v1782_v30 = vld [vmem:[#allocation21] ss:$0 sm:$0xff] }
 0x602   : > { %v861_v33 = vpop.f32.mrb[6].mxu0 }
 0x603   : > { %866 = vst.msk [vmem:[#allocation2] sm:$0xf] %vm865_vm4, %v864_v31  ;;  %v1846_v34 = vpop.f32.mrb[7].mxu0 }
 0x608   : > { %v971_v35 = vpop.f32.mrb[8].mxu0 }
 0x609   : > { %v1794_v36 = vpack.c.bf16 %v971_v35, %v971_v35  ;;  %v1857_v37 = vpop.f32.mrb[9].mxu0 }
 0x60a   : > { %v974_v38 = vpop.f32.mrb[10].mxu0 }
 0x60b   : > { %981 = vrot.lane.b32.xlu1 %v1794_v36, %s2656_s18  ;;  %v1858_v39 = vpop.f32.mrb[11].mxu0  ;;  %s2533_s18 = scalar_lea.vmem %s2532_s0, 256 }
 0x60c   : > { %p2535_p1 = scmp.lt.s32.totalorder %s2533_s18, %s2527_s1 }
 0x60e   : > { %p2536_p3 = por %p2535_p1, %p2534_p13 }
 0x610   : > { %p2537_p2 = pnand %p2536_p3, %p2530_p12 }
 0x62d   : > { %v1090_v42 = vpop.f32.mrb[12].mxu0 }
 0x62e   : > { %v1795_v43 = vpack.c.bf16 %v1090_v42, %v1090_v42  ;;  %v1869_v44 = vpop.f32.mrb[13].mxu0 }
 0x62f   : > { %v1093_v45 = vpop.f32.mrb[14].mxu0 }
 0x630   : > { %1100 = vrot.lane.b32.xlu0 %v1795_v43, %s2657_s28  ;;  %v1870_v46 = vpop.f32.mrb[15].mxu0 }
 0x631   : > { %v1788_v46 = vld [vmem:[#allocation23] ss:$0 sm:$0xff] }
 0x635   : > { %v1209_v47 = vpop.f32.mrb[16].mxu0 }
 0x636   : > { %v1796_v48 = vpack.c.bf16 %v1209_v47, %v1209_v47  ;;  %v1881_v49 = vpop.f32.mrb[17].mxu0 }
 0x637   : > { %v1212_v50 = vpop.f32.mrb[18].mxu0 }
 0x638   : > { %1219 = vrot.lane.b32.xlu1 %v1796_v48, %s2658_s22  ;;  %v1882_v51 = vpop.f32.mrb[19].mxu0  ;;  %v1789_v48 = vld [vmem:[#allocation24] ss:$0 sm:$0xff] }
 0x67d   : > { %v982_v52 = vpop.permute.xlu1 %981 }
 0x67e   : > { %985 = vst.msk [vmem:[#allocation2] sm:$0xf] %vm984_vm5, %v982_v52 }
 0x6a2   : > { %v1101_v53 = vpop.permute.xlu0 %1100 }
 0x6a3   : > { %1104 = vst.msk [vmem:[#allocation2] sm:$0xf] %vm1103_vm6, %v1101_v53 }
 0x6aa   : > { %v1220_v54 = vpop.permute.xlu1 %1219 }
 0x6ab   : > { %1223 = vst.msk [vmem:[#allocation2] sm:$0xf] %vm1222_vm7, %v1220_v54 }
 0x6b2   : > { %v1224_v55 = vld [vmem:[#allocation2] sm:$0xf] }
 0x6b3   : > { %1888 = vmatmul.mubr.msk.bf16.vlgmr.msra.gmra.mrb[16].mxu1 %vm701_vm1, %v1224_v55 }
 0x6b4   : > { %1907 = vmatprep.mubr.msk.bf16.mxu1 %vm2644_vm0, %v2643_v0  ;;  %1900 = vmatpush3.bf16.msra.mxu1 %v2107_v9 }
 0x6b5   : > { %1901 = vmatprep.subr.bf16.mxu1 %v2643_v0 }
 0x6b8   : > { %1902 = vmatpush3.bf16.msra.mxu1 %v2108_v11 }
 0x6b9   : > { %1903 = vmatprep.subr.bf16.mxu1 %v2643_v0 }
 0x6bc   : > { %1904 = vmatpush3.bf16.msra.mxu1 %v2109_v20 }
 0x6bd   : > { %1905 = vmatprep.subr.bf16.mxu1 %v2643_v0 }
 0x6c0   : > { %1906 = vmatpush3.bf16.msra.mxu1 %v2110_v21 }
 0x786   : > { %v1285_v57 = vpop.f32.mrb[16].mxu1 }
 0x787   : > { %v1286_v58 = vadd.f32 %v1772_v56, %v1285_v57  ;;  %v1889_v59 = vpop.f32.mrb[17].mxu1 }
 0x788   : > { %v1288_v60 = vpop.f32.mrb[18].mxu1 }
 0x789   : > { %v1890_v61 = vpop.f32.mrb[19].mxu1  ;;  %v1291_v62 = vadd.f32 %v1286_v58, %v3195_v3 }
 0x78b   : > { %v1292_v63 = vsel %vm701_vm1, %v1291_v62, 0.0 }
 0x78c   : > { %1293 = vadd.xlane.f32.xlu0 %v1292_v63 }
 0x819   : > { %v1294_v1 = vpop.xlane.xlu0 %1293 }
 0x81a   : > { %v1296_v2 = vmul.f32 0.03125, %v1294_v1 }
 0x81c   : > { %v1297_v4 = vsub.f32 %v1291_v62, %v1296_v2 }
 0x81e   : > { %v1298_v5 = vmul.f32 %v1297_v4, %v1297_v4 }
 0x820   : > { %v1299_v6 = vsel %vm701_vm1, %v1298_v5, 0.0 }
 0x821   : > { %1300 = vadd.xlane.f32.xlu1 %v1299_v6 }
 0x8ae   : > { %v1301_v3 = vpop.xlane.xlu1 %1300 }
 0x8af   : > { %v1302_v12 = vmul.f32 0.03125, %v1301_v3 }
 0x8b1   : > { %v1303_v13 = vadd.f32 1e-05, %v1302_v12 }
 0x8b3   : > { %2127 = vrsqrt.f32 %v1303_v13 }
 0x8bd   : > { %v2128_v14 = vpop.eup %2127 }
 0x8be   : > { %v1305_v16 = vmul.f32 %v2128_v14, %v1297_v4 }
 0x8c0   : > { %v1313_v10 = vmul.f32 %v1776_v15, %v1305_v16 }
 0x8c2   : > { %v1321_v18 = vadd.f32 %v1777_v17, %v1313_v10 }
 0x8c4   : > { %v1322_v19 = vpack.c.bf16 %v1321_v18, %v1321_v18 }
 0x8c6   : > { %1896 = vmatmul.mubr.msk.bf16.vlgmr.msra.gmra.mrb[20].mxu0 %vm701_vm1, %v1322_v19 }
 0x999   : > { %v1383_v23 = vpop.f32.mrb[20].mxu0 }
 0x99a   : > { %v1384_v24 = vadd.f32 %v1778_v22, %v1383_v23  ;;  %v1897_v25 = vpop.f32.mrb[21].mxu0 }
 0x99b   : > { %v1386_v26 = vpop.f32.mrb[22].mxu0 }
 0x99c   : > { %v1389_v27 = vmax.f32 %v1384_v24, 0.0  ;;  %v1898_v28 = vpop.f32.mrb[23].mxu0 }
 0x99e   : > { %v1390_v29 = vpack.c.bf16 %v1389_v27, %v1389_v27 }
 0x9a0   : > { %1908 = vmatmul.mubr.msk.bf16.vlgmr.msra.gmra.mrb[20].mxu1 %vm1430_vm8, %v1390_v29 }
 0xa73   : > { %v1468_v31 = vpop.f32.mrb[20].mxu1 }
 0xa74   : > { %v1469_v32 = vadd.f32 %v1782_v30, %v1468_v31  ;;  %v1909_v33 = vpop.f32.mrb[21].mxu1 }
 0xa75   : > { %v1471_v34 = vpop.f32.mrb[22].mxu1 }
 0xa76   : > { %v1910_v35 = vpop.f32.mrb[23].mxu1  ;;  %v1474_v36 = vadd.f32 %v1469_v32, %v1321_v18 }
 0xa78   : > { %v1475_v0 = vsel %vm701_vm1, %v1474_v36, 0.0 }
 0xa79   : > { %1476 = vadd.xlane.f32.xlu0 %v1475_v0 }
 0xb06   : > { %v1477_v37 = vpop.xlane.xlu0 %1476 }
 0xb07   : > { %v1478_v38 = vmul.f32 0.03125, %v1477_v37 }
 0xb09   : > { %v1479_v39 = vsub.f32 %v1474_v36, %v1478_v38 }
 0xb0b   : > { %v1480_v40 = vmul.f32 %v1479_v39, %v1479_v39 }
 0xb0d   : > { %v1481_v41 = vsel %vm701_vm1, %v1480_v40, 0.0 }
 0xb0e   : > { %1482 = vadd.xlane.f32.xlu0 %v1481_v41 }
 0xb9b   : > { %v1483_v42 = vpop.xlane.xlu0 %1482 }
 0xb9c   : > { %v1484_v43 = vmul.f32 0.03125, %v1483_v42 }
 0xb9e   : > { %v1485_v44 = vadd.f32 1e-05, %v1484_v43 }
 0xba0   : > { %2129 = vrsqrt.f32 %v1485_v44 }
 0xbaa   : > { %v2130_v45 = vpop.eup %2129 }
 0xbab   : > { %v1487_v47 = vmul.f32 %v2130_v45, %v1479_v39 }
 0xbad   : > { %v1495_v49 = vmul.f32 %v1788_v46, %v1487_v47 }
 0xbaf   : > { %v1503_v50 = vadd.f32 %v1789_v48, %v1495_v49 }
 0xbb1   : > { %1504 = vst.msk [vmem:[%s674_s25] sm:$0xff] %vm701_vm1, %v1503_v50 }
 0xbb2   : > { %2540 = shalt.err (!%p2537_p2)
}
 0xbb3   : > { %s2541_s3 = scalar_lea.hbm %s3289_s4, 128  ;;  %s2545_s14 = scalar_lea.hbm %s3411_s21, 256 }
 0xbb4   : > { %p2542_p4 = scmp.ne.s32.totalorder %s3289_s4, %s2541_s3  ;;  %p2546_p7 = scmp.lt.u32.totalorder %s3289_s4, %s3411_s21 }
 0xbb5   : > { %p2547_p0 = scmp.lt.u32.totalorder %s2545_s14, %s2541_s3  ;;  %p2549_p11 = scmp.lt.u32.totalorder %s2541_s3, %s3289_s4 }
 0xbb6   : > { %p2543_p10 = pnand %p2542_p4, %p3412_p8 }
 0xbb7   : > { %p2548_p6 = por %p2547_p0, %p2546_p7 }
 0xbb8   : > { %p2544_p5 = pneg %p2543_p10 }
 0xbb9   : > { %p2550_p9 = por %p2549_p11, %p2548_p6 }
 0xbbb   : > { %p2551_p12 = pnand %p2550_p9, %p2544_p5 }
 0xbbd   : > { %2554 = shalt.err (!%p2551_p12)
}
 0xbbe   : > { %1963 = dma.vmem_to_hbm [thread:$0]  (%p3412_p8), %s3291_s19, 128, %s3289_s4, %s1506_s26  }
 0xbbf PF: > { %s3413_s6 = sld [smem:[#allocation37_spill]]  ;;  %p3414_p13 = scmp.ne.s32.totalorder %s3388_s17, 0 }
 0xbc0   : > { %p3415_p1 = scmp.ge.s32.totalorder %s2625_s16, 2 }
 0xbc2   : > { %p2010_p3 = pnand %p3415_p1, %p3414_p13 }
 0xbc5   : > { %s1531_s1 = sand.u32 1, %s3413_s6  }
 0xbc6   : > { %s1532_s27 = scalar_lea.sflag [#allocation5], %s1531_s1 }
 0xbc7   : > { %2608 = dma.done.wait (!%p2010_p3), %s1532_s27, 128  }
 0xbc8   : > { %2610 = vsyncadd (!%p2010_p3), %s1532_s27, 4294967168  ;;  %p36_p2 = scmp.ge.s32.totalorder %s3033_s23, 4   ;;  %s3416_s29 = smov %s2617_s30 }
 0xbc9   : > { %s3417_s30 = smov %s2621_s15  ;;  %s3418_s15 = smov %s3044_s2 }
 0xbca   : > { %s3419_s16 = smov %s3033_s23  ;;  %38 = sbr.rel (!%p36_p2) target bundleno = 22 (0x16), region = 182 }
 0xbd1   :  { %1537 = vsyncpa [#allocation4], 1 }
 0xbd2   :  { %1539 = vsyncpa [#allocation4 + $0x1], 1 }
 0xbd3   :  { %1540 = vsyncpa [#allocation7], 1 }
 0xbd4   :  { %1542 = vsyncpa [#allocation7 + $0x1], 1 }
 0xbd5   :  { %1543 = vsyncpa [#allocation10], 1 }
 0xbd6   :  { %1544 = vsyncpa [#allocation13], 1 }
 0xbd7   :  { %1545 = vsyncpa [#allocation16], 1 }
 0xbd8   :  { %1546 = vsyncpa [#allocation19], 1 }
 0xbd9   :  { %1547 = vsyncpa [#allocation22], 1 }
 0xbda   :  { %1548 = vsyncpa [#allocation25], 1 }
 0xbdb   :  { %1549 = vsyncpa [#allocation5], 1 }
 0xbdc   :  { %1551 = vsyncpa [#allocation5 + $0x1], 1 }

// kernel: tpu_custom_call.1
= control target key start
LH: loop header
LB: loop body
LE: loop exit
PB: predicated region body
PF: predicated region fallthrough
CT: control target
= control target key end

     0   :  { %s3334_s0 = inlined_call_operand.hbm [shape: f32[16,32], index: 0, kind: input, shape index: {}]   ;;  %s3335_s1 = inlined_call_operand.hbm [shape: f32[2,1,8], index: 1, kind: input, shape index: {}]   ;;  %s3336_s2 = inlined_call_operand.hbm [shape: bf16[32,96], index: 2, kind: input, shape index: {}]   ;;  %s3337_s3 = inlined_call_operand.hbm [shape: f32[1,96], index: 3, kind: input, shape index: {}]   ;;  %s3338_s4 = inlined_call_operand.hbm [shape: bf16[32,32], index: 4, kind: input, shape index: {}]   ;;  %s3339_s5 = inlined_call_operand.hbm [shape: f32[1,32], index: 5, kind: input, shape index: {}]   ;;  %s3340_s6 = inlined_call_operand.hbm [shape: f32[1,32], index: 6, kind: input, shape index: {}]   ;;  %s3341_s7 = inlined_call_operand.hbm [shape: f32[1,32], index: 7, kind: input, shape index: {}]   ;;  %s3342_s8 = inlined_call_operand.hbm [shape: bf16[32,64], index: 8, kind: input, shape index: {}]   ;;  %s3343_s9 = inlined_call_operand.hbm [shape: f32[1,64], index: 9, kind: input, shape index: {}]   ;;  %s3344_s10 = inlined_call_operand.hbm [shape: bf16[64,32], index: 10, kind: input, shape index: {}]   ;;  %s3345_s11 = inlined_call_operand.hbm [shape: f32[1,32], index: 11, kind: input, shape index: {}]   ;;  %s3346_s12 = inlined_call_operand.hbm [shape: f32[1,32], index: 12, kind: input, shape index: {}]   ;;  %s3347_s13 = inlined_call_operand.hbm [shape: f32[1,32], index: 13, kind: input, shape index: {}]   ;;  %s3348_s14 = inlined_call_operand.hbm [shape: f32[16,32], index: 14, kind: output, shape index: {}]  }
   0x1   :  { %3362 = sst [smem:[#allocation40_spill]] %s3334_s0 }
   0x2   :  { %3363 = sst [smem:[#allocation41_spill]] %s3335_s1 }
   0x3   :  { %3364 = sst [smem:[#allocation42_spill]] %s3336_s2 }
   0x4   :  { %3365 = sst [smem:[#allocation43_spill]] %s3337_s3 }
   0x5   :  { %3366 = sst [smem:[#allocation44_spill]] %s3338_s4 }
   0x6   :  { %3367 = sst [smem:[#allocation45_spill]] %s3339_s5 }
   0x7   :  { %3368 = sst [smem:[#allocation46_spill]] %s3340_s6 }
   0x8   :  { %3369 = sst [smem:[#allocation47_spill]] %s3348_s14 }
   0x9   :  { %19 = vsyncpa [#allocation4], 0 }
   0xa   :  { %21 = vsyncpa [#allocation4 + $0x1], 0 }
   0xb   :  { %22 = vsyncpa [#allocation7], 0 }
   0xc   :  { %24 = vsyncpa [#allocation7 + $0x1], 0 }
   0xd   :  { %25 = vsyncpa [#allocation10], 0 }
   0xe   :  { %26 = vsyncpa [#allocation13], 0 }
   0xf   :  { %27 = vsyncpa [#allocation16], 0 }
  0x10   :  { %28 = vsyncpa [#allocation19], 0 }
  0x11   :  { %29 = vsyncpa [#allocation22], 0 }
  0x12   :  { %30 = vsyncpa [#allocation25], 0 }
  0x13   :  { %31 = vsyncpa [#allocation5], 0 }
  0x14   :  { %33 = vsyncpa [#allocation5 + $0x1], 0  ;;  %s2735_s29 = smov 0   ;;  %s2737_s30 = smov 0  }
  0x15   :  { %s2739_s15 = smov 0   ;;  %s2741_s16 = smov 0  }
  0x16 LB: > { %3370 = sst [smem:[#allocation37_spill]] %s2613_s29  ;;  %s2627_s17 = smov [#allocation8]   ;;  %s2625_s16 = sphi %s2741_s16, %s3419_s16   ;;  %s2621_s15 = sphi %s2739_s15, %s3418_s15   ;;  %s2617_s30 = sphi %s2737_s30, %s3417_s30   ;;  %s2613_s29 = sphi %s2735_s29, %s3416_s29  }
  0x17   : > { %s386_s18 = sshll.u32 %s2627_s17, 4  ;;  %s2756_s19 = sadd.s32 4294967295, %s2625_s16   ;;  %s2761_s18 = int_to_ptr.vmem [resolvable:$true] %s386_s18 }
  0x18   : > { %3371 = sst [smem:[#allocation38_spill]] %s2756_s19  ;;  %p1724_p0 = scmp.ge.s32.totalorder %s2625_s16, 1 }
  0x19   : > { %p3358_p1 = scmp.eq.s32.totalorder %s2756_s19, 0  ;;  %p374_p2 = scmp.lt.s32.totalorder %s2625_s16, 3 }
  0x1a   : > { %s2628_s21 = smov [#allocation9]   ;;  %s2629_s24 = smov [#allocation12]  }
  0x1b   : > { %p2763_p3 = pnand %p1724_p0, %p374_p2  ;;  %s400_s22 = sshll.u32 %s2628_s21, 4  ;;  %s2776_s22 = int_to_ptr.vmem [resolvable:$true] %s400_s22 }
  0x1c   : > { %s424_s25 = sshll.u32 %s2629_s24, 4  ;;  %s3375_s2 = sld [smem:[#allocation42_spill]]  ;;  %s2778_s25 = int_to_ptr.vmem [resolvable:$true] %s424_s25 }
  0x1d   : > { %s3372_s20 = scalar_select %p2763_p3, 1, 0 }
  0x1e   : > { %p1965_p5 = pneg %p2763_p3 }
  0x1f   : > { %3373 = sst [smem:[#allocation39_spill]] %s3372_s20 }
  0x20   : > { %p2772_p6 = pnand %p1965_p5, %p3358_p1 }
  0x22   : > { %s2131_s28 = scalar_lea.hbm %s3375_s2, 256  ;;  %p2788_p8 = pneg %p2772_p6 }
  0x23   : > { %p2132_p7 = scmp.ne.s32.totalorder %s3375_s2, %s2131_s28  ;;  %p2138_p11 = scmp.lt.u32.totalorder %s2131_s28, %s3375_s2 }
  0x25   : > { %p2134_p9 = pnand %p2788_p8, %p2132_p7 }
  0x27   : > { %p2135_p10 = pneg %p2134_p9 }
  0x29   : > { %p2140_p12 = pnand %p2138_p11, %p2135_p10 }
  0x2b   : > { %2143 = shalt.err (!%p2140_p12)
}
  0x2c   : > { %s2144_s14 = scalar_lea.vmem %s2761_s18, 256  ;;  %p2152_p5 = scmp.lt.s32.totalorder %s2761_s18, %s2761_s18 }
  0x2d   : > { %p2145_p13 = scmp.ne.s32.totalorder %s2761_s18, %s2144_s14  ;;  %p2153_p4 = scmp.lt.s32.totalorder %s2144_s14, %s2144_s14 }
  0x2f   : > { %p2147_p0 = pnand %p2145_p13, %p2788_p8  ;;  %p2154_p7 = por %p2153_p4, %p2152_p5 }
  0x31   : > { %p2148_p2 = pneg %p2147_p0 }
  0x33   : > { %p2155_p9 = pnand %p2154_p7, %p2148_p2 }
  0x35   : > { %2158 = shalt.err (!%p2155_p9)
}
  0x36   : > { %s3356_s26 = smov 64   ;;  %s2631_s20 = smov 4  }
  0x37   : > { %1968 = dma.hbm_to_vmem [thread:$0]  (!%p2772_p6), %s3375_s2, 256, %s2761_s18, [#allocation7], %s3356_s26, %s3356_s26, %s2631_s20  }
  0x38   : > { %s3377_s3 = sld [smem:[#allocation43_spill]] }
  0x3e   : > { %s2159_s14 = scalar_lea.hbm %s3377_s3, 16 }
  0x3f   : > { %p2160_p4 = scmp.ne.s32.totalorder %s3377_s3, %s2159_s14  ;;  %p2166_p12 = scmp.lt.u32.totalorder %s2159_s14, %s3377_s3 }
  0x41   : > { %p2162_p10 = pnand %p2160_p4, %p2788_p8 }
  0x43   : > { %p2163_p11 = pneg %p2162_p10 }
  0x45   : > { %p2168_p13 = pnand %p2166_p12, %p2163_p11 }
  0x47   : > { %2171 = shalt.err (!%p2168_p13)
}
  0x48   : > { %s2172_s18 = scalar_lea.vmem %s2776_s22, 16  ;;  %s2179_s0 = scalar_lea.vmem %s2776_s22, 32 }
  0x49   : > { %p2173_p0 = scmp.ne.s32.totalorder %s2776_s22, %s2172_s18  ;;  %p2180_p7 = scmp.lt.s32.totalorder %s2776_s22, %s2776_s22 }
  0x4a   : > { %p2181_p9 = scmp.lt.s32.totalorder %s2179_s0, %s2172_s18 }
  0x4b   : > { %p2175_p2 = pnand %p2173_p0, %p2788_p8 }
  0x4c   : > { %p2182_p4 = por %p2181_p9, %p2180_p7 }
  0x4d   : > { %p2176_p5 = pneg %p2175_p2 }
  0x4f   : > { %p2183_p10 = pnand %p2182_p4, %p2176_p5 }
  0x51   : > { %2186 = shalt.err (!%p2183_p10)
}
  0x52   : > { %1971 = dma.hbm_to_vmem [thread:$0]  (!%p2772_p6), %s3377_s3, 16, %s2776_s22, [#allocation10]  }
  0x53   : > { %s3378_s5 = sld [smem:[#allocation45_spill]] }
  0x59   : > { %s2187_s28 = scalar_lea.hbm %s3378_s5, 16 }
  0x5a   : > { %p2188_p11 = scmp.ne.s32.totalorder %s3378_s5, %s2187_s28  ;;  %p2194_p0 = scmp.lt.u32.totalorder %s2187_s28, %s3378_s5 }
  0x5c   : > { %p2190_p12 = pnand %p2188_p11, %p2788_p8 }
  0x5e   : > { %p2191_p13 = pneg %p2190_p12 }
  0x60   : > { %p2196_p2 = pnand %p2194_p0, %p2191_p13 }
  0x62   : > { %2199 = shalt.err (!%p2196_p2)
}
  0x63   : > { %s2200_s22 = scalar_lea.vmem %s2778_s25, 16  ;;  %s2207_s0 = scalar_lea.vmem %s2778_s25, 32 }
  0x64   : > { %p2201_p5 = scmp.ne.s32.totalorder %s2778_s25, %s2200_s22  ;;  %p2208_p4 = scmp.lt.s32.totalorder %s2778_s25, %s2778_s25 }
  0x65   : > { %p2209_p10 = scmp.lt.s32.totalorder %s2207_s0, %s2200_s22 }
  0x66   : > { %p2203_p7 = pnand %p2201_p5, %p2788_p8 }
  0x67   : > { %p2210_p11 = por %p2209_p10, %p2208_p4 }
  0x68   : > { %p2204_p9 = pneg %p2203_p7 }
  0x6a   : > { %p2211_p12 = pnand %p2210_p11, %p2204_p9 }
  0x6c   : > { %2214 = shalt.err (!%p2211_p12)
}
  0x6d   : > { %1977 = dma.hbm_to_vmem [thread:$0]  (!%p2772_p6), %s3378_s5, 16, %s2778_s25, [#allocation13]  }
  0x6e   : > { %s2632_s19 = smov [#allocation15]   ;;  %s2633_s28 = smov [#allocation18]  }
  0x6f   : > { %s446_s27 = sshll.u32 %s2632_s19, 4  ;;  %s470_s17 = sshll.u32 %s2633_s28, 4  ;;  %s447_s27 = int_to_ptr.vmem [resolvable:$true] %s446_s27  ;;  %s471_s17 = int_to_ptr.vmem [resolvable:$true] %s470_s17 }
  0x70   : > { %s2215_s18 = scalar_lea.hbm %s3341_s7, 16 }
  0x71   : > { %p2216_p13 = scmp.ne.s32.totalorder %s3341_s7, %s2215_s18  ;;  %p2222_p5 = scmp.lt.u32.totalorder %s2215_s18, %s3341_s7 }
  0x73   : > { %p2218_p0 = pnand %p2216_p13, %p2788_p8 }
  0x75   : > { %p2219_p2 = pneg %p2218_p0 }
  0x77   : > { %p2224_p7 = pnand %p2222_p5, %p2219_p2 }
  0x79   : > { %2227 = shalt.err (!%p2224_p7)
}
  0x7a   : > { %s2228_s25 = scalar_lea.vmem %s447_s27, 16  ;;  %s2235_s29 = scalar_lea.vmem %s447_s27, 32 }
  0x7b   : > { %p2229_p9 = scmp.ne.s32.totalorder %s447_s27, %s2228_s25  ;;  %p2236_p11 = scmp.lt.s32.totalorder %s447_s27, %s447_s27 }
  0x7c   : > { %p2237_p12 = scmp.lt.s32.totalorder %s2235_s29, %s2228_s25 }
  0x7d   : > { %p2231_p4 = pnand %p2229_p9, %p2788_p8 }
  0x7e   : > { %p2238_p1 = por %p2237_p12, %p2236_p11 }
  0x7f   : > { %p2232_p10 = pneg %p2231_p4 }
  0x81   : > { %p2239_p3 = pnand %p2238_p1, %p2232_p10 }
  0x83   : > { %2242 = shalt.err (!%p2239_p3)
}
  0x84   : > { %1983 = dma.hbm_to_vmem [thread:$0]  (!%p2772_p6), %s3341_s7, 16, %s447_s27, [#allocation16]  }
  0x85   : > { %s2243_s14 = scalar_lea.hbm %s3343_s9, 16 }
  0x86   : > { %p2244_p13 = scmp.ne.s32.totalorder %s3343_s9, %s2243_s14  ;;  %p2250_p3 = scmp.lt.u32.totalorder %s2243_s14, %s3343_s9 }
  0x88   : > { %p2246_p0 = pnand %p2244_p13, %p2788_p8 }
  0x8a   : > { %p2247_p1 = pneg %p2246_p0 }
  0x8c   : > { %p2252_p2 = pnand %p2250_p3, %p2247_p1 }
  0x8e   : > { %2255 = shalt.err (!%p2252_p2)
}
  0x8f   : > { %s2256_s25 = scalar_lea.vmem %s471_s17, 16  ;;  %s2263_s27 = scalar_lea.vmem %s471_s17, 32 }
  0x90   : > { %p2257_p5 = scmp.ne.s32.totalorder %s471_s17, %s2256_s25  ;;  %p2264_p4 = scmp.lt.s32.totalorder %s471_s17, %s471_s17 }
  0x91   : > { %p2265_p10 = scmp.lt.s32.totalorder %s2263_s27, %s2256_s25 }
  0x92   : > { %p2259_p7 = pnand %p2257_p5, %p2788_p8 }
  0x93   : > { %p2266_p11 = por %p2265_p10, %p2264_p4 }
  0x94   : > { %p2260_p9 = pneg %p2259_p7 }
  0x96   : > { %p2267_p12 = pnand %p2266_p11, %p2260_p9 }
  0x98   : > { %2270 = shalt.err (!%p2267_p12)
}
  0x99   : > { %1989 = dma.hbm_to_vmem [thread:$0]  (!%p2772_p6), %s3343_s9, 16, %s471_s17, [#allocation19]  }
  0x9a   : > { %s2634_s28 = smov [#allocation21]   ;;  %s2635_s24 = smov [#allocation11]  }
  0x9b   : > { %s494_s26 = sshll.u32 %s2634_s28, 4  ;;  %s410_s14 = sshll.u32 %s2635_s24, 4  ;;  %s495_s26 = int_to_ptr.vmem [resolvable:$true] %s494_s26  ;;  %s411_s14 = int_to_ptr.vmem [resolvable:$true] %s410_s14 }
  0x9c   : > { %s2271_s0 = scalar_lea.hbm %s3345_s11, 16 }
  0x9d   : > { %p2272_p13 = scmp.ne.s32.totalorder %s3345_s11, %s2271_s0  ;;  %p2278_p3 = scmp.lt.u32.totalorder %s2271_s0, %s3345_s11 }
  0x9f   : > { %p2274_p0 = pnand %p2272_p13, %p2788_p8 }
  0xa1   : > { %p2275_p1 = pneg %p2274_p0 }
  0xa3   : > { %p2280_p2 = pnand %p2278_p3, %p2275_p1 }
  0xa5   : > { %2283 = shalt.err (!%p2280_p2)
}
  0xa6   : > { %s2284_s17 = scalar_lea.vmem %s495_s26, 16  ;;  %s2291_s19 = scalar_lea.vmem %s495_s26, 32 }
  0xa7   : > { %p2285_p5 = scmp.ne.s32.totalorder %s495_s26, %s2284_s17  ;;  %p2292_p4 = scmp.lt.s32.totalorder %s495_s26, %s495_s26 }
  0xa8   : > { %p2293_p10 = scmp.lt.s32.totalorder %s2291_s19, %s2284_s17 }
  0xa9   : > { %p2287_p7 = pnand %p2285_p5, %p2788_p8 }
  0xaa   : > { %p2294_p11 = por %p2293_p10, %p2292_p4 }
  0xab   : > { %p2288_p9 = pneg %p2287_p7 }
  0xad   : > { %p2295_p12 = pnand %p2294_p11, %p2288_p9 }
  0xaf   : > { %2298 = shalt.err (!%p2295_p12)
}
  0xb0   : > { %1995 = dma.hbm_to_vmem [thread:$0]  (!%p2772_p6), %s3345_s11, 16, %s495_s26, [#allocation22]  }
  0xb1   : > { %s3379_s4 = sld [smem:[#allocation44_spill]] }
  0xb7   : > { %s2299_s0 = scalar_lea.hbm %s3379_s4, 256 }
  0xb8   : > { %p2300_p13 = scmp.ne.s32.totalorder %s3379_s4, %s2299_s0  ;;  %p2306_p3 = scmp.lt.u32.totalorder %s2299_s0, %s3379_s4 }
  0xba   : > { %p2302_p0 = pnand %p2300_p13, %p2788_p8 }
  0xbc   : > { %p2303_p1 = pneg %p2302_p0 }
  0xbe   : > { %p2308_p2 = pnand %p2306_p3, %p2303_p1 }
  0xc0   : > { %2311 = shalt.err (!%p2308_p2)
}
  0xc1   : > { %s2312_s17 = scalar_lea.vmem %s411_s14, 256  ;;  %p2320_p4 = scmp.lt.s32.totalorder %s411_s14, %s411_s14 }
  0xc2   : > { %p2313_p5 = scmp.ne.s32.totalorder %s411_s14, %s2312_s17  ;;  %p2321_p10 = scmp.lt.s32.totalorder %s2312_s17, %s2312_s17 }
  0xc4   : > { %p2315_p7 = pnand %p2313_p5, %p2788_p8  ;;  %p2322_p11 = por %p2321_p10, %p2320_p4 }
  0xc6   : > { %p2316_p9 = pneg %p2315_p7 }
  0xc8   : > { %p2323_p12 = pnand %p2322_p11, %p2316_p9 }
  0xca   : > { %2326 = shalt.err (!%p2323_p12)
}
  0xcb   : > { %s3380_s26 = smov 64   ;;  %s2636_s24 = smov [#allocation14]  }
  0xcc   : > { %1974 = dma.hbm_to_vmem [thread:$0]  (!%p2772_p6), %s3379_s4, 256, %s411_s14, [#allocation10], %s3380_s26, %s3380_s26, %s2631_s20  }
  0xcd   : > { %s435_s18 = sshll.u32 %s2636_s24, 4  ;;  %s2637_s22 = smov [#allocation17]   ;;  %s436_s18 = int_to_ptr.vmem [resolvable:$true] %s435_s18 }
  0xce   : > { %s456_s0 = sshll.u32 %s2637_s22, 4  ;;  %s3381_s6 = sld [smem:[#allocation46_spill]]  ;;  %s457_s0 = int_to_ptr.vmem [resolvable:$true] %s456_s0 }
  0xd4   : > { %s2327_s27 = scalar_lea.hbm %s3381_s6, 16 }
  0xd5   : > { %p2328_p13 = scmp.ne.s32.totalorder %s3381_s6, %s2327_s27  ;;  %p2334_p3 = scmp.lt.u32.totalorder %s2327_s27, %s3381_s6 }
  0xd7   : > { %p2330_p0 = pnand %p2328_p13, %p2788_p8 }
  0xd9   : > { %p2331_p1 = pneg %p2330_p0 }
  0xdb   : > { %p2336_p2 = pnand %p2334_p3, %p2331_p1 }
  0xdd   : > { %2339 = shalt.err (!%p2336_p2)
}
  0xde   : > { %s2340_s14 = scalar_lea.vmem %s436_s18, 16  ;;  %s2347_s28 = scalar_lea.vmem %s436_s18, 32 }
  0xdf   : > { %p2341_p5 = scmp.ne.s32.totalorder %s436_s18, %s2340_s14  ;;  %p2348_p4 = scmp.lt.s32.totalorder %s436_s18, %s436_s18 }
  0xe0   : > { %p2349_p10 = scmp.lt.s32.totalorder %s2347_s28, %s2340_s14 }
  0xe1   : > { %p2343_p7 = pnand %p2341_p5, %p2788_p8 }
  0xe2   : > { %p2350_p11 = por %p2349_p10, %p2348_p4 }
  0xe3   : > { %p2344_p9 = pneg %p2343_p7 }
  0xe5   : > { %p2351_p12 = pnand %p2350_p11, %p2344_p9 }
  0xe7   : > { %2354 = shalt.err (!%p2351_p12)
}
  0xe8   : > { %1980 = dma.hbm_to_vmem [thread:$0]  (!%p2772_p6), %s3381_s6, 16, %s436_s18, [#allocation13]  }
  0xe9   : > { %s2355_s25 = scalar_lea.hbm %s3342_s8, 256 }
  0xea   : > { %p2356_p13 = scmp.ne.s32.totalorder %s3342_s8, %s2355_s25  ;;  %p2362_p3 = scmp.lt.u32.totalorder %s2355_s25, %s3342_s8 }
  0xec   : > { %p2358_p0 = pnand %p2356_p13, %p2788_p8 }
  0xee   : > { %p2359_p1 = pneg %p2358_p0 }
  0xf0   : > { %p2364_p2 = pnand %p2362_p3, %p2359_p1 }
  0xf2   : > { %2367 = shalt.err (!%p2364_p2)
}
  0xf3   : > { %s2368_s14 = scalar_lea.vmem %s457_s0, 256  ;;  %p2376_p4 = scmp.lt.s32.totalorder %s457_s0, %s457_s0 }
  0xf4   : > { %p2369_p5 = scmp.ne.s32.totalorder %s457_s0, %s2368_s14  ;;  %p2377_p10 = scmp.lt.s32.totalorder %s2368_s14, %s2368_s14 }
  0xf6   : > { %p2371_p7 = pnand %p2369_p5, %p2788_p8  ;;  %p2378_p11 = por %p2377_p10, %p2376_p4 }
  0xf8   : > { %p2372_p9 = pneg %p2371_p7 }
  0xfa   : > { %p2379_p12 = pnand %p2378_p11, %p2372_p9 }
  0xfc   : > { %2382 = shalt.err (!%p2379_p12)
}
  0xfd   : > { %1986 = dma.hbm_to_vmem [thread:$0]  (!%p2772_p6), %s3342_s8, 256, %s457_s0, [#allocation16], %s3380_s26, %s3380_s26, %s2631_s20  }
  0xfe   : > { %s2638_s24 = smov [#allocation20]   ;;  %s2639_s2 = smov [#allocation23]  }
  0xff   : > { %s480_s22 = sshll.u32 %s2638_s24, 4  ;;  %s505_s1 = sshll.u32 %s2639_s2, 4  ;;  %s481_s22 = int_to_ptr.vmem [resolvable:$true] %s480_s22  ;;  %s506_s1 = int_to_ptr.vmem [resolvable:$true] %s505_s1 }
 0x100   : > { %s2383_s29 = scalar_lea.hbm %s3344_s10, 512 }
 0x101   : > { %p2384_p13 = scmp.ne.s32.totalorder %s3344_s10, %s2383_s29  ;;  %p2390_p3 = scmp.lt.u32.totalorder %s2383_s29, %s3344_s10 }
 0x103   : > { %p2386_p0 = pnand %p2384_p13, %p2788_p8 }
 0x105   : > { %p2387_p1 = pneg %p2386_p0 }
 0x107   : > { %p2392_p2 = pnand %p2390_p3, %p2387_p1 }
 0x109   : > { %2395 = shalt.err (!%p2392_p2)
}
 0x10a   : > { %s2396_s0 = scalar_lea.vmem %s481_s22, 512  ;;  %p2404_p4 = scmp.lt.s32.totalorder %s481_s22, %s481_s22 }
 0x10b   : > { %p2397_p5 = scmp.ne.s32.totalorder %s481_s22, %s2396_s0  ;;  %p2405_p10 = scmp.lt.s32.totalorder %s2396_s0, %s2396_s0 }
 0x10d   : > { %p2399_p7 = pnand %p2397_p5, %p2788_p8  ;;  %p2406_p11 = por %p2405_p10, %p2404_p4 }
 0x10f   : > { %p2400_p9 = pneg %p2399_p7 }
 0x111   : > { %p2407_p12 = pnand %p2406_p11, %p2400_p9 }
 0x113   : > { %2410 = shalt.err (!%p2407_p12)
}
 0x114   : > { %1992 = dma.hbm_to_vmem [thread:$0]  (!%p2772_p6), %s3344_s10, 512, %s481_s22, [#allocation19], %s3380_s26, %s3380_s26, %s2631_s20  }
 0x115   : > { %s2411_s27 = scalar_lea.hbm %s3346_s12, 16 }
 0x116   : > { %p2412_p13 = scmp.ne.s32.totalorder %s3346_s12, %s2411_s27  ;;  %p2418_p3 = scmp.lt.u32.totalorder %s2411_s27, %s3346_s12 }
 0x118   : > { %p2414_p0 = pnand %p2412_p13, %p2788_p8 }
 0x11a   : > { %p2415_p1 = pneg %p2414_p0 }
 0x11c   : > { %p2420_p2 = pnand %p2418_p3, %p2415_p1 }
 0x11e   : > { %2423 = shalt.err (!%p2420_p2)
}
 0x11f   : > { %s2424_s18 = scalar_lea.vmem %s506_s1, 16  ;;  %s2431_s20 = scalar_lea.vmem %s506_s1, 32 }
 0x120   : > { %p2425_p5 = scmp.ne.s32.totalorder %s506_s1, %s2424_s18  ;;  %p2432_p4 = scmp.lt.s32.totalorder %s506_s1, %s506_s1 }
 0x121   : > { %p2433_p10 = scmp.lt.s32.totalorder %s2431_s20, %s2424_s18 }
 0x122   : > { %p2427_p7 = pnand %p2425_p5, %p2788_p8 }
 0x123   : > { %p2434_p11 = por %p2433_p10, %p2432_p4 }
 0x124   : > { %p2428_p9 = pneg %p2427_p7 }
 0x126   : > { %p2435_p12 = pnand %p2434_p11, %p2428_p9 }
 0x128   : > { %2438 = shalt.err (!%p2435_p12)
}
 0x129   : > { %1998 = dma.hbm_to_vmem [thread:$0]  (!%p2772_p6), %s3346_s12, 16, %s506_s1, [#allocation22]  }
 0x12a   : > { %s2640_s0 = smov [#allocation24]   ;;  %s2439_s25 = scalar_lea.hbm %s3347_s13, 16 }
 0x12b   : > { %s516_s28 = sshll.u32 %s2640_s0, 4  ;;  %p2440_p13 = scmp.ne.s32.totalorder %s3347_s13, %s2439_s25  ;;  %s517_s28 = int_to_ptr.vmem [resolvable:$true] %s516_s28 }
 0x12c   : > { %p2446_p3 = scmp.lt.u32.totalorder %s2439_s25, %s3347_s13 }
 0x12d   : > { %p2442_p0 = pnand %p2440_p13, %p2788_p8 }
 0x12f   : > { %p2443_p1 = pneg %p2442_p0 }
 0x131   : > { %p2448_p2 = pnand %p2446_p3, %p2443_p1 }
 0x133   : > { %2451 = shalt.err (!%p2448_p2)
}
 0x134   : > { %s2452_s1 = scalar_lea.vmem %s517_s28, 16  ;;  %s2459_s14 = scalar_lea.vmem %s517_s28, 32 }
 0x135   : > { %p2453_p5 = scmp.ne.s32.totalorder %s517_s28, %s2452_s1  ;;  %p2460_p4 = scmp.lt.s32.totalorder %s517_s28, %s517_s28 }
 0x136   : > { %p2461_p10 = scmp.lt.s32.totalorder %s2459_s14, %s2452_s1 }
 0x137   : > { %p2455_p7 = pnand %p2453_p5, %p2788_p8 }
 0x138   : > { %p2462_p11 = por %p2461_p10, %p2460_p4 }
 0x139   : > { %p2456_p9 = pneg %p2455_p7 }
 0x13b   : > { %p2463_p12 = pnand %p2462_p11, %p2456_p9 }
 0x13d   : > { %2466 = shalt.err (!%p2463_p12)
}
 0x13e   : > { %s3382_s21 = sld [smem:[#allocation37_spill]]  ;;  %s3383_s26 = sld [smem:[#allocation38_spill]] }
 0x13f   : > { %2001 = dma.hbm_to_vmem [thread:$0]  (!%p2772_p6), %s3347_s13, 16, %s517_s28, [#allocation25]  }
 0x140   : > { %s1723_s22 = sadd.s32 4294967294, %s2625_s16   ;;  %s3033_s23 = sadd.s32 1, %s2625_s16  }
 0x141   : > { %s43_s0 = ssub.s32 %s2625_s16, %s3033_s23  ;;  %s46_s24 = sadd.s32 1, %s2621_s15 }
 0x142   : > { %p44_p8 = scmp.eq.s32.totalorder %s43_s0, 0  ;;  %p53_p13 = scmp.ne.s32.totalorder %s2621_s15, %s2617_s30 }
 0x143   : > { %p54_p0 = scmp.eq.s32.totalorder %s2625_s16, 0  ;;  %p367_p7 = scmp.eq.s32.totalorder %s1723_s22, 1 }
 0x144   : > { %p59_p1 = scmp.ne.s32.totalorder %s2617_s30, %s3382_s21  ;;  %p3385_p2 = scmp.eq.s32.totalorder %s3383_s26, 0 }
 0x145   : > { %s3044_s2 = scalar_select %p44_p8, %s2621_s15, %s46_s24  }
 0x146   : > { %p3046_p3 = por %p54_p0, %p53_p13  ;;  %p3052_p6 = por %p3385_p2, %p59_p1 }
 0x147   : > { %p361_p5 = scmp.eq.s32.totalorder %s3383_s26, 1  ;;  %p2025_p9 = scmp.lt.s32.totalorder %s2625_s16, 2 }
 0x148   : > { %s3386_s28 = scalar_select %p3052_p6, 1, 0 }
 0x149   : > { %s3059_s27 = sand.u32 1, %s2621_s15   ;;  %p3061_p4 = por %p361_p5, %p53_p13 }
 0x14a   : > { %p3065_p10 = por %p367_p7, %p59_p1  ;;  %s1738_s19 = sshll.u32 %s3059_s27, 3 }
 0x14b   : > { %s3387_s29 = scalar_select %p3061_p4, 1, 0 }
 0x14c   : > { %s3388_s17 = scalar_select %p3065_p10, 1, 0 }
 0x14d   : > { %s1739_s1 = sshll.u32 %s2625_s16, 7  ;;  %s3389_s20 = sld [smem:[#allocation40_spill]] }
 0x14e   : > { %s531_s26 = scalar_lea.vmem [#allocation3], %s1738_s19  ;;  %p3080_p11 = pnand %p2025_p9, %p3046_p3 }
 0x14f   : > { %s538_s22 = sshll.u32 %s531_s26, 4  ;;  %s528_s3 = scalar_lea.sflag [#allocation4], %s3059_s27  ;;  %s3076_s22 = int_to_ptr.vmem [resolvable:$true] %s538_s22 }
 0x150   : > { %p2469_p8 = pneg %p3080_p11 }
 0x153   : > { %s3074_s21 = scalar_lea.hbm %s3389_s20, %s1739_s1  ;;  %s2472_s25 = scalar_lea.hbm %s3389_s20, 256 }
 0x154   : > { %s2467_s14 = scalar_lea.hbm %s3074_s21, 128  ;;  %p2473_p1 = scmp.lt.u32.totalorder %s3074_s21, %s3389_s20 }
 0x155   : > { %p2468_p12 = scmp.ne.s32.totalorder %s3074_s21, %s2467_s14  ;;  %p2474_p3 = scmp.lt.u32.totalorder %s2472_s25, %s2467_s14 }
 0x156   : > { %p2476_p5 = scmp.lt.u32.totalorder %s2467_s14, %s3074_s21 }
 0x157   : > { %p2470_p13 = pnand %p2469_p8, %p2468_p12  ;;  %p2475_p2 = por %p2474_p3, %p2473_p1 }
 0x159   : > { %p2471_p0 = pneg %p2470_p13  ;;  %p2477_p7 = por %p2476_p5, %p2475_p2 }
 0x15b   : > { %p2478_p9 = pnand %p2477_p7, %p2471_p0 }
 0x15d   : > { %2481 = shalt.err (!%p2478_p9)
}
 0x15e   : > { %s2482_s24 = scalar_lea.vmem %s3076_s22, 128  ;;  %s2641_s19 = smov [#allocation3]  }
 0x15f   : > { %p2483_p12 = scmp.ne.s32.totalorder %s3076_s22, %s2482_s24  ;;  %s2487_s1 = sshll.u32 %s2641_s19, 4  ;;  %s2488_s1 = int_to_ptr.vmem [resolvable:$false] %s2487_s1 }
 0x160   : > { %s2489_s18 = scalar_lea.vmem %s2488_s1, 256  ;;  %p2490_p4 = scmp.lt.s32.totalorder %s3076_s22, %s2488_s1 }
 0x161   : > { %p2485_p13 = pnand %p2483_p12, %p2469_p8  ;;  %p2491_p1 = scmp.lt.s32.totalorder %s2489_s18, %s2482_s24 }
 0x163   : > { %p2486_p10 = pneg %p2485_p13  ;;  %p2492_p3 = por %p2491_p1, %p2490_p4 }
 0x165   : > { %p2493_p2 = pnand %p2492_p3, %p2486_p10 }
 0x167   : > { %2496 = shalt.err (!%p2493_p2)
}
 0x168   : > { %2005 = dma.hbm_to_vmem [thread:$0]  (!%p3080_p11), %s3074_s21, 128, %s3076_s22, %s528_s3  }
 0x169   : > { %s1740_s14 = sshll.u32 %s2625_s16, 4  ;;  %s548_s25 = scalar_lea.vmem [#allocation6], %s3059_s27 }
 0x16a   : > { %s555_s26 = sshll.u32 %s548_s25, 4  ;;  %s3391_s5 = sld [smem:[#allocation41_spill]]  ;;  %s556_s26 = int_to_ptr.vmem [resolvable:$true] %s555_s26 }
 0x16b   : > { %s3392_s24 = sand.u32 1, %s2625_s16  }
 0x16c   : > { %s546_s18 = scalar_lea.sflag [#allocation7], %s3392_s24 }
 0x170   : > { %s3116_s1 = scalar_lea.hbm %s3391_s5, %s1740_s14  ;;  %s2502_s21 = scalar_lea.hbm %s3391_s5, 32 }
 0x171   : > { %s2497_s6 = scalar_lea.hbm %s3116_s1, 16  ;;  %p2503_p5 = scmp.lt.u32.totalorder %s3116_s1, %s3391_s5 }
 0x172   : > { %p2498_p4 = scmp.ne.s32.totalorder %s3116_s1, %s2497_s6  ;;  %p2504_p7 = scmp.lt.u32.totalorder %s2502_s21, %s2497_s6 }
 0x173   : > { %p2506_p12 = scmp.lt.u32.totalorder %s2497_s6, %s3116_s1 }
 0x174   : > { %p2500_p10 = pnand %p2498_p4, %p2469_p8  ;;  %p2505_p9 = por %p2504_p7, %p2503_p5 }
 0x176   : > { %p2501_p0 = pneg %p2500_p10  ;;  %p2507_p13 = por %p2506_p12, %p2505_p9 }
 0x178   : > { %p2508_p1 = pnand %p2507_p13, %p2501_p0 }
 0x17a   : > { %2511 = shalt.err (!%p2508_p1)
}
 0x17b   : > { %s2512_s14 = scalar_lea.vmem %s556_s26, 16  ;;  %s2642_s25 = smov [#allocation6]  }
 0x17c   : > { %p2513_p3 = scmp.ne.s32.totalorder %s556_s26, %s2512_s14  ;;  %s2517_s19 = sshll.u32 %s2642_s25, 4  ;;  %s2518_s19 = int_to_ptr.vmem [resolvable:$false] %s2517_s19 }
 0x17d   : > { %s2519_s24 = scalar_lea.vmem %s2518_s19, 32  ;;  %p2520_p10 = scmp.lt.s32.totalorder %s556_s26, %s2518_s19 }
 0x17e   : > { %p2515_p2 = pnand %p2513_p3, %p2469_p8  ;;  %p2521_p6 = scmp.lt.s32.totalorder %s2519_s24, %s2512_s14 }
 0x180   : > { %p2516_p4 = pneg %p2515_p2  ;;  %p2522_p5 = por %p2521_p6, %p2520_p10 }
 0x182   : > { %p2523_p7 = pnand %p2522_p5, %p2516_p4 }
 0x184   : > { %2526 = shalt.err (!%p2523_p7)
}
 0x185   : > { %2008 = dma.hbm_to_vmem [thread:$0]  (!%p3080_p11), %s3116_s1, 16, %s556_s26, %s546_s18  }
 0x186   : > { %s3393_s6 = sld [smem:[#allocation39_spill]] }
 0x18c   : > { %p3394_p0 = scmp.ne.s32.totalorder %s3393_s6, 0 }
 0x18d   : > { %s3142_s3 = sand.u32 (!%p3394_p0), 1, %s2617_s30   ;;  %p3395_p6 = scmp.ne.s32.totalorder (!%p3394_p0), %s3386_s28, 0 }
 0x18e   : > { %564 = sbr.rel (%p3394_p0) target bundleno = 3007 (0xbbf), region = 76  ;;  %s1742_s27 = sshll.u32 (!%p3394_p0), %s3142_s3, 3 }
 0x18f   : > { %s567_s21 = scalar_lea.sflag (!%p3394_p0), [#allocation4], %s3142_s3  ;;  %s3148_s4 = scalar_lea.vmem (!%p3394_p0), [#allocation3], %s1742_s27 }
 0x195   : > { %2572 = dma.done.wait (%p3395_p6), %s567_s21, 128  }
 0x196   : > { %2574 = vsyncadd (%p3395_p6), %s567_s21, 4294967168  ;;  %s3396_s0 = sld [smem:[#allocation38_spill]]  ;;  %s578_s18 = scalar_lea.vmem [#allocation6], %s3142_s3 }
 0x19c   : > { %s575_s26 = sand.u32 1, %s3396_s0  }
 0x19d   : > { %s576_s1 = scalar_lea.sflag [#allocation7], %s575_s26 }
 0x19e   : > { %2576 = dma.done.wait (%p3395_p6), %s576_s1, 16  }
 0x19f   : > { %2578 = vsyncadd (%p3395_p6), %s576_s1, 4294967280  ;;  %p3397_p11 = scmp.eq.s32.totalorder %s3396_s0, 0 }
 0x1a1   : > { %2580 = dma.done.wait (%p3397_p11), [#allocation7], 256   ;;  %p3398_p8 = pmov %p3397_p11 }
 0x1a3   : > { %2582 = vsyncadd (%p3398_p8), [#allocation7], 4294967040  ;;  %p3399_p9 = pmov %p3398_p8 }
 0x1a4   : > { %p3400_p12 = pmov %p3398_p8 }
 0x1a5   : > { %2584 = dma.done.wait (%p3399_p9), [#allocation10], 272  }
 0x1a6   : > { %2586 = vsyncadd (%p3400_p12), [#allocation10], 4294967024  ;;  %p3401_p13 = pmov %p3398_p8 }
 0x1a7   : > { %p3402_p1 = pmov %p3398_p8 }
 0x1a8   : > { %2588 = dma.done.wait (%p3401_p13), [#allocation13], 32  }
 0x1a9   : > { %2590 = vsyncadd (%p3402_p1), [#allocation13], 4294967264  ;;  %p3403_p3 = pmov %p3402_p1 }
 0x1aa   : > { %p3404_p2 = pmov %p3402_p1 }
 0x1ab   : > { %2592 = dma.done.wait (%p3403_p3), [#allocation16], 272  }
 0x1ac   : > { %2594 = vsyncadd (%p3404_p2), [#allocation16], 4294967024  ;;  %p3405_p4 = pmov %p3402_p1 }
 0x1ad   : > { %p3406_p10 = pmov %p3402_p1 }
 0x1ae   : > { %2596 = dma.done.wait (%p3405_p4), [#allocation19], 528  }
 0x1af   : > { %2598 = vsyncadd (%p3406_p10), [#allocation19], 4294966768  ;;  %p3407_p5 = pmov %p3402_p1 }
 0x1b0   : > { %p3408_p7 = pmov %p3402_p1 }
 0x1b1   : > { %2600 = dma.done.wait (%p3407_p5), [#allocation22], 32  }
 0x1b2   : > { %2602 = vsyncadd (%p3408_p7), [#allocation22], 4294967264  ;;  %p3409_p0 = pmov %p3402_p1 }
 0x1b4   : > { %2604 = dma.done.wait (%p3409_p0), [#allocation25], 16   ;;  %p3410_p6 = pmov %p3409_p0 }
 0x1b5   : > { %v2643_v0 = vmov 0.0   ;;  %vm2644_vm0 = vmmov 0   ;;  %v2101_v1 = vld [vmem:[#allocation8] sm:$0xff]   ;;  %v2102_v2 = vld [vmem:[#allocation8 + $0x8] sm:$0xff]   ;;  %vm701_vm1 = vcmask 261120   ;;  %s2645_s28 = smov 120  }
 0x1b6   : > { %2606 = vsyncadd (%p3410_p6), [#allocation25], 4294967280  ;;  %1827 = vmatprep.subr.bf16.mxu0 %v2643_v0  ;;  %1831 = vmatprep.mubr.msk.bf16.mxu0 %vm2644_vm0, %v2643_v0  ;;  %v3195_v3 = vld [vmem:[%s3148_s4] sm:$0xff]  ;;  %s2646_s22 = smov 96   ;;  %s2647_s14 = smov 80   ;;  %vm756_vm2 = vcmask 64512  }
 0x1b7   : > { %1835 = vmatprep.subr.bf16.mxu1 %v2643_v0  ;;  %1837 = vmatprep.mubr.msk.bf16.mxu1 %vm2644_vm0, %v2643_v0  ;;  %v677_v4 = vpack.c.bf16 %v3195_v3, %v3195_v3  ;;  %v1756_v5 = vld [vmem:[#allocation9] ss:$0 sm:$0xff]  ;;  %s2648_s25 = smov 88   ;;  %s2649_s19 = smov 72   ;;  %v1760_v23 = vld [vmem:[%s578_s18] ss:$0 sm:$0xff] }
 0x1b8   : > { %1828 = vmatpush3.bf16.msra.mxu0 %v2101_v1  ;;  %s2650_s24 = smov 112   ;;  %s2651_s6 = smov 104   ;;  %vm820_vm3 = vcmask 1043456   ;;  %vm865_vm4 = vcmask 60416   ;;  %vm984_vm5 = vcmask 126016   ;;  %vm1103_vm6 = vcmask 191616  }
 0x1b9   : > { %1829 = vmatprep.subr.bf16.mxu0 %v2643_v0  ;;  %s2652_s21 = smov 56   ;;  %s2653_s4 = smov 64   ;;  %vm1222_vm7 = vcmask 257216   ;;  %vm1430_vm8 = vcmask 523264  }
 0x1ba   : > { %s2654_s26 = smov 40   ;;  %s2655_s1 = smov 48  }
 0x1bb   : > { %s2656_s18 = smov 8   ;;  %p3412_p8 = scmp.ne.s32.totalorder %s3387_s29, 0 }
 0x1bc   : > { %1830 = vmatpush3.bf16.msra.mxu0 %v2102_v2 }
 0x1bd   : > { %1841 = vmatprep.subr.bf16.mxu0 %v2643_v0 }
 0x1bf   : > { %1832 = vmatmul.mubr.msk.bf16.vlgmr.msra.gmra.mrb[0].mxu0 %vm701_vm1, %v677_v4 }
 0x1c0   : > { %1843 = vmatprep.mubr.msk.bf16.mxu0 %vm2644_vm0, %v2643_v0 }
 0x292   : > { %v739_v6 = vpop.f32.mrb[0].mxu0 }
 0x293   : > { %v740_v7 = vadd.f32 %v1756_v5, %v739_v6  ;;  %v1833_v8 = vpop.f32.mrb[1].mxu0 }
 0x294   : > { %v742_v9 = vpop.f32.mrb[2].mxu0 }
 0x295   : > { %v3204_v10 = vpack.c.bf16 %v740_v7, %v740_v7  ;;  %v1834_v11 = vpop.f32.mrb[3].mxu0 }
 0x297   : > { %867 = vrot.lane.b32.xlu1 %v3204_v10, %s2645_s28  ;;  %754 = vrot.lane.b32.xlu0 %v3204_v10, %s2646_s22  ;;  %s2657_s28 = smov 16   ;;  %s2658_s22 = smov 24  }
 0x29b   : > { %988 = vrot.lane.b32.xlu1 %v3204_v10, %s2647_s14  ;;  %869 = vrot.lane.b32.xlu0 %v3204_v10, %s2648_s25  ;;  %s1791_s14 = sshll.u32 %s3396_s0, 7  ;;  %s674_s25 = scalar_lea.vmem [#allocation26], %s1742_s27 }
 0x29c   : > { %s2659_s27 = smov [#allocation26]  }
 0x29d   : > { %s2531_s0 = sshll.u32 %s2659_s27, 4  ;;  %s2532_s0 = int_to_ptr.vmem [resolvable:$false] %s2531_s0 }
 0x29f   : > { %1107 = vrot.lane.b32.xlu1 %v3204_v10, %s2649_s19  ;;  %986 = vrot.lane.b32.xlu0 %v3204_v10, %s2650_s24  ;;  %s1519_s19 = sshll.u32 %s674_s25, 4  ;;  %s3291_s19 = int_to_ptr.vmem [resolvable:$true] %s1519_s19 }
 0x2a0   : > { %p2534_p13 = scmp.lt.s32.totalorder %s3291_s19, %s2532_s0 }
 0x2a3   : > { %1105 = vrot.lane.b32.xlu0 %v3204_v10, %s2651_s6 }
 0x309   : > { %v755_v12 = vpop.permute.xlu0 %754  ;;  %v868_v15 = vpop.permute.xlu1 %867 }
 0x30a   : > { %v761_v13 = vsel %vm756_vm2, %v755_v12, 0 }
 0x30b   : > { %1836 = vmatpush3.bf16.xpose.msra.mxu1 %v761_v13 }
 0x30c   : > { %1847 = vmatprep.subr.bf16.mxu1 %v2643_v0 }
 0x30d   : > { %v870_v14 = vpop.permute.xlu0 %869  ;;  %v989_v17 = vpop.permute.xlu1 %988 }
 0x30e   : > { %v875_v16 = vsel %vm756_vm2, %v870_v14, 0  ;;  %v994_v18 = vsel %vm756_vm2, %v989_v17, 0 }
 0x311   : > { %v1108_v19 = vpop.permute.xlu1 %1107  ;;  %v987_v20 = vpop.permute.xlu0 %986 }
 0x312   : > { %1838 = vmatmul.mubr.msk.bf16.vlgmr.msra.gmra.mrb[0].mxu1 %vm756_vm2, %v3204_v10  ;;  %v1113_v21 = vsel %vm756_vm2, %v1108_v19, 0 }
 0x313   : > { %1848 = vmatpush3.bf16.xpose.msra.mxu1 %v875_v16  ;;  %1849 = vmatprep.mubr.msk.bf16.mxu1 %vm2644_vm0, %v2643_v0 }
 0x314   : > { %1859 = vmatprep.subr.bf16.mxu1 %v2643_v0 }
 0x315   : > { %v1106_v22 = vpop.permute.xlu0 %1105 }
 0x31a   : > { %1850 = vmatmul.mubr.msk.bf16.vlgmr.msra.gmra.mrb[4].mxu1 %vm756_vm2, %v868_v15 }
 0x31b   : > { %1860 = vmatpush3.bf16.xpose.msra.mxu1 %v994_v18  ;;  %1861 = vmatprep.mubr.msk.bf16.mxu1 %vm2644_vm0, %v2643_v0 }
 0x31c   : > { %1871 = vmatprep.subr.bf16.mxu1 %v2643_v0 }
 0x322   : > { %1862 = vmatmul.mubr.msk.bf16.vlgmr.msra.gmra.mrb[8].mxu1 %vm756_vm2, %v987_v20 }
 0x323   : > { %1872 = vmatpush3.bf16.xpose.msra.mxu1 %v1113_v21  ;;  %1873 = vmatprep.mubr.msk.bf16.mxu1 %vm2644_vm0, %v2643_v0 }
 0x324   : > { %1883 = vmatprep.subr.bf16.mxu1 %v2643_v0 }
 0x32a   : > { %1874 = vmatmul.mubr.msk.bf16.vlgmr.msra.gmra.mrb[12].mxu1 %vm756_vm2, %v1106_v22 }
 0x32b   : > { %1887 = vmatprep.mubr.msk.bf16.mxu1 %vm2644_vm0, %v2643_v0 }
 0x3e5   : > { %v797_v24 = vpop.f32.mrb[0].mxu1 }
 0x3e6   : > { %v798_v25 = vadd.f32 %v1760_v23, %v797_v24  ;;  %v1839_v26 = vpop.f32.mrb[1].mxu1 }
 0x3e7   : > { %v800_v27 = vpop.f32.mrb[2].mxu1 }
 0x3e8   : > { %v1840_v28 = vpop.f32.mrb[3].mxu1  ;;  %v803_v29 = vsel %vm756_vm2, %v798_v25, -inf }
 0x3e9   : > { %804 = vmax.xlane.f32.xlu1 %v803_v29 }
 0x3ed   : > { %v911_v30 = vpop.f32.mrb[4].mxu1 }
 0x3ee   : > { %v912_v31 = vadd.f32 %v1760_v23, %v911_v30  ;;  %v1851_v32 = vpop.f32.mrb[5].mxu1 }
 0x3ef   : > { %v914_v33 = vpop.f32.mrb[6].mxu1 }
 0x3f0   : > { %v1852_v34 = vpop.f32.mrb[7].mxu1  ;;  %v917_v35 = vsel %vm756_vm2, %v912_v31, -inf }
 0x3f1   : > { %918 = vmax.xlane.f32.xlu0 %v917_v35 }
 0x3f5   : > { %v1030_v36 = vpop.f32.mrb[8].mxu1 }
 0x3f6   : > { %v1031_v37 = vadd.f32 %v1760_v23, %v1030_v36  ;;  %v1863_v38 = vpop.f32.mrb[9].mxu1 }
 0x3f7   : > { %v1033_v39 = vpop.f32.mrb[10].mxu1 }
 0x3f8   : > { %v1864_v40 = vpop.f32.mrb[11].mxu1  ;;  %v1036_v41 = vsel %vm756_vm2, %v1031_v37, -inf }
 0x3f9   : > { %1037 = vmax.xlane.f32.xlu0 %v1036_v41  ;;  %v2103_v40 = vld [vmem:[#allocation11] sm:$0xff]   ;;  %v2104_v41 = vld [vmem:[#allocation11 + $0x8] sm:$0xff]  }
 0x3fa   : > { %1884 = vmatpush3.bf16.msra.mxu1 %v2103_v40 }
 0x3fb   : > { %1885 = vmatprep.subr.bf16.mxu1 %v2643_v0 }
 0x3fd   : > { %v1149_v42 = vpop.f32.mrb[12].mxu1 }
 0x3fe   : > { %v1150_v43 = vadd.f32 %v1760_v23, %v1149_v42  ;;  %v1875_v44 = vpop.f32.mrb[13].mxu1  ;;  %1886 = vmatpush3.bf16.msra.mxu1 %v2104_v41 }
 0x3ff   : > { %v1152_v45 = vpop.f32.mrb[14].mxu1  ;;  %1899 = vmatprep.subr.bf16.mxu1 %v2643_v0 }
 0x400   : > { %v1876_v46 = vpop.f32.mrb[15].mxu1  ;;  %v1155_v47 = vsel %vm756_vm2, %v1150_v43, -inf }
 0x401   : > { %1156 = vmax.xlane.f32.xlu1 %v1155_v47 }
 0x476   : > { %v805_v48 = vpop.xlane.xlu1 %804 }
 0x477   : > { %v806_v49 = vsub.f32 %v798_v25, %v805_v48 }
 0x479   : > { %v807_v50 = vmul.f32 1.442695, %v806_v49 }
 0x47b   : > { %2111 = vpow2.f32 %v807_v50 }
 0x47e   : > { %v919_v51 = vpop.xlane.xlu0 %918 }
 0x47f   : > { %v920_v52 = vsub.f32 %v912_v31, %v919_v51 }
 0x481   : > { %v921_v53 = vmul.f32 1.442695, %v920_v52 }
 0x483   : > { %2113 = vpow2.f32 %v921_v53 }
 0x485   : > { %v2112_v54 = vpop.eup %2111 }
 0x486   : > { %v1038_v55 = vpop.xlane.xlu0 %1037  ;;  %v809_v56 = vsel %vm756_vm2, %v2112_v54, 0.0 }
 0x487   : > { %v1039_v57 = vsub.f32 %v1031_v37, %v1038_v55  ;;  %810 = vadd.xlane.f32.xlu0 %v809_v56  ;;  %v1772_v56 = vld [vmem:[#allocation12] ss:$0 sm:$0xff] }
 0x489   : > { %v1040_v58 = vmul.f32 1.442695, %v1039_v57 }
 0x48b   : > { %2115 = vpow2.f32 %v1040_v58 }
 0x48d   : > { %v2114_v59 = vpop.eup %2113 }
 0x48e   : > { %v923_v60 = vsel %vm756_vm2, %v2114_v59, 0.0  ;;  %v1157_v63 = vpop.xlane.xlu1 %1156 }
 0x48f   : > { %924 = vadd.xlane.f32.xlu1 %v923_v60  ;;  %v1158_v1 = vsub.f32 %v1150_v43, %v1157_v63 }
 0x491   : > { %v1159_v2 = vmul.f32 1.442695, %v1158_v1 }
 0x493   : > { %2117 = vpow2.f32 %v1159_v2 }
 0x495   : > { %v2116_v61 = vpop.eup %2115 }
 0x496   : > { %v1042_v62 = vsel %vm756_vm2, %v2116_v61, 0.0 }
 0x497   : > { %1043 = vadd.xlane.f32.xlu0 %v1042_v62 }
 0x49d   : > { %v2118_v4 = vpop.eup %2117 }
 0x49e   : > { %v1161_v5 = vsel %vm756_vm2, %v2118_v4, 0.0 }
 0x4a0   : > { %929 = vrot.lane.b32.xlu1 %v3204_v10, %s2652_s21  ;;  %s3411_s21 = sld [smem:[#allocation47_spill]] }
 0x4ad   : > { %815 = vrot.lane.b32.xlu0 %v3204_v10, %s2653_s4  ;;  %s3289_s4 = scalar_lea.hbm %s3411_s21, %s1791_s14 }
 0x4b1   : > { %1167 = vrot.lane.b32.xlu0 %v3204_v10, %s2654_s26  ;;  %s1506_s26 = scalar_lea.sflag [#allocation5], %s3142_s3 }
 0x4c4   : > { %1162 = vadd.xlane.f32.xlu1 %v1161_v5 }
 0x4d5   : > { %1048 = vrot.lane.b32.xlu1 %v3204_v10, %s2655_s1  ;;  %s2527_s1 = scalar_lea.vmem %s3291_s19, 128 }
 0x4d6   : > { %p2528_p11 = scmp.ne.s32.totalorder %s3291_s19, %s2527_s1 }
 0x4d8   : > { %p2529_p9 = pnand %p2528_p11, %p3412_p8 }
 0x4da   : > { %p2530_p12 = pneg %p2529_p9 }
 0x514   : > { %v811_v6 = vpop.xlane.xlu0 %810 }
 0x515   : > { %2119 = vrcp.f32 %v811_v6 }
 0x51c   : > { %v925_v7 = vpop.xlane.xlu1 %924 }
 0x51d   : > { %2121 = vrcp.f32 %v925_v7  ;;  %v2105_v7 = vld [vmem:[#allocation17] sm:$0xff]  }
 0x51f   : > { %v2120_v8 = vpop.eup %2119 }
 0x520   : > { %v813_v11 = vmul.f32 %v2120_v8, %v2112_v54  ;;  %v930_v14 = vpop.permute.xlu1 %929  ;;  %v2106_v8 = vld [vmem:[#allocation17 + $0x8] sm:$0xff]  }
 0x521   : > { %v935_v17 = vsel %vm820_vm3, %v930_v14, 0 }
 0x522   : > { %v814_v15 = vpack.c.bf16 %v813_v11, %v813_v11  ;;  %v2108_v11 = vld [vmem:[#allocation20 + $0x8] sm:$0xff]  }
 0x524   : > { %v1044_v9 = vpop.xlane.xlu0 %1043 }
 0x525   : > { %2123 = vrcp.f32 %v1044_v9  ;;  %v2107_v9 = vld [vmem:[#allocation20] sm:$0xff]  }
 0x527   : > { %v2122_v16 = vpop.eup %2121 }
 0x528   : > { %v816_v12 = vpop.permute.xlu0 %815  ;;  %v927_v10 = vmul.f32 %v2122_v16, %v2114_v59 }
 0x529   : > { %v822_v13 = vsel %vm820_vm3, %v816_v12, 0 }
 0x52a   : > { %1842 = vmatpush3.bf16.msra.mxu0 %v822_v13  ;;  %v928_v18 = vpack.c.bf16 %v927_v10, %v927_v10 }
 0x52b   : > { %1853 = vmatprep.subr.bf16.mxu0 %v2643_v0 }
 0x52c   : > { %v1168_v24 = vpop.permute.xlu0 %1167 }
 0x52d   : > { %1844 = vmatmul.mubr.msk.bf16.vlgmr.msra.gmra.mrb[4].mxu0 %vm756_vm2, %v814_v15  ;;  %v1173_v26 = vsel %vm820_vm3, %v1168_v24, 0  ;;  %v1776_v15 = vld [vmem:[#allocation14] ss:$0 sm:$0xff] }
 0x52e   : > { %1854 = vmatpush3.bf16.msra.mxu0 %v935_v17  ;;  %1855 = vmatprep.mubr.msk.bf16.mxu0 %vm2644_vm0, %v2643_v0  ;;  %v1777_v17 = vld [vmem:[#allocation15] ss:$0 sm:$0xff] }
 0x52f   : > { %1865 = vmatprep.subr.bf16.mxu0 %v2643_v0  ;;  %v2124_v19 = vpop.eup %2123 }
 0x530   : > { %v1046_v21 = vmul.f32 %v2124_v19, %v2116_v61 }
 0x532   : > { %v1047_v25 = vpack.c.bf16 %v1046_v21, %v1046_v21  ;;  %v2110_v21 = vld [vmem:[#allocation20 + $0x18] sm:$0xff]  }
 0x535   : > { %1856 = vmatmul.mubr.msk.bf16.vlgmr.msra.gmra.mrb[8].mxu0 %vm756_vm2, %v928_v18 }
 0x536   : > { %1867 = vmatprep.mubr.msk.bf16.mxu0 %vm2644_vm0, %v2643_v0 }
 0x551   : > { %v1163_v20 = vpop.xlane.xlu1 %1162 }
 0x552   : > { %2125 = vrcp.f32 %v1163_v20  ;;  %v2109_v20 = vld [vmem:[#allocation20 + $0x10] sm:$0xff]  }
 0x555   : > { %v1049_v22 = vpop.permute.xlu1 %1048 }
 0x556   : > { %v1054_v23 = vsel %vm820_vm3, %v1049_v22, 0  ;;  %v1778_v22 = vld [vmem:[#allocation18] ss:$0 sm:$0xff] }
 0x557   : > { %1866 = vmatpush3.bf16.msra.mxu0 %v1054_v23 }
 0x558   : > { %1877 = vmatprep.subr.bf16.mxu0 %v2643_v0 }
 0x55a   : > { %1868 = vmatmul.mubr.msk.bf16.vlgmr.msra.gmra.mrb[12].mxu0 %vm756_vm2, %v1047_v25 }
 0x55b   : > { %1878 = vmatpush3.bf16.msra.mxu0 %v1173_v26  ;;  %1879 = vmatprep.mubr.msk.bf16.mxu0 %vm2644_vm0, %v2643_v0 }
 0x55c   : > { %v2126_v27 = vpop.eup %2125  ;;  %1891 = vmatprep.subr.bf16.mxu0 %v2643_v0 }
 0x55d   : > { %v1165_v28 = vmul.f32 %v2126_v27, %v2118_v4 }
 0x55f   : > { %v1166_v29 = vpack.c.bf16 %v1165_v28, %v1165_v28 }
 0x562   : > { %1880 = vmatmul.mubr.msk.bf16.vlgmr.msra.gmra.mrb[16].mxu0 %vm756_vm2, %v1166_v29 }
 0x563   : > { %1895 = vmatprep.mubr.msk.bf16.mxu0 %vm2644_vm0, %v2643_v0  ;;  %1892 = vmatpush3.bf16.msra.mxu0 %v2105_v7 }
 0x564   : > { %1893 = vmatprep.subr.bf16.mxu0 %v2643_v0 }
 0x567   : > { %1894 = vmatpush3.bf16.msra.mxu0 %v2106_v8 }
 0x600   : > { %v858_v30 = vpop.f32.mrb[4].mxu0 }
 0x601   : > { %v864_v31 = vpack.c.bf16 %v858_v30, %v858_v30  ;;  %v1845_v32 = vpop.f32.mrb[5].mxu0  ;;  %v1782_v30 = vld [vmem:[#allocation21] ss:$0 sm:$0xff] }
 0x602   : > { %v861_v33 = vpop.f32.mrb[6].mxu0 }
 0x603   : > { %866 = vst.msk [vmem:[#allocation2] sm:$0xf] %vm865_vm4, %v864_v31  ;;  %v1846_v34 = vpop.f32.mrb[7].mxu0 }
 0x608   : > { %v971_v35 = vpop.f32.mrb[8].mxu0 }
 0x609   : > { %v1794_v36 = vpack.c.bf16 %v971_v35, %v971_v35  ;;  %v1857_v37 = vpop.f32.mrb[9].mxu0 }
 0x60a   : > { %v974_v38 = vpop.f32.mrb[10].mxu0 }
 0x60b   : > { %981 = vrot.lane.b32.xlu1 %v1794_v36, %s2656_s18  ;;  %v1858_v39 = vpop.f32.mrb[11].mxu0  ;;  %s2533_s18 = scalar_lea.vmem %s2532_s0, 256 }
 0x60c   : > { %p2535_p1 = scmp.lt.s32.totalorder %s2533_s18, %s2527_s1 }
 0x60e   : > { %p2536_p3 = por %p2535_p1, %p2534_p13 }
 0x610   : > { %p2537_p2 = pnand %p2536_p3, %p2530_p12 }
 0x62d   : > { %v1090_v42 = vpop.f32.mrb[12].mxu0 }
 0x62e   : > { %v1795_v43 = vpack.c.bf16 %v1090_v42, %v1090_v42  ;;  %v1869_v44 = vpop.f32.mrb[13].mxu0 }
 0x62f   : > { %v1093_v45 = vpop.f32.mrb[14].mxu0 }
 0x630   : > { %1100 = vrot.lane.b32.xlu0 %v1795_v43, %s2657_s28  ;;  %v1870_v46 = vpop.f32.mrb[15].mxu0 }
 0x631   : > { %v1788_v46 = vld [vmem:[#allocation23] ss:$0 sm:$0xff] }
 0x635   : > { %v1209_v47 = vpop.f32.mrb[16].mxu0 }
 0x636   : > { %v1796_v48 = vpack.c.bf16 %v1209_v47, %v1209_v47  ;;  %v1881_v49 = vpop.f32.mrb[17].mxu0 }
 0x637   : > { %v1212_v50 = vpop.f32.mrb[18].mxu0 }
 0x638   : > { %1219 = vrot.lane.b32.xlu1 %v1796_v48, %s2658_s22  ;;  %v1882_v51 = vpop.f32.mrb[19].mxu0  ;;  %v1789_v48 = vld [vmem:[#allocation24] ss:$0 sm:$0xff] }
 0x67d   : > { %v982_v52 = vpop.permute.xlu1 %981 }
 0x67e   : > { %985 = vst.msk [vmem:[#allocation2] sm:$0xf] %vm984_vm5, %v982_v52 }
 0x6a2   : > { %v1101_v53 = vpop.permute.xlu0 %1100 }
 0x6a3   : > { %1104 = vst.msk [vmem:[#allocation2] sm:$0xf] %vm1103_vm6, %v1101_v53 }
 0x6aa   : > { %v1220_v54 = vpop.permute.xlu1 %1219 }
 0x6ab   : > { %1223 = vst.msk [vmem:[#allocation2] sm:$0xf] %vm1222_vm7, %v1220_v54 }
 0x6b2   : > { %v1224_v55 = vld [vmem:[#allocation2] sm:$0xf] }
 0x6b3   : > { %1888 = vmatmul.mubr.msk.bf16.vlgmr.msra.gmra.mrb[16].mxu1 %vm701_vm1, %v1224_v55 }
 0x6b4   : > { %1907 = vmatprep.mubr.msk.bf16.mxu1 %vm2644_vm0, %v2643_v0  ;;  %1900 = vmatpush3.bf16.msra.mxu1 %v2107_v9 }
 0x6b5   : > { %1901 = vmatprep.subr.bf16.mxu1 %v2643_v0 }
 0x6b8   : > { %1902 = vmatpush3.bf16.msra.mxu1 %v2108_v11 }
 0x6b9   : > { %1903 = vmatprep.subr.bf16.mxu1 %v2643_v0 }
 0x6bc   : > { %1904 = vmatpush3.bf16.msra.mxu1 %v2109_v20 }
 0x6bd   : > { %1905 = vmatprep.subr.bf16.mxu1 %v2643_v0 }
 0x6c0   : > { %1906 = vmatpush3.bf16.msra.mxu1 %v2110_v21 }
 0x786   : > { %v1285_v57 = vpop.f32.mrb[16].mxu1 }
 0x787   : > { %v1286_v58 = vadd.f32 %v1772_v56, %v1285_v57  ;;  %v1889_v59 = vpop.f32.mrb[17].mxu1 }
 0x788   : > { %v1288_v60 = vpop.f32.mrb[18].mxu1 }
 0x789   : > { %v1890_v61 = vpop.f32.mrb[19].mxu1  ;;  %v1291_v62 = vadd.f32 %v1286_v58, %v3195_v3 }
 0x78b   : > { %v1292_v63 = vsel %vm701_vm1, %v1291_v62, 0.0 }
 0x78c   : > { %1293 = vadd.xlane.f32.xlu0 %v1292_v63 }
 0x819   : > { %v1294_v1 = vpop.xlane.xlu0 %1293 }
 0x81a   : > { %v1296_v2 = vmul.f32 0.03125, %v1294_v1 }
 0x81c   : > { %v1297_v4 = vsub.f32 %v1291_v62, %v1296_v2 }
 0x81e   : > { %v1298_v5 = vmul.f32 %v1297_v4, %v1297_v4 }
 0x820   : > { %v1299_v6 = vsel %vm701_vm1, %v1298_v5, 0.0 }
 0x821   : > { %1300 = vadd.xlane.f32.xlu1 %v1299_v6 }
 0x8ae   : > { %v1301_v3 = vpop.xlane.xlu1 %1300 }
 0x8af   : > { %v1302_v12 = vmul.f32 0.03125, %v1301_v3 }
 0x8b1   : > { %v1303_v13 = vadd.f32 1e-05, %v1302_v12 }
 0x8b3   : > { %2127 = vrsqrt.f32 %v1303_v13 }
 0x8bd   : > { %v2128_v14 = vpop.eup %2127 }
 0x8be   : > { %v1305_v16 = vmul.f32 %v2128_v14, %v1297_v4 }
 0x8c0   : > { %v1313_v10 = vmul.f32 %v1776_v15, %v1305_v16 }
 0x8c2   : > { %v1321_v18 = vadd.f32 %v1777_v17, %v1313_v10 }
 0x8c4   : > { %v1322_v19 = vpack.c.bf16 %v1321_v18, %v1321_v18 }
 0x8c6   : > { %1896 = vmatmul.mubr.msk.bf16.vlgmr.msra.gmra.mrb[20].mxu0 %vm701_vm1, %v1322_v19 }
 0x999   : > { %v1383_v23 = vpop.f32.mrb[20].mxu0 }
 0x99a   : > { %v1384_v24 = vadd.f32 %v1778_v22, %v1383_v23  ;;  %v1897_v25 = vpop.f32.mrb[21].mxu0 }
 0x99b   : > { %v1386_v26 = vpop.f32.mrb[22].mxu0 }
 0x99c   : > { %v1389_v27 = vmax.f32 %v1384_v24, 0.0  ;;  %v1898_v28 = vpop.f32.mrb[23].mxu0 }
 0x99e   : > { %v1390_v29 = vpack.c.bf16 %v1389_v27, %v1389_v27 }
 0x9a0   : > { %1908 = vmatmul.mubr.msk.bf16.vlgmr.msra.gmra.mrb[20].mxu1 %vm1430_vm8, %v1390_v29 }
 0xa73   : > { %v1468_v31 = vpop.f32.mrb[20].mxu1 }
 0xa74   : > { %v1469_v32 = vadd.f32 %v1782_v30, %v1468_v31  ;;  %v1909_v33 = vpop.f32.mrb[21].mxu1 }
 0xa75   : > { %v1471_v34 = vpop.f32.mrb[22].mxu1 }
 0xa76   : > { %v1910_v35 = vpop.f32.mrb[23].mxu1  ;;  %v1474_v36 = vadd.f32 %v1469_v32, %v1321_v18 }
 0xa78   : > { %v1475_v0 = vsel %vm701_vm1, %v1474_v36, 0.0 }
 0xa79   : > { %1476 = vadd.xlane.f32.xlu0 %v1475_v0 }
 0xb06   : > { %v1477_v37 = vpop.xlane.xlu0 %1476 }
 0xb07   : > { %v1478_v38 = vmul.f32 0.03125, %v1477_v37 }
 0xb09   : > { %v1479_v39 = vsub.f32 %v1474_v36, %v1478_v38 }
 0xb0b   : > { %v1480_v40 = vmul.f32 %v1479_v39, %v1479_v39 }
 0xb0d   : > { %v1481_v41 = vsel %vm701_vm1, %v1480_v40, 0.0 }
 0xb0e   : > { %1482 = vadd.xlane.f32.xlu0 %v1481_v41 }
 0xb9b   : > { %v1483_v42 = vpop.xlane.xlu0 %1482 }
 0xb9c   : > { %v1484_v43 = vmul.f32 0.03125, %v1483_v42 }
 0xb9e   : > { %v1485_v44 = vadd.f32 1e-05, %v1484_v43 }
 0xba0   : > { %2129 = vrsqrt.f32 %v1485_v44 }
 0xbaa   : > { %v2130_v45 = vpop.eup %2129 }
 0xbab   : > { %v1487_v47 = vmul.f32 %v2130_v45, %v1479_v39 }
 0xbad   : > { %v1495_v49 = vmul.f32 %v1788_v46, %v1487_v47 }
 0xbaf   : > { %v1503_v50 = vadd.f32 %v1789_v48, %v1495_v49 }
 0xbb1   : > { %1504 = vst.msk [vmem:[%s674_s25] sm:$0xff] %vm701_vm1, %v1503_v50 }
 0xbb2   : > { %2540 = shalt.err (!%p2537_p2)
}
 0xbb3   : > { %s2541_s3 = scalar_lea.hbm %s3289_s4, 128  ;;  %s2545_s14 = scalar_lea.hbm %s3411_s21, 256 }
 0xbb4   : > { %p2542_p4 = scmp.ne.s32.totalorder %s3289_s4, %s2541_s3  ;;  %p2546_p7 = scmp.lt.u32.totalorder %s3289_s4, %s3411_s21 }
 0xbb5   : > { %p2547_p0 = scmp.lt.u32.totalorder %s2545_s14, %s2541_s3  ;;  %p2549_p11 = scmp.lt.u32.totalorder %s2541_s3, %s3289_s4 }
 0xbb6   : > { %p2543_p10 = pnand %p2542_p4, %p3412_p8 }
 0xbb7   : > { %p2548_p6 = por %p2547_p0, %p2546_p7 }
 0xbb8   : > { %p2544_p5 = pneg %p2543_p10 }
 0xbb9   : > { %p2550_p9 = por %p2549_p11, %p2548_p6 }
 0xbbb   : > { %p2551_p12 = pnand %p2550_p9, %p2544_p5 }
 0xbbd   : > { %2554 = shalt.err (!%p2551_p12)
}
 0xbbe   : > { %1963 = dma.vmem_to_hbm [thread:$0]  (%p3412_p8), %s3291_s19, 128, %s3289_s4, %s1506_s26  }
 0xbbf PF: > { %s3413_s6 = sld [smem:[#allocation37_spill]]  ;;  %p3414_p13 = scmp.ne.s32.totalorder %s3388_s17, 0 }
 0xbc0   : > { %p3415_p1 = scmp.ge.s32.totalorder %s2625_s16, 2 }
 0xbc2   : > { %p2010_p3 = pnand %p3415_p1, %p3414_p13 }
 0xbc5   : > { %s1531_s1 = sand.u32 1, %s3413_s6  }
 0xbc6   : > { %s1532_s27 = scalar_lea.sflag [#allocation5], %s1531_s1 }
 0xbc7   : > { %2608 = dma.done.wait (!%p2010_p3), %s1532_s27, 128  }
 0xbc8   : > { %2610 = vsyncadd (!%p2010_p3), %s1532_s27, 4294967168  ;;  %p36_p2 = scmp.ge.s32.totalorder %s3033_s23, 4   ;;  %s3416_s29 = smov %s2617_s30 }
 0xbc9   : > { %s3417_s30 = smov %s2621_s15  ;;  %s3418_s15 = smov %s3044_s2 }
 0xbca   : > { %s3419_s16 = smov %s3033_s23  ;;  %38 = sbr.rel (!%p36_p2) target bundleno = 22 (0x16), region = 182 }
 0xbd1   :  { %1537 = vsyncpa [#allocation4], 1 }
 0xbd2   :  { %1539 = vsyncpa [#allocation4 + $0x1], 1 }
 0xbd3   :  { %1540 = vsyncpa [#allocation7], 1 }
 0xbd4   :  { %1542 = vsyncpa [#allocation7 + $0x1], 1 }
 0xbd5   :  { %1543 = vsyncpa [#allocation10], 1 }
 0xbd6   :  { %1544 = vsyncpa [#allocation13], 1 }
 0xbd7   :  { %1545 = vsyncpa [#allocation16], 1 }
 0xbd8   :  { %1546 = vsyncpa [#allocation19], 1 }
 0xbd9   :  { %1547 = vsyncpa [#allocation22], 1 }
 0xbda   :  { %1548 = vsyncpa [#allocation25], 1 }
 0xbdb   :  { %1549 = vsyncpa [#allocation5], 1 }
 0xbdc   :  { %1551 = vsyncpa [#allocation5 + $0x1], 1 }

</bundles_post_ra>
